<compile_context>
chip_gen: v5e
topology: v5e:2x2
jax: 0.10.0
libtpu: 0.0.40
codegen_flags: <defaults>
</compile_context>

<pallas_src>
import functools

import jax
import jax.numpy as jnp
from jax.experimental import pallas as pl
from jax.experimental.pallas import tpu as pltpu


def _round_up(x, m):
    return ((x + m - 1) // m) * m


def rescal_kernel(head_ref, tail_ref, rel_ref, tsel_ref, hselT_ref, out_ref,
                  *, n_edges):
    # head/tail: [B, D]; rel: [B, K] flat (K = D*D);
    # tsel: [D, K] with tsel[j, k] = (k % D == j); hselT: [K, D] with
    # hselT[k, i] = (k // D == i); out: [1, B].
    block_e = out_ref.shape[1]

    head = head_ref[...].astype(jnp.float32)                   # [B, D]
    tail = tail_ref[...].astype(jnp.float32)                   # [B, D]
    rel = rel_ref[...].astype(jnp.float32)                     # [B, K]

    # Lane-dense expansion of tail onto the flat k = i*D + j axis (MXU):
    #   tx[b, k] = tail[b, k % D]
    tx = jnp.dot(tail, tsel_ref[...],
                 precision=jax.lax.Precision.HIGHEST,
                 preferred_element_type=jnp.float32)            # [B, K]

    # One VPU multiply on the dominant stream.
    q = rel * tx                                                # [B, K]

    # Segmented sum over j via the 0/1 selector (MXU):
    #   rt[b, i] = sum_j rel[b, i*D + j] * tail[b, j]
    rt = jnp.dot(q, hselT_ref[...],
                 precision=jax.lax.Precision.HIGHEST,
                 preferred_element_type=jnp.float32)            # [B, D]

    score = jnp.sum(head * rt, axis=-1)                         # [B]

    # Ragged last tile: lanes whose global edge index >= n_edges hold garbage
    # (Pallas clips the HBM read but leaves stale VMEM); mask them to 0.
    lane = jax.lax.broadcasted_iota(jnp.int32, (1, block_e), 1)
    edge = pl.program_id(0) * block_e + lane
    out_ref[...] = jnp.where(edge < n_edges,
                             score[None, :], 0.0).astype(out_ref.dtype)


def rescal_score(head, tail, rel, relation_dim, entity_dim, *, block_e=512):
    """head: [E, entity_dim], tail: [E, entity_dim],
    rel: [E, relation_dim * entity_dim] (flat).  Returns score: [E] float32.

    head/tail/rel may be float32 or bfloat16; accumulation is float32."""
    assert relation_dim == entity_dim, (
        "RESCALScore's head * (R @ tail) broadcast requires "
        "relation_dim == entity_dim")
    E, D = head.shape
    K = relation_dim * entity_dim
    assert tail.shape == (E, D) and rel.shape == (E, K)

    # Tile sizing: one full-size block for small E; otherwise a multiple of 128
    # so the [1, block_e] output blocks are lane-aligned. On v7x prefer a
    # block_e giving >= 2 (and balanced) tiles so the parallel grid axis
    # shards across both TensorCores.
    block_e = max(8, int(block_e))
    if E <= block_e:
        block_e = _round_up(E, 8)
    else:
        block_e = _round_up(block_e, 128)
    num_tiles = pl.cdiv(E, block_e)
    E_pad = num_tiles * block_e   # only the tiny output row is over-allocated

    # Constant 0/1 selector matrices (flat index k = i*D + j):
    #   tail @ tsel tiles tail[:, j] over i; q @ hsel_T sums each j-segment.
    k_idx = jnp.arange(K)
    d_idx = jnp.arange(D)
    tsel = (d_idx[:, None] == (k_idx[None, :] % D)).astype(jnp.float32)   # [D, K]
    hsel_t = ((k_idx[:, None] // D) == d_idx[None, :]).astype(jnp.float32)  # [K, D]

    # VMEM budget: double-buffered rel stream + f32 upcast/tx/q temporaries.
    itemsize = jnp.dtype(rel.dtype).itemsize
    vmem_need = (
        2 * block_e * K * itemsize        # rel, double-buffered
        + 3 * block_e * K * 4             # rel f32 upcast + tx + q
        + 4 * block_e * D * 4             # head/tail tiles (double-buffered)
        + 2 * 2 * K * D * 4               # resident selectors
        + (2 << 20)                       # output rows / spill headroom
    )
    # Cap below v5e/v6e physical (128 MiB); keep block_e modest on v7x (64 MiB).
    vmem_limit = int(min(100 * 1024 * 1024, max(32 * 1024 * 1024, vmem_need)))

    kernel = functools.partial(rescal_kernel, n_edges=E)

    out = pl.pallas_call(
        kernel,
        out_shape=jax.ShapeDtypeStruct((1, E_pad), jnp.float32),
        grid_spec=pltpu.PrefetchScalarGridSpec(
            num_scalar_prefetch=0,
            grid=(num_tiles,),
            in_specs=[
                pl.BlockSpec((block_e, D), lambda i: (i, 0)),   # head
                pl.BlockSpec((block_e, D), lambda i: (i, 0)),   # tail
                pl.BlockSpec((block_e, K), lambda i: (i, 0)),   # rel (flat)
                pl.BlockSpec((D, K), lambda i: (0, 0)),         # tsel (resident)
                pl.BlockSpec((K, D), lambda i: (0, 0)),         # hsel_T (resident)
            ],
            out_specs=pl.BlockSpec((1, block_e), lambda i: (0, i)),
        ),
        compiler_params=pltpu.CompilerParams(
            dimension_semantics=("parallel",),
            vmem_limit_bytes=vmem_limit,
        ),
    )(head, tail, rel, tsel, hsel_t)
    return out[0, :E]


def rescal_score_ref(head, tail, rel, relation_dim, entity_dim):
    rel3 = rel.reshape(-1, relation_dim, entity_dim)
    rt = jnp.einsum('bij,bj->bi', rel3, tail,
                    precision=jax.lax.Precision.HIGHEST)
    return jnp.sum(head * rt, axis=-1)


if __name__ == "__main__":
    # TODO(synk): DGL graph plumbing (g.apply_edges) is host-side glue; the
    # kernel implements edge_func on pre-gathered per-edge tensors.
    entity_dim = 32
    relation_dim = 32

    base_key = jax.random.PRNGKey(0)
    key1, key2 = jax.random.split(base_key)

    def make_inputs(key, E, dtype=jnp.float32):
        k1, k2, k3 = jax.random.split(key, 3)
        head = jax.random.normal(k1, (E, entity_dim), dtype=jnp.float32)
        tail = jax.random.normal(k2, (E, entity_dim), dtype=jnp.float32)
        rel = jax.random.normal(k3, (E, relation_dim * entity_dim),
                                dtype=jnp.float32)
        return head.astype(dtype), tail.astype(dtype), rel.astype(dtype)

    # Case 1: small E not divisible by 8 -> single ragged block, f32 inputs.
    head, tail, rel = make_inputs(key1, 19)
    score = jax.block_until_ready(
        rescal_score(head, tail, rel, relation_dim, entity_dim))
    ref = rescal_score_ref(head, tail, rel, relation_dim, entity_dim)
    assert score.shape == (19,) and score.dtype == jnp.float32
    assert jnp.allclose(score, ref, atol=1e-3, rtol=1e-3), "mismatch (E=19)"

    # Case 2: multi-block grid with a ragged last tile (no wrapper-side pad of
    # rel), bfloat16 inputs on the wire (halves the dominant rel HBM stream),
    # f32 accumulation and f32 scores out.
    head, tail, rel = make_inputs(key2, 300, dtype=jnp.bfloat16)
    score = jax.block_until_ready(
        rescal_score(head, tail, rel, relation_dim, entity_dim, block_e=128))
    ref = rescal_score_ref(head.astype(jnp.float32), tail.astype(jnp.float32),
                           rel.astype(jnp.float32), relation_dim, entity_dim)
    assert score.shape == (300,) and score.dtype == jnp.float32
    assert jnp.allclose(score, ref, atol=5e-2, rtol=2e-2), "mismatch (E=300)"

    print("KERNEL_OK")
</pallas_src>

<mosaic_0001>
module attributes {stable_mosaic.version = 11 : i64} {
  func.func @rescal_kernel(%arg0: i32, %arg1: memref<24x32xf32, #tpu.memory_space<vmem>>, %arg2: memref<24x32xf32, #tpu.memory_space<vmem>>, %arg3: memref<24x1024xf32, #tpu.memory_space<vmem>>, %arg4: memref<32x1024xf32, #tpu.memory_space<vmem>>, %arg5: memref<1024x32xf32, #tpu.memory_space<vmem>>, %arg6: memref<1x24xf32, #tpu.memory_space<vmem>>) attributes {dimension_semantics = [#tpu.dimension_semantics<parallel>], iteration_bounds = array<i64: 1>, scalar_prefetch = 0 : i64, scratch_operands = 0 : i64, tpu.core_type = #tpu.core_type<tc>, window_params = [{transform_indices = @transform_0, window_bounds = array<i64: 24, 32>}, {transform_indices = @transform_1, window_bounds = array<i64: 24, 32>}, {transform_indices = @transform_2, window_bounds = array<i64: 24, 1024>}, {pipeline_mode = #tpu.pipeline_mode<synchronous>, transform_indices = @transform_3, window_bounds = array<i64: 32, 1024>}, {pipeline_mode = #tpu.pipeline_mode<synchronous>, transform_indices = @transform_4, window_bounds = array<i64: 1024, 32>}, {transform_indices = @transform_5, window_bounds = array<i64: 1, 24>}]} {
    %c0 = arith.constant 0 : index
    %c0_0 = arith.constant 0 : index
    %0 = vector.load %arg1[%c0, %c0_0] : memref<24x32xf32, #tpu.memory_space<vmem>>, vector<24x32xf32>
    %c0_1 = arith.constant 0 : index
    %c0_2 = arith.constant 0 : index
    %1 = vector.load %arg2[%c0_1, %c0_2] : memref<24x32xf32, #tpu.memory_space<vmem>>, vector<24x32xf32>
    %c0_3 = arith.constant 0 : index
    %c0_4 = arith.constant 0 : index
    %2 = vector.load %arg3[%c0_3, %c0_4] : memref<24x1024xf32, #tpu.memory_space<vmem>>, vector<24x1024xf32>
    %c0_5 = arith.constant 0 : index
    %c0_6 = arith.constant 0 : index
    %3 = vector.load %arg4[%c0_5, %c0_6] : memref<32x1024xf32, #tpu.memory_space<vmem>>, vector<32x1024xf32>
    %cst = arith.constant dense<0.000000e+00> : vector<24x1024xf32>
    %4 = tpu.matmul %1, %3, %cst {dimension_numbers = #tpu.dot_dimension_numbers<[1], [0], [0], [1], [0, 0, 1, 1], [], []>, precision = #tpu.contract_precision<fp32>} : vector<24x32xf32>, vector<32x1024xf32>, vector<24x1024xf32> -> vector<24x1024xf32>
    %5 = arith.mulf %2, %4 : vector<24x1024xf32>
    %c0_7 = arith.constant 0 : index
    %c0_8 = arith.constant 0 : index
    %6 = vector.load %arg5[%c0_7, %c0_8] : memref<1024x32xf32, #tpu.memory_space<vmem>>, vector<1024x32xf32>
    %cst_9 = arith.constant dense<0.000000e+00> : vector<24x32xf32>
    %7 = tpu.matmul %5, %6, %cst_9 {dimension_numbers = #tpu.dot_dimension_numbers<[1], [0], [0], [1], [0, 0, 1, 1], [], []>, precision = #tpu.contract_precision<fp32>} : vector<24x1024xf32>, vector<1024x32xf32>, vector<24x32xf32> -> vector<24x32xf32>
    %8 = arith.mulf %0, %7 : vector<24x32xf32>
    %cst_10 = arith.constant dense<0.000000e+00> : vector<24xf32>
    %9 = vector.multi_reduction <add>, %8, %cst_10 [1] : vector<24x32xf32> to vector<24xf32>
    %10 = tpu.iota {dimensions = array<i32: 1>} : vector<1x24xi32>
    %c24_i32 = arith.constant 24 : i32
    %11 = arith.muli %arg0, %c24_i32 : i32
    %12 = vector.broadcast %11 : i32 to vector<1x24xi32>
    %13 = arith.addi %12, %10 : vector<1x24xi32>
    %c19_i32 = arith.constant 19 : i32
    %14 = vector.broadcast %c19_i32 : i32 to vector<1x24xi32>
    %15 = arith.cmpi slt, %13, %14 : vector<1x24xi32>
    %16 = vector.shape_cast %9 : vector<24xf32> to vector<1x24xf32>
    %cst_11 = arith.constant 0.000000e+00 : f32
    %17 = vector.broadcast %cst_11 : f32 to vector<1x24xf32>
    %18 = arith.select %15, %16, %17 : vector<1x24xi1>, vector<1x24xf32>
    %c0_12 = arith.constant 0 : index
    %c0_13 = arith.constant 0 : index
    %19 = vector.load %arg6[%c0_12, %c0_13] : memref<1x24xf32, #tpu.memory_space<vmem>>, vector<1x24xf32>
    tpu.vector_store %arg6[%c0_12, %c0_13], %18 {strides = array<i32>} : memref<1x24xf32, #tpu.memory_space<vmem>>, vector<1x24xf32>,
    return
  }
  func.func @transform_0(%arg0: i32) -> (i32, i32) {
    %c0_i32 = arith.constant 0 : i32
    %c0_i32_0 = arith.constant 0 : i32
    return %arg0, %c0_i32 : i32, i32
  }
  func.func @transform_1(%arg0: i32) -> (i32, i32) {
    %c0_i32 = arith.constant 0 : i32
    %c0_i32_0 = arith.constant 0 : i32
    return %arg0, %c0_i32 : i32, i32
  }
  func.func @transform_2(%arg0: i32) -> (i32, i32) {
    %c0_i32 = arith.constant 0 : i32
    %c0_i32_0 = arith.constant 0 : i32
    return %arg0, %c0_i32 : i32, i32
  }
  func.func @transform_3(%arg0: i32) -> (i32, i32) {
    %c0_i32 = arith.constant 0 : i32
    %c0_i32_0 = arith.constant 0 : i32
    %c0_i32_1 = arith.constant 0 : i32
    return %c0_i32, %c0_i32_0 : i32, i32
  }
  func.func @transform_4(%arg0: i32) -> (i32, i32) {
    %c0_i32 = arith.constant 0 : i32
    %c0_i32_0 = arith.constant 0 : i32
    %c0_i32_1 = arith.constant 0 : i32
    return %c0_i32, %c0_i32_0 : i32, i32
  }
  func.func @transform_5(%arg0: i32) -> (i32, i32) {
    %c0_i32 = arith.constant 0 : i32
    %c0_i32_0 = arith.constant 0 : i32
    return %c0_i32, %arg0 : i32, i32
  }
}

</mosaic_0001>

<bundles_post_ra>
// kernel: tpu_custom_call.1
= control target key start
LH: loop header
LB: loop body
LE: loop exit
PB: predicated region body
PF: predicated region fallthrough
CT: control target
= control target key end

     0   :  { %vm83_vm0 = vcmask 261120   ;;  %s9379_s0 = inlined_call_operand.vmem [shape: f32[19,32], index: 0, kind: input, shape index: {}]   ;;  %s9380_s1 = inlined_call_operand.vmem [shape: f32[19,32], index: 1, kind: input, shape index: {}]   ;;  %s9381_s2 = inlined_call_operand.vmem [shape: f32[19,1024], index: 2, kind: input, shape index: {}]   ;;  %s9382_s3 = inlined_call_operand.vmem [shape: f32[32,1024], index: 3, kind: input, shape index: {}]   ;;  %s9383_s4 = inlined_call_operand.vmem [shape: f32[1024,32], index: 4, kind: input, shape index: {}]   ;;  %s9384_s5 = inlined_call_operand.hbm [shape: f32[1,24], index: 5, kind: output, shape index: {}]  }
   0x1   :  { %v75_v0 = vld [vmem:[%s9382_s3 + $0xc0] sm:$0xff]  ;;  %v25_v8 = vld [vmem:[%s9380_s1 + $0x8] sm:$0xff]  ;;  %v26_v12 = vld [vmem:[%s9380_s1 + $0x10] sm:$0xff] }
   0x2   :  { %v67_v1 = vld [vmem:[%s9382_s3 + $0x80] sm:$0xff]  ;;  %v5562_v3 = vand.u32 4294901760, %v75_v0  ;;  %v88_v11 = vsel %vm83_vm0, %v25_v8, 0  ;;  %v76_v13 = vld [vmem:[%s9382_s3 + $0xc8] sm:$0xff] }
   0x3   :  { %v59_v2 = vld [vmem:[%s9382_s3 + $0x40] sm:$0xff]  ;;  %v5564_v4 = vand.u32 4294901760, %v67_v1 }
   0x4   :  { %v5566_v5 = vand.u32 4294901760, %v59_v2  ;;  %v51_v6 = vld [vmem:[%s9382_s3] sm:$0xff]  ;;  %240 = vmatpush.msra.mxu3 %v5562_v3  ;;  %106 = vmatpush.msra.mxu0 %v5562_v3  ;;  %v151_v14 = vsub.f32 %v75_v0, %v5562_v3 }
   0x5   :  { %v24_v7 = vld [vmem:[%s9380_s1] sm:$0xff]  ;;  %v5577_v9 = vand.u32 4294901760, %v51_v6  ;;  %v157_v15 = vsub.f32 %v67_v1, %v5564_v4 }
   0x6   :  { %v85_v10 = vsel %vm83_vm0, %v24_v7, 0  ;;  %v5592_v16 = vsub.f32 %v59_v2, %v5566_v5 }
   0x7   :  { %v5594_v17 = vand.u32 4294901760, %v85_v10 }
   0x8   :  { %10 = vsyncpa [#allocation3], 0  ;;  %v5597_v18 = vsub.f32 %v51_v6, %v5577_v9  ;;  %v5599_v19 = vand.u32 4294901760, %v88_v11  ;;  %v91_v20 = vsel %vm83_vm0, %v26_v12, 0  ;;  %v5602_v21 = vand.u32 4294901760, %v76_v13  ;;  %201 = vmatpush.msra.mxu2 %v151_v14  ;;  %242 = vmatpush.msra.mxu3 %v5564_v4  ;;  %v68_v36 = vld [vmem:[%s9382_s3 + $0x88] sm:$0xff] }
   0x9   :  { %v5606_v22 = vsub.f32 %v85_v10, %v5594_v17  ;;  %v152_v23 = vand.u32 4294901760, %v151_v14  ;;  %v158_v24 = vand.u32 4294901760, %v157_v15  ;;  %v164_v25 = vand.u32 4294901760, %v5592_v16  ;;  %108 = vmatpush.msra.mxu0 %v5564_v4  ;;  %v60_v37 = vld [vmem:[%s9382_s3 + $0x48] sm:$0xff]  ;;  %v61_v10 = vld [vmem:[%s9382_s3 + $0x50] sm:$0xff]  ;;  %s5522_s20 = smov [#allocation2]  }
   0xa   :  { %v170_v26 = vand.u32 4294901760, %v5597_v18  ;;  %v5612_v27 = vsub.f32 %v88_v11, %v5599_v19  ;;  %v5615_v28 = vsub.f32 %v76_v13, %v5602_v21  ;;  %204 = vmatpush.msra.mxu2 %v157_v15  ;;  %244 = vmatpush.msra.mxu3 %v5566_v5  ;;  %v5626_v34 = vand.u32 4294901760, %v91_v20  ;;  %v52_v38 = vld [vmem:[%s9382_s3 + $0x8] sm:$0xff]  ;;  %v53_v11 = vld [vmem:[%s9382_s3 + $0x10] sm:$0xff]  ;;  %s5484_s21 = sshll.u32 %s5522_s20, 4  ;;  %s5486_s23 = sshll.u32 %s9384_s5, 4  ;;  %s5485_s21 = int_to_ptr.vmem [resolvable:$true] %s5484_s21  ;;  %s5487_s23 = int_to_ptr.hbm [resolvable:$true] %s5486_s23 }
   0xb   :  { %v5619_v29 = vand.u32 4294901760, %v5606_v22  ;;  %v153_v30 = vsub.f32 %v151_v14, %v152_v23  ;;  %v159_v31 = vsub.f32 %v157_v15, %v158_v24  ;;  %v165_v32 = vsub.f32 %v5592_v16, %v164_v25  ;;  %110 = vmatpush.msra.mxu0 %v5566_v5 }
   0xc   :  { %v5624_v33 = vand.u32 4294901760, %v5612_v27  ;;  %v399_v35 = vand.u32 4294901760, %v5615_v28  ;;  %207 = vmatpush.msra.mxu2 %v5592_v16  ;;  %246 = vmatpush.msra.mxu3 %v5577_v9  ;;  %v171_v42 = vsub.f32 %v5597_v18, %v170_v26  ;;  %v5649_v46 = vand.u32 4294901760, %v68_v36 }
   0xd   :  { %v154_v39 = vand.u32 4294901760, %v153_v30  ;;  %v116_v40 = vsub.f32 %v5606_v22, %v5619_v29  ;;  %v160_v41 = vand.u32 4294901760, %v159_v31  ;;  %250 = vmatmul.f32.vlgmr.msra.gmra.mxu3 %v5619_v29  ;;  %112 = vmatpush.msra.mxu0 %v5577_v9  ;;  %v166_v43 = vand.u32 4294901760, %v165_v32 }
   0xe   :  { %v400_v44 = vsub.f32 %v5615_v28, %v399_v35  ;;  %210 = vmatpush.msra.mxu2 %v5597_v18  ;;  %v5651_v47 = vand.u32 4294901760, %v60_v37  ;;  %v5653_v48 = vand.u32 4294901760, %v52_v38  ;;  %v124_v49 = vsub.f32 %v5612_v27, %v5624_v33 }
   0xf   :  { %155 = vmatpush.msra.mxu1 %v154_v39  ;;  %v5647_v45 = vand.u32 4294901760, %v116_v40  ;;  %213 = vmatmul.f32.vlgmr.msra.gmra.mxu2 %v5606_v22  ;;  %v5659_v50 = vsub.f32 %v91_v20, %v5626_v34  ;;  %v172_v52 = vand.u32 4294901760, %v171_v42  ;;  %v404_v53 = vsub.f32 %v68_v36, %v5649_v46  ;;  %v78_v36 = vld [vmem:[%s9382_s3 + $0xd8] sm:$0xff] }
  0x10   :  { %v401_v51 = vand.u32 4294901760, %v400_v44  ;;  %281 = vmatpush.msrb.mxu0 %v152_v23  ;;  %v410_v54 = vsub.f32 %v60_v37, %v5651_v47  ;;  %v416_v55 = vsub.f32 %v52_v38, %v5653_v48  ;;  %353 = vmatpush.msrb.mxu2 %v5602_v21  ;;  %v5670_v60 = vand.u32 4294901760, %v124_v49  ;;  %v70_v38 = vld [vmem:[%s9382_s3 + $0x98] sm:$0xff] }
  0x11   :  { %118 = vmatmul.f32.vlgmr.msra.gmra.mxu0 %v5647_v45  ;;  %161 = vmatpush.msra.mxu1 %v160_v41  ;;  %v405_v56 = vand.u32 4294901760, %v404_v53  ;;  %v5667_v59 = vand.u32 4294901760, %v5659_v50  ;;  %v5727_v13 = vand.u32 4294901760, %v61_v10  ;;  %v5729_v14 = vand.u32 4294901760, %v53_v11  ;;  %v62_v41 = vld [vmem:[%s9382_s3 + $0x58] sm:$0xff] }
  0x12   :  { %402 = vmatpush.msrb.mxu3 %v401_v51  ;;  %285 = vmatpush.msrb.mxu0 %v158_v24  ;;  %v411_v57 = vand.u32 4294901760, %v410_v54  ;;  %v417_v58 = vand.u32 4294901760, %v416_v55  ;;  %v5748_v37 = vand.u32 4294901760, %v78_v36  ;;  %v5755_v40 = vand.u32 4294901760, %v70_v38 }
  0x13   :  { %167 = vmatpush.msra.mxu1 %v166_v43  ;;  %355 = vmatpush.msrb.mxu2 %v5649_v46  ;;  %v406_v61 = vsub.f32 %v404_v53, %v405_v56  ;;  %v132_v2 = vsub.f32 %v5659_v50, %v5667_v59  ;;  %v657_v16 = vsub.f32 %v61_v10, %v5727_v13  ;;  %v850_v44 = vand.u32 4294901760, %v62_v41  ;;  %v55_v10 = vld [vmem:[%s9382_s3 + $0x20] sm:$0xff] }
  0x14   :  { %v412_v62 = vsub.f32 %v410_v54, %v411_v57  ;;  %289 = vmatpush.msrb.mxu0 %v164_v25  ;;  %v418_v63 = vsub.f32 %v416_v55, %v417_v58  ;;  %v663_v23 = vsub.f32 %v53_v11, %v5729_v14  ;;  %v892_v39 = vsub.f32 %v78_v36, %v5748_v37 }
  0x15   :  { %173 = vmatpush.msra.mxu1 %v172_v52  ;;  %256 = vmatmul.f32.gmra.mxu3 %v5624_v33  ;;  %v407_v0 = vand.u32 4294901760, %v406_v61  ;;  %v5684_v7 = vand.u32 4294901760, %v132_v2  ;;  %v658_v25 = vand.u32 4294901760, %v657_v16  ;;  %v898_v43 = vsub.f32 %v70_v38, %v5755_v40  ;;  %v71_v2 = vld [vmem:[%s9382_s3 + $0xa0] sm:$0xff] }
  0x16   :  { %175 = vmatmul.f32.vlgmr.msra.gmra.mxu1 %v5594_v17  ;;  %v413_v1 = vand.u32 4294901760, %v412_v62  ;;  %357 = vmatpush.msrb.mxu2 %v5651_v47  ;;  %v419_v6 = vand.u32 4294901760, %v418_v63  ;;  %v664_v30 = vand.u32 4294901760, %v663_v23  ;;  %v893_v42 = vand.u32 4294901760, %v892_v39 }
  0x17   :  { %293 = vmatpush.msrb.mxu0 %v170_v26  ;;  %218 = vmatmul.f32.gmra.mxu2 %v5612_v27  ;;  %v904_v49 = vsub.f32 %v62_v41, %v850_v44  ;;  %v56_v41 = vld [vmem:[%s9382_s3 + $0x28] sm:$0xff]  ;;  %vm5469_vm1 = vcmask 130112   ;;  %vm5473_vm2 = vcmask 195712   ;;  %vm5477_vm4 = vcmask 188416  }
  0x18   :  { %320 = vmatpush.msrb.mxu1 %v5562_v3  ;;  %408 = vmatpush.msrb.mxu3 %v407_v0  ;;  %v77_v3 = vld [vmem:[%s9382_s3 + $0xd0] sm:$0xff]  ;;  %v665_v32 = vsub.f32 %v663_v23, %v664_v30  ;;  %v79_v0 = vld [vmem:[%s9382_s3 + $0xe0] sm:$0xff] }
  0x19   :  { %126 = vmatmul.f32.gmra.mxu0 %v5670_v60  ;;  %359 = vmatpush.msrb.mxu2 %v5653_v48 }
  0x1a   :  { %322 = vmatpush.msrb.mxu1 %v5564_v4  ;;  %414 = vmatpush.msrb.mxu3 %v413_v1  ;;  %v5708_v4 = vand.u32 4294901760, %v77_v3  ;;  %v5804_v1 = vand.u32 4294901760, %v79_v0 }
  0x1b   :  { %448 = vmatpush.msra.mxu0 %v5615_v28  ;;  %528 = vmatpush.msra.mxu2 %v399_v35  ;;  %v659_v28 = vsub.f32 %v657_v16, %v658_v25  ;;  %v666_v35 = vand.u32 4294901760, %v665_v32  ;;  %v72_v32 = vld [vmem:[%s9382_s3 + $0xa8] sm:$0xff] }
  0x1c   :  { %324 = vmatpush.msrb.mxu1 %v5566_v5  ;;  %420 = vmatpush.msrb.mxu3 %v419_v6  ;;  %v69_v5 = vld [vmem:[%s9382_s3 + $0x90] sm:$0xff]  ;;  %v645_v8 = vsub.f32 %v77_v3, %v5708_v4  ;;  %v1139_v6 = vsub.f32 %v79_v0, %v5804_v1  ;;  %v5812_v3 = vand.u32 4294901760, %v71_v2  ;;  %v5858_v36 = vand.u32 4294901760, %v72_v32 }
  0x1d   :  { %451 = vmatpush.msra.mxu0 %v404_v53  ;;  %262 = vmatmul.f32.gmra.mxu3 %v5667_v59  ;;  %v660_v31 = vand.u32 4294901760, %v659_v28 }
  0x1e   :  { %179 = vmatmul.f32.gmra.mxu1 %v5599_v19  ;;  %567 = vmatpush.msra.mxu3 %v5602_v21  ;;  %v646_v15 = vand.u32 4294901760, %v645_v8 }
  0x1f   :  { %326 = vmatpush.msrb.mxu1 %v5577_v9  ;;  %223 = vmatmul.f32.gmra.mxu2 %v5659_v50  ;;  %v5716_v9 = vand.u32 4294901760, %v69_v5 }
  0x20   :  { %454 = vmatpush.msra.mxu0 %v410_v54  ;;  %569 = vmatpush.msra.mxu3 %v5649_v46  ;;  %v647_v18 = vsub.f32 %v645_v8, %v646_v15  ;;  %v905_v54 = vand.u32 4294901760, %v904_v49 }
  0x21   :  { %134 = vmatmul.f32.gmra.mxu0 %v5684_v7  ;;  %532 = vmatpush.msra.mxu2 %v405_v56  ;;  %v651_v12 = vsub.f32 %v69_v5, %v5716_v9  ;;  %v1145_v5 = vsub.f32 %v71_v2, %v5812_v3 }
  0x22   :  { %457 = vmatpush.msra.mxu0 %v416_v55  ;;  %571 = vmatpush.msra.mxu3 %v5651_v47 }
  0x23   :  { %487 = vmatpush.msra.mxu1 %v5602_v21  ;;  %536 = vmatpush.msra.mxu2 %v411_v57  ;;  %v652_v20 = vand.u32 4294901760, %v651_v12  ;;  %v648_v21 = vand.u32 4294901760, %v647_v18  ;;  %v906_v57 = vsub.f32 %v904_v49, %v905_v54 }
  0x24   :  { %573 = vmatpush.msra.mxu3 %v5653_v48 }
  0x25   :  { %489 = vmatpush.msra.mxu1 %v5649_v46  ;;  %422 = vmatmul.f32.vlgmr.msrb.gmra.mxu3 %v5594_v17  ;;  %v653_v24 = vsub.f32 %v651_v12, %v652_v20  ;;  %v54_v46 = vld [vmem:[%s9382_s3 + $0x18] sm:$0xff]  ;;  %v907_v61 = vand.u32 4294901760, %v906_v57 }
  0x26   :  { %183 = vmatmul.f32.gmra.mxu1 %v5626_v34  ;;  %540 = vmatpush.msra.mxu2 %v417_v58  ;;  %v852_v51 = vand.u32 4294901760, %v54_v46 }
  0x27   :  { %491 = vmatpush.msra.mxu1 %v5651_v47  ;;  %365 = vmatmul.f32.vlgmr.msrb.gmra.mxu2 %v5647_v45  ;;  %v654_v26 = vand.u32 4294901760, %v653_v24  ;;  %v894_v47 = vsub.f32 %v892_v39, %v893_v42 }
  0x28   :  { %734 = vmatpush.msrb.mxu3 %v5708_v4  ;;  %695 = vmatpush.msrb.mxu2 %v645_v8  ;;  %v910_v55 = vsub.f32 %v54_v46, %v852_v51  ;;  %v5880_v46 = vand.u32 4294901760, %v56_v41 }
  0x29   :  { %295 = vmatmul.f32.vlgmr.msrb.gmra.mxu0 %v5594_v17  ;;  %493 = vmatpush.msra.mxu1 %v5653_v48  ;;  %v899_v48 = vand.u32 4294901760, %v898_v43  ;;  %v895_v52 = vand.u32 4294901760, %v894_v47 }
  0x2a   :  { %600 = vmatpush.msrb.mxu0 %v5708_v4  ;;  %736 = vmatpush.msrb.mxu3 %v5716_v9  ;;  %v911_v58 = vand.u32 4294901760, %v910_v55 }
  0x2b   :  { %698 = vmatpush.msrb.mxu2 %v651_v12  ;;  %v900_v53 = vsub.f32 %v898_v43, %v899_v48  ;;  %v5828_v12 = vand.u32 4294901760, %v55_v10 }
  0x2c   :  { %602 = vmatpush.msrb.mxu0 %v5716_v9  ;;  %738 = vmatpush.msrb.mxu3 %v5727_v13  ;;  %v912_v62 = vsub.f32 %v910_v55, %v911_v58 }
  0x2d   :  { %426 = vmatmul.f32.gmra.mxu3 %v5599_v19  ;;  %701 = vmatpush.msrb.mxu2 %v657_v16  ;;  %v901_v56 = vand.u32 4294901760, %v900_v53  ;;  %v5834_v16 = vsub.f32 %v55_v10, %v5828_v12 }
  0x2e   :  { %328 = vmatmul.f32.vlgmr.msrb.gmra.mxu1 %v5594_v17  ;;  %604 = vmatpush.msrb.mxu0 %v5727_v13  ;;  %v913_v63 = vand.u32 4294901760, %v912_v62 }
  0x2f   :  { %373 = vmatmul.f32.gmra.mxu2 %v5670_v60  ;;  %740 = vmatpush.msrb.mxu3 %v5729_v14  ;;  %v1158_v24 = vand.u32 4294901760, %v5834_v16 }
  0x30   :  { %649 = vmatpush.msrb.mxu1 %v648_v21  ;;  %606 = vmatpush.msrb.mxu0 %v5729_v14 }
  0x31   :  { %299 = vmatmul.f32.gmra.mxu0 %v5599_v19  ;;  %704 = vmatpush.msrb.mxu2 %v663_v23 }
  0x32   :  { %655 = vmatpush.msrb.mxu1 %v654_v26  ;;  %v1159_v26 = vsub.f32 %v5834_v16, %v1158_v24 }
  0x34   :  { %661 = vmatpush.msrb.mxu1 %v660_v31  ;;  %v1160_v28 = vand.u32 4294901760, %v1159_v26 }
  0x35   :  { %430 = vmatmul.f32.gmra.mxu3 %v5626_v34 }
  0x36   :  { %332 = vmatmul.f32.gmra.mxu1 %v5599_v19 }
  0x37   :  { %381 = vmatmul.f32.gmra.mxu2 %v5684_v7  ;;  %667 = vmatpush.msrb.mxu1 %v666_v35 }
  0x39   :  { %303 = vmatmul.f32.gmra.mxu0 %v5626_v34 }
  0x3d   :  { %575 = vmatmul.f32.vlgmr.msra.gmra.mxu3 %v5594_v17 }
  0x3e   :  { %336 = vmatmul.f32.gmra.mxu1 %v5626_v34  ;;  %896 = vmatpush.msra.mxu3 %v895_v52  ;;  %v5888_v52 = vsub.f32 %v56_v41, %v5880_v46 }
  0x3f   :  { %542 = vmatmul.f32.vlgmr.msra.gmra.mxu2 %v5594_v17 }
  0x40   :  { %847 = vmatpush.msra.mxu2 %v5748_v37  ;;  %902 = vmatpush.msra.mxu3 %v901_v56 }
  0x41   :  { %460 = vmatmul.f32.vlgmr.msra.gmra.mxu0 %v5606_v22 }
  0x42   :  { %775 = vmatpush.msra.mxu0 %v646_v15  ;;  %849 = vmatpush.msra.mxu2 %v5755_v40 }
  0x43   :  { %908 = vmatpush.msra.mxu3 %v907_v61 }
  0x44   :  { %779 = vmatpush.msra.mxu0 %v652_v20  ;;  %851 = vmatpush.msra.mxu2 %v850_v44 }
  0x45   :  { %579 = vmatmul.f32.gmra.mxu3 %v5599_v19 }
  0x46   :  { %497 = vmatmul.f32.vlgmr.msra.gmra.mxu1 %v5619_v29  ;;  %783 = vmatpush.msra.mxu0 %v658_v25 }
  0x47   :  { %814 = vmatpush.msra.mxu1 %v5708_v4  ;;  %546 = vmatmul.f32.gmra.mxu2 %v5599_v19  ;;  %v63_v4 = vld [vmem:[%s9382_s3 + $0x60] sm:$0xff] }
  0x48   :  { %853 = vmatpush.msra.mxu2 %v852_v51  ;;  %787 = vmatpush.msra.mxu0 %v664_v30  ;;  %v5820_v8 = vand.u32 4294901760, %v63_v4  ;;  %v80_v30 = vld [vmem:[%s9382_s3 + $0xe8] sm:$0xff] }
  0x49   :  { %465 = vmatmul.f32.gmra.mxu0 %v5612_v27  ;;  %816 = vmatpush.msra.mxu1 %v5716_v9  ;;  %v1140_v9 = vand.u32 4294901760, %v1139_v6  ;;  %v5849_v31 = vand.u32 4294901760, %v80_v30 }
  0x4a   :  { %914 = vmatpush.msra.mxu3 %v913_v63  ;;  %v1151_v11 = vsub.f32 %v63_v4, %v5820_v8 }
  0x4b   :  { %818 = vmatpush.msra.mxu1 %v5727_v13  ;;  %v1141_v13 = vsub.f32 %v1139_v6, %v1140_v9  ;;  %v5856_v35 = vsub.f32 %v80_v30, %v5849_v31 }
  0x4c   :  { %v1152_v20 = vand.u32 4294901760, %v1151_v11 }
  0x4d   :  { %583 = vmatmul.f32.gmra.mxu3 %v5626_v34  ;;  %820 = vmatpush.msra.mxu1 %v5729_v14  ;;  %v1146_v14 = vand.u32 4294901760, %v1145_v5  ;;  %v1142_v15 = vand.u32 4294901760, %v1141_v13  ;;  %v1387_v38 = vand.u32 4294901760, %v5856_v35 }
  0x4e   :  { %503 = vmatmul.f32.gmra.mxu1 %v5624_v33  ;;  %v1153_v23 = vsub.f32 %v1151_v11, %v1152_v20 }
  0x4f   :  { %550 = vmatmul.f32.gmra.mxu2 %v5626_v34  ;;  %v1147_v18 = vsub.f32 %v1145_v5, %v1146_v14 }
  0x50   :  { %v1154_v25 = vand.u32 4294901760, %v1153_v23 }
  0x51   :  { %470 = vmatmul.f32.gmra.mxu0 %v5659_v50  ;;  %v1148_v21 = vand.u32 4294901760, %v1147_v18 }
  0x55   :  { %744 = vmatmul.f32.vlgmr.msrb.gmra.mxu3 %v5619_v29 }
  0x56   :  { %509 = vmatmul.f32.gmra.mxu1 %v5667_v59  ;;  %1061 = vmatpush.msrb.mxu3 %v5748_v37 }
  0x57   :  { %707 = vmatmul.f32.vlgmr.msrb.gmra.mxu2 %v5606_v22 }
  0x58   :  { %1022 = vmatpush.msrb.mxu2 %v893_v42  ;;  %1063 = vmatpush.msrb.mxu3 %v5755_v40  ;;  %v1388_v42 = vsub.f32 %v5856_v35, %v1387_v38 }
  0x59   :  { %612 = vmatmul.f32.vlgmr.msrb.gmra.mxu0 %v5647_v45 }
  0x5a   :  { %942 = vmatpush.msrb.mxu0 %v892_v39  ;;  %1026 = vmatpush.msrb.mxu2 %v899_v48  ;;  %v5867_v39 = vsub.f32 %v72_v32, %v5858_v36  ;;  %v1389_v48 = vand.u32 4294901760, %v1388_v42 }
  0x5b   :  { %1065 = vmatpush.msrb.mxu3 %v850_v44 }
  0x5c   :  { %945 = vmatpush.msrb.mxu0 %v898_v43  ;;  %1030 = vmatpush.msrb.mxu2 %v905_v54  ;;  %v1393_v43 = vand.u32 4294901760, %v5867_v39 }
  0x5d   :  { %750 = vmatmul.f32.gmra.mxu3 %v5624_v33 }
  0x5e   :  { %669 = vmatmul.f32.vlgmr.msrb.gmra.mxu1 %v5594_v17  ;;  %948 = vmatpush.msrb.mxu0 %v904_v49  ;;  %v1394_v49 = vsub.f32 %v5867_v39, %v1393_v43 }
  0x5f   :  { %1067 = vmatpush.msrb.mxu3 %v852_v51  ;;  %712 = vmatmul.f32.gmra.mxu2 %v5612_v27 }
  0x60   :  { %981 = vmatpush.msrb.mxu1 %v5748_v37  ;;  %1034 = vmatpush.msrb.mxu2 %v911_v58  ;;  %v64_v37 = vld [vmem:[%s9382_s3 + $0x68] sm:$0xff]  ;;  %v1395_v53 = vand.u32 4294901760, %v1394_v49 }
  0x61   :  { %620 = vmatmul.f32.gmra.mxu0 %v5670_v60 }
  0x62   :  { %951 = vmatpush.msrb.mxu0 %v910_v55  ;;  %983 = vmatpush.msrb.mxu1 %v5755_v40  ;;  %v5869_v40 = vand.u32 4294901760, %v64_v37  ;;  %v1405_v55 = vand.u32 4294901760, %v5888_v52 }
  0x64   :  { %985 = vmatpush.msrb.mxu1 %v850_v44  ;;  %v5878_v44 = vsub.f32 %v64_v37, %v5869_v40  ;;  %v1406_v58 = vsub.f32 %v5888_v52, %v1405_v55 }
  0x65   :  { %756 = vmatmul.f32.gmra.mxu3 %v5667_v59 }
  0x66   :  { %673 = vmatmul.f32.gmra.mxu1 %v5599_v19  ;;  %v1407_v0 = vand.u32 4294901760, %v1406_v58 }
  0x67   :  { %987 = vmatpush.msrb.mxu1 %v852_v51  ;;  %717 = vmatmul.f32.gmra.mxu2 %v5659_v50  ;;  %v1399_v51 = vand.u32 4294901760, %v5878_v44 }
  0x69   :  { %628 = vmatmul.f32.gmra.mxu0 %v5684_v7  ;;  %v1400_v54 = vsub.f32 %v5878_v44, %v1399_v51 }
  0x6b   :  { %v1401_v57 = vand.u32 4294901760, %v1400_v54 }
  0x6d   :  { %916 = vmatmul.f32.vlgmr.msra.gmra.mxu3 %v5594_v17 }
  0x6e   :  { %677 = vmatmul.f32.gmra.mxu1 %v5626_v34  ;;  %1228 = vmatpush.msra.mxu3 %v5804_v1 }
  0x6f   :  { %859 = vmatmul.f32.vlgmr.msra.gmra.mxu2 %v5647_v45 }
  0x70   :  { %1189 = vmatpush.msra.mxu2 %v1139_v6  ;;  %1230 = vmatpush.msra.mxu3 %v5812_v3 }
  0x71   :  { %789 = vmatmul.f32.vlgmr.msra.gmra.mxu0 %v5594_v17 }
  0x72   :  { %1094 = vmatpush.msra.mxu0 %v5804_v1  ;;  %1192 = vmatpush.msra.mxu2 %v1145_v5 }
  0x73   :  { %1232 = vmatpush.msra.mxu3 %v5820_v8 }
  0x74   :  { %1096 = vmatpush.msra.mxu0 %v5812_v3  ;;  %1195 = vmatpush.msra.mxu2 %v1151_v11 }
  0x75   :  { %920 = vmatmul.f32.gmra.mxu3 %v5599_v19 }
  0x76   :  { %822 = vmatmul.f32.vlgmr.msra.gmra.mxu1 %v5594_v17  ;;  %1098 = vmatpush.msra.mxu0 %v5820_v8 }
  0x77   :  { %867 = vmatmul.f32.gmra.mxu2 %v5670_v60  ;;  %1234 = vmatpush.msra.mxu3 %v5828_v12 }
  0x78   :  { %1143 = vmatpush.msra.mxu1 %v1142_v15  ;;  %1100 = vmatpush.msra.mxu0 %v5828_v12 }
  0x79   :  { %793 = vmatmul.f32.gmra.mxu0 %v5599_v19  ;;  %1198 = vmatpush.msra.mxu2 %v5834_v16 }
  0x7a   :  { %1149 = vmatpush.msra.mxu1 %v1148_v21 }
  0x7c   :  { %1155 = vmatpush.msra.mxu1 %v1154_v25 }
  0x7d   :  { %924 = vmatmul.f32.gmra.mxu3 %v5626_v34 }
  0x7e   :  { %826 = vmatmul.f32.gmra.mxu1 %v5599_v19 }
  0x7f   :  { %875 = vmatmul.f32.gmra.mxu2 %v5684_v7  ;;  %1161 = vmatpush.msra.mxu1 %v1160_v28 }
  0x81   :  { %797 = vmatmul.f32.gmra.mxu0 %v5626_v34 }
  0x85   :  { %1069 = vmatmul.f32.vlgmr.msrb.gmra.mxu3 %v5594_v17 }
  0x86   :  { %830 = vmatmul.f32.gmra.mxu1 %v5626_v34  ;;  %1390 = vmatpush.msrb.mxu3 %v1389_v48  ;;  %v65_v48 = vld [vmem:[%s9382_s3 + $0x70] sm:$0xff] }
  0x87   :  { %1036 = vmatmul.f32.vlgmr.msrb.gmra.mxu2 %v5594_v17 }
  0x88   :  { %1341 = vmatpush.msrb.mxu2 %v5849_v31  ;;  %1396 = vmatpush.msrb.mxu3 %v1395_v53 }
  0x89   :  { %954 = vmatmul.f32.vlgmr.msrb.gmra.mxu0 %v5606_v22 }
  0x8a   :  { %1269 = vmatpush.msrb.mxu0 %v1140_v9  ;;  %1343 = vmatpush.msrb.mxu2 %v5858_v36 }
  0x8b   :  { %1402 = vmatpush.msrb.mxu3 %v1401_v57 }
  0x8c   :  { %1273 = vmatpush.msrb.mxu0 %v1146_v14  ;;  %1345 = vmatpush.msrb.mxu2 %v5869_v40 }
  0x8d   :  { %1073 = vmatmul.f32.gmra.mxu3 %v5599_v19 }
  0x8e   :  { %v119_v47 = vpop.f32.mrf.mxu0  ;;  %991 = vmatmul.f32.vlgmr.msrb.gmra.mxu1 %v5619_v29  ;;  %1277 = vmatpush.msrb.mxu0 %v1152_v20 }
  0x8f   :  { %1308 = vmatpush.msrb.mxu1 %v5804_v1  ;;  %1040 = vmatmul.f32.gmra.mxu2 %v5599_v19 }
  0x90   :  { %v251_v56 = vpop.f32.mrf.mxu3  ;;  %1347 = vmatpush.msrb.mxu2 %v5880_v46  ;;  %1281 = vmatpush.msrb.mxu0 %v1158_v24 }
  0x91   :  { %959 = vmatmul.f32.gmra.mxu0 %v5612_v27  ;;  %1310 = vmatpush.msrb.mxu1 %v5812_v3 }
  0x92   :  { %v214_v62 = vpop.f32.mrf.mxu2  ;;  %1408 = vmatpush.msrb.mxu3 %v1407_v0 }
  0x93   :  { %v176_v61 = vpop.f32.mrf.mxu1  ;;  %1312 = vmatpush.msrb.mxu1 %v5820_v8 }
  0x94   :  { %v177_v63 = vadd.f32 %v176_v61, %v119_v47 }
  0x95   :  { %1077 = vmatmul.f32.gmra.mxu3 %v5626_v34  ;;  %1314 = vmatpush.msrb.mxu1 %v5828_v12 }
  0x96   :  { %v215_v1 = vadd.f32 %v214_v62, %v177_v63  ;;  %v127_v2 = vpop.f32.mrf.mxu0  ;;  %997 = vmatmul.f32.gmra.mxu1 %v5624_v33 }
  0x97   :  { %1044 = vmatmul.f32.gmra.mxu2 %v5626_v34 }
  0x98   :  { %v5903_v6 = vadd.f32 %v251_v56, %v215_v1  ;;  %v257_v3 = vpop.f32.mrf.mxu3  ;;  %v57_v56 = vld [vmem:[%s9382_s3 + $0x30] sm:$0xff] }
  0x99   :  { %964 = vmatmul.f32.gmra.mxu0 %v5659_v50  ;;  %v5992_v61 = vand.u32 4294901760, %v57_v56 }
  0x9a   :  { %v219_v5 = vpop.f32.mrf.mxu2 }
  0x9b   :  { %v180_v4 = vpop.f32.mrf.mxu1 }
  0x9c   :  { %v181_v9 = vadd.f32 %v180_v4, %v127_v2 }
  0x9d   :  { %1238 = vmatmul.f32.vlgmr.msra.gmra.mxu3 %v5619_v29 }
  0x9e   :  { %v220_v8 = vadd.f32 %v219_v5, %v181_v9  ;;  %v135_v10 = vpop.f32.mrf.mxu0  ;;  %1003 = vmatmul.f32.gmra.mxu1 %v5667_v59  ;;  %1555 = vmatpush.msra.mxu3 %v5849_v31  ;;  %v82_v5 = vld [vmem:[%s9382_s3 + $0xf8] sm:$0xff] }
  0x9f   :  { %1201 = vmatmul.f32.vlgmr.msra.gmra.mxu2 %v5606_v22 }
  0xa0   :  { %v5910_v11 = vadd.f32 %v257_v3, %v220_v8  ;;  %v263_v12 = vpop.f32.mrf.mxu3  ;;  %1516 = vmatpush.msra.mxu2 %v1387_v38  ;;  %1557 = vmatpush.msra.mxu3 %v5858_v36  ;;  %v6002_v3 = vsub.f32 %v57_v56, %v5992_v61  ;;  %v6013_v8 = vand.u32 4294901760, %v82_v5 }
  0xa1   :  { %1106 = vmatmul.f32.vlgmr.msra.gmra.mxu0 %v5647_v45 }
  0xa2   :  { %1436 = vmatpush.msra.mxu0 %v5856_v35  ;;  %v224_v14 = vpop.f32.mrf.mxu2  ;;  %1520 = vmatpush.msra.mxu2 %v1393_v43  ;;  %v73_v43 = vld [vmem:[%s9382_s3 + $0xb0] sm:$0xff] }
  0xa3   :  { %v184_v13 = vpop.f32.mrf.mxu1  ;;  %1559 = vmatpush.msra.mxu3 %v5869_v40 }
  0xa4   :  { %v185_v15 = vadd.f32 %v184_v13, %v135_v10  ;;  %1439 = vmatpush.msra.mxu0 %v5867_v39  ;;  %1524 = vmatpush.msra.mxu2 %v1399_v51  ;;  %v1652_v13 = vand.u32 4294901760, %v6002_v3 }
  0xa5   :  { %1244 = vmatmul.f32.gmra.mxu3 %v5624_v33 }
  0xa6   :  { %v225_v16 = vadd.f32 %v224_v14, %v185_v15  ;;  %v5917_v18 = vpop.f32.mrf.mxu0  ;;  %1163 = vmatmul.f32.vlgmr.msra.gmra.mxu1 %v5594_v17  ;;  %1442 = vmatpush.msra.mxu0 %v5878_v44  ;;  %v74_v14 = vld [vmem:[%s9382_s3 + $0xb8] sm:$0xff] }
  0xa7   :  { %1561 = vmatpush.msra.mxu3 %v5880_v46  ;;  %1206 = vmatmul.f32.gmra.mxu2 %v5612_v27 }
  0xa8   :  { %v5924_v20 = vadd.f32 %v263_v12, %v225_v16  ;;  %1475 = vmatpush.msra.mxu1 %v5849_v31  ;;  %v423_v21 = vpop.f32.mrf.mxu3  ;;  %1528 = vmatpush.msra.mxu2 %v1405_v55 }
  0xa9   :  { %1114 = vmatmul.f32.gmra.mxu0 %v5670_v60 }
  0xaa   :  { %1445 = vmatpush.msra.mxu0 %v5888_v52  ;;  %1477 = vmatpush.msra.mxu1 %v5858_v36  ;;  %v366_v24 = vpop.f32.mrf.mxu2  ;;  %v5980_v52 = vand.u32 4294901760, %v65_v48 }
  0xab   :  { %v5930_v23 = vpop.f32.mrf.mxu1  ;;  %v424_v25 = vadd.f32 %v423_v21, %v366_v24  ;;  %v6028_v21 = vsub.f32 %v82_v5, %v6013_v8  ;;  %v6030_v24 = vand.u32 4294901760, %v74_v14 }
  0xac   :  { %1479 = vmatpush.msra.mxu1 %v5869_v40  ;;  %v81_v40 = vld [vmem:[%s9382_s3 + $0xf0] sm:$0xff]  ;;  %v5990_v58 = vsub.f32 %v65_v48, %v5980_v52 }
  0xad   :  { %1250 = vmatmul.f32.gmra.mxu3 %v5667_v59  ;;  %v5959_v42 = vand.u32 4294901760, %v81_v40 }
  0xae   :  { %v5933_v26 = vpop.f32.mrf.mxu0  ;;  %1167 = vmatmul.f32.gmra.mxu1 %v5599_v19  ;;  %v1646_v4 = vand.u32 4294901760, %v5990_v58 }
  0xaf   :  { %1481 = vmatpush.msra.mxu1 %v5880_v46  ;;  %1211 = vmatmul.f32.gmra.mxu2 %v5659_v50  ;;  %v5967_v44 = vsub.f32 %v81_v40, %v5959_v42  ;;  %v5969_v46 = vand.u32 4294901760, %v73_v43 }
  0xb0   :  { %v427_v28 = vpop.f32.mrf.mxu3  ;;  %v1647_v12 = vsub.f32 %v5990_v58, %v1646_v4 }
  0xb1   :  { %1122 = vmatmul.f32.gmra.mxu0 %v5684_v7  ;;  %v5978_v51 = vsub.f32 %v73_v43, %v5969_v46  ;;  %v1634_v53 = vand.u32 4294901760, %v5967_v44 }
  0xb2   :  { %v374_v31 = vpop.f32.mrf.mxu2 }
  0xb3   :  { %v5940_v30 = vpop.f32.mrf.mxu1  ;;  %v5942_v32 = vadd.f32 %v427_v28, %v374_v31  ;;  %v1635_v62 = vsub.f32 %v5967_v44, %v1634_v53  ;;  %v1640_v63 = vand.u32 4294901760, %v5978_v51  ;;  %v1648_v28 = vand.u32 4294901760, %v1647_v12 }
  0xb4   :  { %v1653_v31 = vsub.f32 %v6002_v3, %v1652_v13 }
  0xb5   :  { %1410 = vmatmul.f32.vlgmr.msrb.gmra.mxu3 %v5594_v17  ;;  %v1636_v2 = vand.u32 4294901760, %v1635_v62  ;;  %v1641_v9 = vsub.f32 %v5978_v51, %v1640_v63 }
  0xb6   :  { %v5944_v35 = vpop.f32.mrf.mxu0  ;;  %1171 = vmatmul.f32.gmra.mxu1 %v5626_v34  ;;  %1722 = vmatpush.msrb.mxu3 %v5959_v42  ;;  %v1654_v48 = vand.u32 4294901760, %v1653_v31 }
  0xb7   :  { %1353 = vmatmul.f32.vlgmr.msrb.gmra.mxu2 %v5647_v45  ;;  %v1642_v16 = vand.u32 4294901760, %v1641_v9 }
  0xb8   :  { %v431_v36 = vpop.f32.mrf.mxu3  ;;  %1683 = vmatpush.msrb.mxu2 %v5967_v44  ;;  %1724 = vmatpush.msrb.mxu3 %v5969_v46 }
  0xb9   :  { %1283 = vmatmul.f32.vlgmr.msrb.gmra.mxu0 %v5594_v17 }
  0xba   :  { %v382_v38 = vpop.f32.mrf.mxu2  ;;  %1588 = vmatpush.msrb.mxu0 %v5959_v42  ;;  %1686 = vmatpush.msrb.mxu2 %v5978_v51 }
  0xbb   :  { %v5950_v37 = vpop.f32.mrf.mxu1  ;;  %v5952_v39 = vadd.f32 %v431_v36, %v382_v38  ;;  %1726 = vmatpush.msrb.mxu3 %v5980_v52  ;;  %v66_v36 = vld [vmem:[%s9382_s3 + $0x78] sm:$0xff] }
  0xbc   :  { %1590 = vmatpush.msrb.mxu0 %v5969_v46  ;;  %1689 = vmatpush.msrb.mxu2 %v5990_v58  ;;  %v6045_v43 = vand.u32 4294901760, %v66_v36 }
  0xbd   :  { %1414 = vmatmul.f32.gmra.mxu3 %v5599_v19 }
  0xbe   :  { %v461_v41 = vpop.f32.mrf.mxu0  ;;  %1316 = vmatmul.f32.vlgmr.msrb.gmra.mxu1 %v5594_v17  ;;  %1592 = vmatpush.msrb.mxu0 %v5980_v52  ;;  %v6055_v56 = vsub.f32 %v66_v36, %v6045_v43 }
  0xbf   :  { %1361 = vmatmul.f32.gmra.mxu2 %v5670_v60  ;;  %v462_v49 = vadd.f32 %v461_v41, %v424_v25  ;;  %1728 = vmatpush.msrb.mxu3 %v5992_v61  ;;  %v1881_v41 = vand.u32 4294901760, %v6028_v21 }
  0xc0   :  { %v576_v47 = vpop.f32.mrf.mxu3  ;;  %1637 = vmatpush.msrb.mxu1 %v1636_v2  ;;  %1594 = vmatpush.msrb.mxu0 %v5992_v61  ;;  %v1893_v5 = vand.u32 4294901760, %v6055_v56 }
  0xc1   :  { %1287 = vmatmul.f32.gmra.mxu0 %v5599_v19  ;;  %1692 = vmatpush.msrb.mxu2 %v6002_v3 }
  0xc2   :  { %v543_v55 = vpop.f32.mrf.mxu2  ;;  %1643 = vmatpush.msrb.mxu1 %v1642_v16 }
  0xc3   :  { %v498_v54 = vpop.f32.mrf.mxu1 }
  0xc4   :  { %v499_v57 = vadd.f32 %v498_v54, %v462_v49  ;;  %v58_v49 = vld [vmem:[%s9382_s3 + $0x38] sm:$0xff]  ;;  %1649 = vmatpush.msrb.mxu1 %v1648_v28  ;;  %v1882_v54 = vsub.f32 %v6028_v21, %v1881_v41 }
  0xc5   :  { %1418 = vmatmul.f32.gmra.mxu3 %v5626_v34 }
  0xc6   :  { %v544_v0 = vadd.f32 %v543_v55, %v499_v57  ;;  %v466_v1 = vpop.f32.mrf.mxu0  ;;  %1320 = vmatmul.f32.gmra.mxu1 %v5599_v19  ;;  %v6057_v57 = vand.u32 4294901760, %v58_v49 }
  0xc7   :  { %1369 = vmatmul.f32.gmra.mxu2 %v5684_v7  ;;  %v467_v25 = vadd.f32 %v466_v1, %v5942_v32  ;;  %v6043_v32 = vsub.f32 %v74_v14, %v6030_v24  ;;  %1655 = vmatpush.msrb.mxu1 %v1654_v48  ;;  %v1883_v1 = vand.u32 4294901760, %v1882_v54 }
  0xc8   :  { %v6015_v10 = vadd.f32 %v576_v47, %v544_v0  ;;  %v580_v15 = vpop.f32.mrf.mxu3  ;;  %v6069_v12 = vsub.f32 %v58_v49, %v6057_v57 }
  0xc9   :  { %1291 = vmatmul.f32.gmra.mxu0 %v5626_v34  ;;  %v1887_v55 = vand.u32 4294901760, %v6043_v32 }
  0xca   :  { %9522 = vst [vmem:[#allocation5_spill] sm:$0xff] %v6015_v10  ;;  %v547_v40 = vpop.f32.mrf.mxu2 }
  0xcb   :  { %v504_v38 = vpop.f32.mrf.mxu1  ;;  %v1888_v2 = vsub.f32 %v6043_v32, %v1887_v55 }
  0xcc   :  { %v505_v47 = vadd.f32 %v504_v38, %v467_v25  ;;  %v1894_v25 = vsub.f32 %v6055_v56, %v1893_v5 }
  0xcd   :  { %1563 = vmatmul.f32.vlgmr.msra.gmra.mxu3 %v5594_v17  ;;  %v1889_v16 = vand.u32 4294901760, %v1888_v2 }
  0xce   :  { %v548_v62 = vadd.f32 %v547_v40, %v505_v47  ;;  %v471_v0 = vpop.f32.mrf.mxu0  ;;  %1324 = vmatmul.f32.gmra.mxu1 %v5626_v34  ;;  %1884 = vmatpush.msra.mxu3 %v1883_v1  ;;  %v1895_v38 = vand.u32 4294901760, %v1894_v25 }
  0xcf   :  { %1530 = vmatmul.f32.vlgmr.msra.gmra.mxu2 %v5594_v17  ;;  %v472_v28 = vadd.f32 %v471_v0, %v5952_v39 }
  0xd0   :  { %v6065_v9 = vadd.f32 %v580_v15, %v548_v62  ;;  %v584_v14 = vpop.f32.mrf.mxu3  ;;  %1835 = vmatpush.msra.mxu2 %v6013_v8  ;;  %v1899_v15 = vand.u32 4294901760, %v6069_v12  ;;  %1890 = vmatpush.msra.mxu3 %v1889_v16 }
  0xd1   :  { %1448 = vmatmul.f32.vlgmr.msra.gmra.mxu0 %v5606_v22 }
  0xd2   :  { %9523 = vst [vmem:[#allocation6_spill] sm:$0xff] %v6065_v9  ;;  %1763 = vmatpush.msra.mxu0 %v1634_v53  ;;  %v551_v36 = vpop.f32.mrf.mxu2  ;;  %1837 = vmatpush.msra.mxu2 %v6030_v24  ;;  %v1900_v39 = vsub.f32 %v6069_v12, %v1899_v15 }
  0xd3   :  { %v510_v31 = vpop.f32.mrf.mxu1  ;;  %1896 = vmatpush.msra.mxu3 %v1895_v38 }
  0xd4   :  { %v511_v40 = vadd.f32 %v510_v31, %v472_v28  ;;  %1767 = vmatpush.msra.mxu0 %v1640_v63  ;;  %v1901_v47 = vand.u32 4294901760, %v1900_v39  ;;  %1839 = vmatpush.msra.mxu2 %v6045_v43  ;;  %v2104_v31 = vld [vmem:[%s9383_s4 + $0x58] sm:$0xff] }
  0xd5   :  { %1567 = vmatmul.f32.gmra.mxu3 %v5599_v19  ;;  %v6209_v39 = vand.u32 4294901760, %v2104_v31 }
  0xd6   :  { %v552_v44 = vadd.f32 %v551_v36, %v511_v40  ;;  %v613_v53 = vpop.f32.mrf.mxu0  ;;  %1485 = vmatmul.f32.vlgmr.msra.gmra.mxu1 %v5619_v29  ;;  %1771 = vmatpush.msra.mxu0 %v1646_v4 }
  0xd7   :  { %1534 = vmatmul.f32.gmra.mxu2 %v5599_v19  ;;  %1902 = vmatpush.msra.mxu3 %v1901_v47 }
  0xd8   :  { %v6091_v51 = vadd.f32 %v584_v14, %v552_v44  ;;  %v745_v63 = vpop.f32.mrf.mxu3  ;;  %1802 = vmatpush.msra.mxu1 %v5959_v42  ;;  %1775 = vmatpush.msra.mxu0 %v1652_v13  ;;  %v2103_v44 = vld [vmem:[%s9383_s4 + $0x50] sm:$0xff] }
  0xd9   :  { %1453 = vmatmul.f32.gmra.mxu0 %v5612_v27  ;;  %1841 = vmatpush.msra.mxu2 %v6057_v57 }
  0xda   :  { %9524 = vst [vmem:[#allocation7_spill] sm:$0xff] %v6091_v51  ;;  %v708_v58 = vpop.f32.mrf.mxu2  ;;  %1804 = vmatpush.msra.mxu1 %v5969_v46 }
  0xdb   :  { %v670_v48 = vpop.f32.mrf.mxu1 }
  0xdc   :  { %v671_v4 = vadd.f32 %v670_v48, %v613_v53  ;;  %1806 = vmatpush.msra.mxu1 %v5980_v52  ;;  %v2102_v48 = vld [vmem:[%s9383_s4 + $0x48] sm:$0xff] }
  0xdd   :  { %1571 = vmatmul.f32.gmra.mxu3 %v5626_v34 }
  0xde   :  { %v709_v49 = vadd.f32 %v708_v58, %v671_v4  ;;  %v6101_v54 = vpop.f32.mrf.mxu0  ;;  %1491 = vmatmul.f32.gmra.mxu1 %v5624_v33  ;;  %v6230_v4 = vand.u32 4294901760, %v2103_v44 }
  0xdf   :  { %9525 = vst [vmem:[#allocation8_spill] sm:$0xff] %v6101_v54  ;;  %1808 = vmatpush.msra.mxu1 %v5992_v61  ;;  %1538 = vmatmul.f32.gmra.mxu2 %v5626_v34 }
  0xe0   :  { %v6107_v42 = vadd.f32 %v745_v63, %v709_v49  ;;  %v6110_v3 = vpop.f32.mrf.mxu3  ;;  %v2099_v49 = vld [vmem:[%s9383_s4 + $0x30] sm:$0xff] }
  0xe1   :  { %1458 = vmatmul.f32.gmra.mxu0 %v5659_v50  ;;  %9527 = vst [vmem:[#allocation10_spill] sm:$0xff] %v6110_v3 }
  0xe2   :  { %9526 = vst [vmem:[#allocation9_spill] sm:$0xff] %v6107_v42  ;;  %v6114_v52 = vpop.f32.mrf.mxu2  ;;  %v2093_v42 = vld [vmem:[%s9383_s4] sm:$0xff] }
  0xe3   :  { %v6112_v46 = vpop.f32.mrf.mxu1  ;;  %9529 = vst [vmem:[#allocation12_spill] sm:$0xff] %v6114_v52 }
  0xe4   :  { %9528 = vst [vmem:[#allocation11_spill] sm:$0xff] %v6112_v46  ;;  %v2094_v46 = vld [vmem:[%s9383_s4 + $0x8] sm:$0xff] }
  0xe5   :  { %1732 = vmatmul.f32.vlgmr.msrb.gmra.mxu3 %v5619_v29  ;;  %v6417_v51 = vand.u32 4294901760, %v2094_v46 }
  0xe6   :  { %v6116_v13 = vpop.f32.mrf.mxu0  ;;  %1497 = vmatmul.f32.gmra.mxu1 %v5667_v59  ;;  %2049 = vmatpush.msrb.mxu3 %v6013_v8 }
  0xe7   :  { %9530 = vst [vmem:[#allocation13_spill] sm:$0xff] %v6116_v13  ;;  %1695 = vmatmul.f32.vlgmr.msrb.gmra.mxu2 %v5606_v22 }
  0xe8   :  { %v6123_v61 = vpop.f32.mrf.mxu3  ;;  %2010 = vmatpush.msrb.mxu2 %v1881_v41  ;;  %2051 = vmatpush.msrb.mxu3 %v6030_v24  ;;  %v2108_v41 = vld [vmem:[%s9383_s4 + $0x78] sm:$0xff]  ;;  %9574 = vst [vmem:[#allocation49_spill] sm:$0xff] %v6417_v51 }
  0xe9   :  { %1600 = vmatmul.f32.vlgmr.msrb.gmra.mxu0 %v5647_v45  ;;  %9531 = vst [vmem:[#allocation14_spill] sm:$0xff] %v6123_v61 }
  0xea   :  { %1930 = vmatpush.msrb.mxu0 %v6028_v21  ;;  %v6131_v0 = vpop.f32.mrf.mxu2  ;;  %2014 = vmatpush.msrb.mxu2 %v1887_v55 }
  0xeb   :  { %v6129_v62 = vpop.f32.mrf.mxu1  ;;  %9533 = vst [vmem:[#allocation16_spill] sm:$0xff] %v6131_v0  ;;  %2053 = vmatpush.msrb.mxu3 %v6045_v43  ;;  %v6306_v0 = vand.u32 4294901760, %v2099_v49 }
  0xec   :  { %9532 = vst [vmem:[#allocation15_spill] sm:$0xff] %v6129_v62  ;;  %1933 = vmatpush.msrb.mxu0 %v6043_v32  ;;  %2018 = vmatpush.msrb.mxu2 %v1893_v5  ;;  %v2123_v62 = vld [vmem:[%s9383_s4 + $0xf0] sm:$0xff] }
  0xed   :  { %1738 = vmatmul.f32.gmra.mxu3 %v5624_v33  ;;  %9556 = vst [vmem:[#allocation36_spill] sm:$0xff] %v6306_v0 }
  0xee   :  { %v6139_v1 = vpop.f32.mrf.mxu0  ;;  %1657 = vmatmul.f32.vlgmr.msrb.gmra.mxu1 %v5594_v17  ;;  %1936 = vmatpush.msrb.mxu0 %v6055_v56  ;;  %v2107_v56 = vld [vmem:[%s9383_s4 + $0x70] sm:$0xff] }
  0xef   :  { %9534 = vst [vmem:[#allocation17_spill] sm:$0xff] %v6139_v1  ;;  %2055 = vmatpush.msrb.mxu3 %v6057_v57  ;;  %1700 = vmatmul.f32.gmra.mxu2 %v5612_v27  ;;  %v6174_v5 = vand.u32 4294901760, %v2107_v56 }
  0xf0   :  { %1969 = vmatpush.msrb.mxu1 %v6013_v8  ;;  %v6148_v21 = vpop.f32.mrf.mxu3  ;;  %2022 = vmatpush.msrb.mxu2 %v1899_v15  ;;  %v6161_v8 = vand.u32 4294901760, %v2108_v41 }
  0xf1   :  { %1608 = vmatmul.f32.gmra.mxu0 %v5670_v60  ;;  %9535 = vst [vmem:[#allocation18_spill] sm:$0xff] %v6148_v21 }
  0xf2   :  { %1939 = vmatpush.msrb.mxu0 %v6069_v12  ;;  %1971 = vmatpush.msrb.mxu1 %v6030_v24  ;;  %v6159_v55 = vpop.f32.mrf.mxu2  ;;  %v2106_v24 = vld [vmem:[%s9383_s4 + $0x68] sm:$0xff]  ;;  %v6179_v12 = vsub.f32 %v2108_v41, %v6161_v8  ;;  %v6239_v41 = vsub.f32 %v2104_v31, %v6209_v39 }
  0xf3   :  { %v6157_v32 = vpop.f32.mrf.mxu1  ;;  %9537 = vst [vmem:[#allocation20_spill] sm:$0xff] %v6159_v55  ;;  %v6187_v16 = vand.u32 4294901760, %v2106_v24 }
  0xf4   :  { %9536 = vst [vmem:[#allocation19_spill] sm:$0xff] %v6157_v32  ;;  %1973 = vmatpush.msrb.mxu1 %v6045_v43  ;;  %v2105_v43 = vld [vmem:[%s9383_s4 + $0x60] sm:$0xff]  ;;  %v9385_v36 = vand.u32 4294901760, %v6179_v12 }
  0xf5   :  { %1744 = vmatmul.f32.gmra.mxu3 %v5667_v59  ;;  %v6196_v15 = vand.u32 4294901760, %v2105_v43  ;;  %v6203_v38 = vsub.f32 %v2106_v24, %v6187_v16 }
  0xf6   :  { %v6167_v2 = vpop.f32.mrf.mxu0  ;;  %1661 = vmatmul.f32.gmra.mxu1 %v5599_v19  ;;  %v2281_v63 = vsub.f32 %v6179_v12, %v9385_v36  ;;  %v6249_v36 = vand.u32 4294901760, %v2102_v48 }
  0xf7   :  { %9538 = vst [vmem:[#allocation21_spill] sm:$0xff] %v6167_v2  ;;  %1975 = vmatpush.msrb.mxu1 %v6057_v57  ;;  %1705 = vmatmul.f32.gmra.mxu2 %v5659_v50  ;;  %v6194_v57 = vsub.f32 %v2107_v56, %v6174_v5  ;;  %v6216_v53 = vsub.f32 %v2105_v43, %v6196_v15 }
  0xf8   :  { %v6185_v14 = vpop.f32.mrf.mxu3  ;;  %9546 = vst [vmem:[#allocation29_spill] sm:$0xff] %v6249_v36  ;;  %v2282_v31 = vand.u32 4294901760, %v2281_v63  ;;  %v6277_v55 = vsub.f32 %v2102_v48, %v6249_v36 }
  0xf9   :  { %1616 = vmatmul.f32.gmra.mxu0 %v5684_v7  ;;  %9539 = vst [vmem:[#allocation22_spill] sm:$0xff] %v6185_v14  ;;  %v9386_v47 = vand.u32 4294901760, %v6194_v57  ;;  %v9548_v14 = vand.u32 4294901760, %v6203_v38 }
  0xfa   :  { %v6191_v28 = vpop.f32.mrf.mxu2 }
  0xfb   :  { %v6189_v25 = vpop.f32.mrf.mxu1  ;;  %9541 = vst [vmem:[#allocation24_spill] sm:$0xff] %v6191_v28  ;;  %v2287_v43 = vsub.f32 %v6194_v57, %v9386_v47  ;;  %v6261_v28 = vsub.f32 %v2103_v44, %v6230_v4  ;;  %v2100_v47 = vld [vmem:[%s9383_s4 + $0x38] sm:$0xff]  ;;  %v9550_v44 = vand.u32 4294901760, %v6216_v53 }
  0xfc   :  { %9540 = vst [vmem:[#allocation23_spill] sm:$0xff] %v6189_v25  ;;  %v6336_v25 = vsub.f32 %v2099_v49, %v6306_v0 }
  0xfd   :  { %1904 = vmatmul.f32.vlgmr.msra.gmra.mxu3 %v5594_v17  ;;  %v2299_v21 = vsub.f32 %v6216_v53, %v9550_v44 }
  0xfe   :  { %v6205_v40 = vpop.f32.mrf.mxu0  ;;  %1665 = vmatmul.f32.gmra.mxu1 %v5626_v34  ;;  %2452 = vmatpush.msra.mxu3 %v6161_v8 }
  0xff   :  { %9542 = vst [vmem:[#allocation25_spill] sm:$0xff] %v6205_v40  ;;  %1847 = vmatmul.f32.vlgmr.msra.gmra.mxu2 %v5647_v45  ;;  %v2101_v45 = vld [vmem:[%s9383_s4 + $0x40] sm:$0xff]  ;;  %v2098_v40 = vld [vmem:[%s9383_s4 + $0x28] sm:$0xff]  ;;  %v2300_v61 = vand.u32 4294901760, %v2299_v21  ;;  %v9557_v21 = vand.u32 4294901760, %v6261_v28 }
 0x100   :  { %2389 = vmatpush.msra.mxu2 %v6179_v12  ;;  %v6228_v58 = vpop.f32.mrf.mxu3  ;;  %2454 = vmatpush.msra.mxu3 %v6174_v5 }
 0x101   :  { %1777 = vmatmul.f32.vlgmr.msra.gmra.mxu0 %v5594_v17  ;;  %9543 = vst [vmem:[#allocation26_spill] sm:$0xff] %v6228_v58  ;;  %v6254_v58 = vand.u32 4294901760, %v2101_v45 }
 0x102   :  { %2222 = vmatpush.msra.mxu0 %v6161_v8  ;;  %2392 = vmatpush.msra.mxu2 %v6194_v57  ;;  %v6244_v24 = vpop.f32.mrf.mxu2 }
 0x103   :  { %v6242_v56 = vpop.f32.mrf.mxu1  ;;  %9545 = vst [vmem:[#allocation28_spill] sm:$0xff] %v6244_v24  ;;  %2456 = vmatpush.msra.mxu3 %v6187_v16  ;;  %v2293_v24 = vsub.f32 %v6203_v38, %v9548_v14  ;;  %v2288_v14 = vand.u32 4294901760, %v2287_v43 }
 0x104   :  { %9544 = vst [vmem:[#allocation27_spill] sm:$0xff] %v6242_v56  ;;  %2224 = vmatpush.msra.mxu0 %v6174_v5  ;;  %2395 = vmatpush.msra.mxu2 %v6203_v38  ;;  %v6281_v56 = vsub.f32 %v2101_v45, %v6254_v58  ;;  %v9553_v45 = vand.u32 4294901760, %v6239_v41 }
 0x105   :  { %9547 = vst [vmem:[#allocation30_spill] sm:$0xff] %v6254_v58  ;;  %2458 = vmatpush.msra.mxu3 %v6196_v15  ;;  %v2294_v43 = vand.u32 4294901760, %v2293_v24 }
 0x106   :  { %2226 = vmatpush.msra.mxu0 %v6187_v16  ;;  %v6268_v63 = vpop.f32.mrf.mxu0  ;;  %1810 = vmatmul.f32.vlgmr.msra.gmra.mxu1 %v5594_v17  ;;  %v2305_v44 = vsub.f32 %v6239_v41, %v9553_v45 }
 0x107   :  { %9549 = vst [vmem:[#allocation31_spill] sm:$0xff] %v6268_v63  ;;  %1908 = vmatmul.f32.gmra.mxu3 %v5599_v19  ;;  %2283 = vmatpush.msra.mxu1 %v2282_v31  ;;  %v6283_v63 = vand.u32 4294901760, %v2100_v47 }
 0x108   :  { %2228 = vmatpush.msra.mxu0 %v6196_v15  ;;  %2398 = vmatpush.msra.mxu2 %v6216_v53  ;;  %v6293_v31 = vpop.f32.mrf.mxu3 }
 0x109   :  { %9551 = vst [vmem:[#allocation32_spill] sm:$0xff] %v6283_v63  ;;  %2460 = vmatpush.msra.mxu3 %v6209_v39  ;;  %1781 = vmatmul.f32.gmra.mxu0 %v5599_v19  ;;  %v6312_v45 = vsub.f32 %v2100_v47, %v6283_v63 }
 0x10a   :  { %1855 = vmatmul.f32.gmra.mxu2 %v5670_v60  ;;  %9552 = vst [vmem:[#allocation33_spill] sm:$0xff] %v6293_v31  ;;  %2230 = vmatpush.msra.mxu0 %v6209_v39  ;;  %v6304_v48 = vpop.f32.mrf.mxu2  ;;  %v2311_v60 = vsub.f32 %v6261_v28, %v9557_v21  ;;  %v2306_v31 = vand.u32 4294901760, %v2305_v44  ;;  %v9562_v44 = vand.u32 4294901760, %v6281_v56 }
 0x10b   :  { %2289 = vmatpush.msra.mxu1 %v2288_v14  ;;  %v6302_v24 = vpop.f32.mrf.mxu1  ;;  %9555 = vst [vmem:[#allocation35_spill] sm:$0xff] %v6304_v48  ;;  %2401 = vmatpush.msra.mxu2 %v6239_v41  ;;  %v2097_v14 = vld [vmem:[%s9383_s4 + $0x20] sm:$0xff]  ;;  %v6322_v48 = vand.u32 4294901760, %v2098_v40 }
 0x10c   :  { %9554 = vst [vmem:[#allocation34_spill] sm:$0xff] %v6302_v24  ;;  %2462 = vmatpush.msra.mxu3 %v6230_v4  ;;  %2232 = vmatpush.msra.mxu0 %v6230_v4  ;;  %v2124_v24 = vld [vmem:[%s9383_s4 + $0xf8] sm:$0xff]  ;;  %v6338_v2 = vand.u32 4294901760, %v2097_v14  ;;  %v2312_v49 = vand.u32 4294901760, %v2311_v60 }
 0x10d   :  { %2295 = vmatpush.msra.mxu1 %v2294_v43  ;;  %9558 = vst [vmem:[#allocation37_spill] sm:$0xff] %v6322_v48  ;;  %2404 = vmatpush.msra.mxu2 %v6261_v28  ;;  %v9560_v43 = vand.u32 4294901760, %v6277_v55  ;;  %v6354_v13 = vand.u32 4294901760, %v2124_v24 }
 0x10e   :  { %2464 = vmatpush.msra.mxu3 %v6249_v36  ;;  %v6326_v47 = vpop.f32.mrf.mxu0  ;;  %2234 = vmatpush.msra.mxu0 %v6249_v36  ;;  %9561 = vst [vmem:[#allocation39_spill] sm:$0xff] %v6338_v2  ;;  %v6370_v52 = vsub.f32 %v2097_v14, %v6338_v2 }
 0x10f   :  { %9559 = vst [vmem:[#allocation38_spill] sm:$0xff] %v6326_v47  ;;  %2301 = vmatpush.msra.mxu1 %v2300_v61  ;;  %v2317_v21 = vsub.f32 %v6277_v55, %v9560_v43  ;;  %2407 = vmatpush.msra.mxu2 %v6277_v55  ;;  %v2323_v47 = vsub.f32 %v6281_v56, %v9562_v44  ;;  %v2096_v61 = vld [vmem:[%s9383_s4 + $0x18] sm:$0xff]  ;;  %v2095_v44 = vld [vmem:[%s9383_s4 + $0x10] sm:$0xff] }
 0x110   :  { %2466 = vmatpush.msra.mxu3 %v6254_v58  ;;  %1814 = vmatmul.f32.gmra.mxu1 %v5599_v19  ;;  %v6352_v43 = vsub.f32 %v2098_v40, %v6322_v48  ;;  %9566 = vst [vmem:[#allocation43_spill] sm:$0xff] %v6370_v52  ;;  %v6377_v54 = vpop.f32.mrf.mxu3  ;;  %v6383_v14 = vand.u32 4294901760, %v2095_v44 }
 0x111   :  { %1912 = vmatmul.f32.gmra.mxu3 %v5626_v34  ;;  %2236 = vmatpush.msra.mxu0 %v6254_v58  ;;  %v2318_v60 = vand.u32 4294901760, %v2317_v21  ;;  %9568 = vst [vmem:[#allocation45_spill] sm:$0xff] %v6377_v54  ;;  %v2324_v32 = vand.u32 4294901760, %v2323_v47  ;;  %v9569_v21 = vand.u32 4294901760, %v6312_v45  ;;  %v6392_v54 = vand.u32 4294901760, %v2123_v62  ;;  %v2122_v47 = vld [vmem:[%s9383_s4 + $0xe8] sm:$0xff] }
 0x112   :  { %9563 = vst [vmem:[#allocation40_spill] sm:$0xff] %v6352_v43  ;;  %2307 = vmatpush.msra.mxu1 %v2306_v31  ;;  %2410 = vmatpush.msra.mxu2 %v6281_v56  ;;  %v6367_v3 = vpop.f32.mrf.mxu2  ;;  %v6372_v31 = vand.u32 4294901760, %v2096_v61  ;;  %v6426_v9 = vsub.f32 %v2095_v44, %v6383_v14 }
 0x113   :  { %2468 = vmatpush.msra.mxu3 %v6283_v63  ;;  %v6365_v40 = vpop.f32.mrf.mxu1  ;;  %9565 = vst [vmem:[#allocation42_spill] sm:$0xff] %v6367_v3  ;;  %1785 = vmatmul.f32.gmra.mxu0 %v5626_v34  ;;  %v6430_v10 = vsub.f32 %v2123_v62, %v6392_v54 }
 0x114   :  { %9564 = vst [vmem:[#allocation41_spill] sm:$0xff] %v6365_v40  ;;  %1863 = vmatmul.f32.gmra.mxu2 %v5684_v7  ;;  %v2329_v40 = vsub.f32 %v6312_v45, %v9569_v21  ;;  %2238 = vmatpush.msra.mxu0 %v6283_v63  ;;  %v6390_v7 = vsub.f32 %v2124_v24, %v6354_v13  ;;  %v9573_v21 = vand.u32 4294901760, %v6336_v25 }
 0x115   :  { %9567 = vst [vmem:[#allocation44_spill] sm:$0xff] %v6372_v31  ;;  %2313 = vmatpush.msra.mxu1 %v2312_v49  ;;  %2413 = vmatpush.msra.mxu2 %v6312_v45  ;;  %v6406_v3 = vsub.f32 %v2096_v61, %v6372_v31  ;;  %v9575_v61 = vand.u32 4294901760, %v6352_v43 }
 0x116   :  { %9570 = vst [vmem:[#allocation46_spill] sm:$0xff] %v6383_v14  ;;  %2470 = vmatpush.msra.mxu3 %v6306_v0  ;;  %v6399_v49 = vpop.f32.mrf.mxu0  ;;  %2240 = vmatpush.msra.mxu0 %v6306_v0  ;;  %v2335_v24 = vsub.f32 %v6336_v25, %v9573_v21  ;;  %v6419_v21 = vand.u32 4294901760, %v2122_v47  ;;  %v9580_v0 = vand.u32 4294901760, %v6370_v52  ;;  %v9582_v58 = vand.u32 4294901760, %v6390_v7 }
 0x117   :  { %9571 = vst [vmem:[#allocation47_spill] sm:$0xff] %v6390_v7  ;;  %2319 = vmatpush.msra.mxu1 %v2318_v60  ;;  %2416 = vmatpush.msra.mxu2 %v6336_v25  ;;  %v2330_v60 = vand.u32 4294901760, %v2329_v40  ;;  %v2341_v1 = vsub.f32 %v6352_v43, %v9575_v61  ;;  %v2120_v40 = vld [vmem:[%s9383_s4 + $0xd8] sm:$0xff] }
 0x118   :  { %9572 = vst [vmem:[#allocation48_spill] sm:$0xff] %v6399_v49  ;;  %v2121_v49 = vld [vmem:[%s9383_s4 + $0xe0] sm:$0xff]  ;;  %2472 = vmatpush.msra.mxu3 %v6322_v48  ;;  %2242 = vmatpush.msra.mxu0 %v6322_v48  ;;  %v2336_v44 = vand.u32 4294901760, %v2335_v24  ;;  %v2347_v63 = vsub.f32 %v6370_v52, %v9580_v0  ;;  %v6456_v36 = vsub.f32 %v2122_v47, %v6419_v21  ;;  %v6458_v24 = vand.u32 4294901760, %v2120_v40 }
 0x119   :  { %2325 = vmatpush.msra.mxu1 %v2324_v32  ;;  %9576 = vst [vmem:[#allocation50_spill] sm:$0xff] %v6430_v10  ;;  %2419 = vmatpush.msra.mxu2 %v6352_v43  ;;  %v6437_v32 = vand.u32 4294901760, %v2093_v42  ;;  %v6439_v48 = vand.u32 4294901760, %v2121_v49  ;;  %v6453_v43 = vsub.f32 %v2094_v46, %v6417_v51  ;;  %v2342_v0 = vand.u32 4294901760, %v2341_v1 }
 0x11a   :  { %2474 = vmatpush.msra.mxu3 %v6338_v2  ;;  %1818 = vmatmul.f32.gmra.mxu1 %v5626_v34  ;;  %v6445_v62 = vpop.f32.mrf.mxu2  ;;  %9581 = vst [vmem:[#allocation54_spill] sm:$0xff] %v6456_v36  ;;  %v9586_v47 = vand.u32 4294901760, %v6406_v3 }
 0x11b   :  { %9577 = vst [vmem:[#allocation51_spill] sm:$0xff] %v6437_v32  ;;  %2057 = vmatmul.f32.vlgmr.msrb.gmra.mxu3 %v5594_v17  ;;  %v6443_v61 = vpop.f32.mrf.mxu1  ;;  %2244 = vmatpush.msra.mxu0 %v6338_v2  ;;  %v6480_v1 = vsub.f32 %v2121_v49, %v6439_v48 }
 0x11c   :  { %9578 = vst [vmem:[#allocation52_spill] sm:$0xff] %v6443_v61  ;;  %2331 = vmatpush.msra.mxu1 %v2330_v60  ;;  %2422 = vmatpush.msra.mxu2 %v6370_v52  ;;  %v2684_v60 = vsub.f32 %v6390_v7, %v9582_v58  ;;  %v6472_v61 = vpop.f32.mrf.mxu3  ;;  %v6477_v52 = vsub.f32 %v2093_v42, %v6437_v32  ;;  %v2348_v58 = vand.u32 4294901760, %v2347_v63  ;;  %v9588_v7 = vand.u32 4294901760, %v6426_v9 }
 0x11d   :  { %9579 = vst [vmem:[#allocation53_spill] sm:$0xff] %v6445_v62  ;;  %v2119_v62 = vld [vmem:[%s9383_s4 + $0xd0] sm:$0xff]  ;;  %2476 = vmatpush.msra.mxu3 %v6372_v31  ;;  %1942 = vmatmul.f32.vlgmr.msrb.gmra.mxu0 %v5606_v22  ;;  %v2353_v22 = vsub.f32 %v6406_v3, %v9586_v47  ;;  %v6496_v63 = vsub.f32 %v2120_v40, %v6458_v24  ;;  %v2117_v40 = vld [vmem:[%s9383_s4 + $0xc0] sm:$0xff] }
 0x11e   :  { %2024 = vmatmul.f32.vlgmr.msrb.gmra.mxu2 %v5594_v17  ;;  %9583 = vst [vmem:[#allocation55_spill] sm:$0xff] %v6472_v61  ;;  %v6474_v2 = vpop.f32.mrf.mxu0  ;;  %2246 = vmatpush.msra.mxu0 %v6372_v31  ;;  %v6486_v46 = vand.u32 4294901760, %v2119_v62  ;;  %v2118_v17 = vld [vmem:[%s9383_s4 + $0xc8] sm:$0xff]  ;;  %v2685_v47 = vand.u32 4294901760, %v2684_v60  ;;  %v2359_v42 = vsub.f32 %v6426_v9, %v9588_v7 }
 0x11f   :  { %9584 = vst [vmem:[#allocation56_spill] sm:$0xff] %v6474_v2  ;;  %2337 = vmatpush.msra.mxu1 %v2336_v44  ;;  %2425 = vmatpush.msra.mxu2 %v6406_v3  ;;  %v297_v44 = vadd.f32 %v5917_v18, %v5903_v6  ;;  %v9587_v2 = vand.u32 4294901760, %v6430_v10  ;;  %v2354_v7 = vand.u32 4294901760, %v2353_v22  ;;  %v2116_v6 = vld [vmem:[%s9383_s4 + $0xb8] sm:$0xff]  ;;  %v27_v18 = vld [vmem:[%s9381_s2] sm:$0xff]  ;;  %v9592_v22 = vand.u32 4294901760, %v6453_v43 }
 0x120   :  { %9585 = vst [vmem:[#allocation57_spill] sm:$0xff] %v6480_v1  ;;  %2478 = vmatpush.msra.mxu3 %v6383_v14  ;;  %2248 = vmatpush.msra.mxu0 %v6383_v14  ;;  %v9593_v14 = vand.u32 4294901760, %v6480_v1 }
 0x121   :  { %2343 = vmatpush.msra.mxu1 %v2342_v0  ;;  %v2690_v61 = vsub.f32 %v6430_v10, %v9587_v2  ;;  %2428 = vmatpush.msra.mxu2 %v6426_v9  ;;  %v6514_v0 = vand.u32 4294901760, %v2118_v17  ;;  %v330_v2 = vadd.f32 %v5930_v23, %v297_v44  ;;  %v6523_v10 = vsub.f32 %v2119_v62, %v6486_v46 }
 0x122   :  { %2480 = vmatpush.msra.mxu3 %v6417_v51  ;;  %2250 = vmatpush.msra.mxu0 %v6417_v51  ;;  %v6520_v49 = vpop.f32.mrf.mxu2  ;;  %v9591_v23 = vand.u32 4294901760, %v6456_v36  ;;  %v2365_v62 = vsub.f32 %v6453_v43, %v9592_v22  ;;  %v2360_v51 = vand.u32 4294901760, %v2359_v42 }
 0x123   :  { %2349 = vmatpush.msra.mxu1 %v2348_v58  ;;  %v6518_v60 = vpop.f32.mrf.mxu1  ;;  %9590 = vst [vmem:[#allocation59_spill] sm:$0xff] %v6520_v49  ;;  %2431 = vmatpush.msra.mxu2 %v6453_v43  ;;  %v6540_v49 = vand.u32 4294901760, %v2117_v40  ;;  %v2069_v42 = vmul.f32 %v330_v2, %v27_v18 }
 0x124   :  { %9589 = vst [vmem:[#allocation58_spill] sm:$0xff] %v6518_v60  ;;  %2482 = vmatpush.msra.mxu3 %v6437_v32  ;;  %v2696_v58 = vsub.f32 %v6456_v36, %v9591_v23  ;;  %1979 = vmatmul.f32.vlgmr.msrb.gmra.mxu1 %v5619_v29  ;;  %v2691_v60 = vand.u32 4294901760, %v2690_v61  ;;  %v2702_v23 = vsub.f32 %v6480_v1, %v9593_v14  ;;  %v9594_v36 = vand.u32 4294901760, %v6477_v52  ;;  %v2115_v61 = vld [vmem:[%s9383_s4 + $0xb0] sm:$0xff] }
 0x125   :  { %2061 = vmatmul.f32.gmra.mxu3 %v5599_v19  ;;  %2252 = vmatpush.msra.mxu0 %v6437_v32  ;;  %v6556_v29 = vand.u32 4294901760, %v2116_v6  ;;  %v9407_v14 = vand.u32 4294901760, %v6523_v10  ;;  %v9596_v1 = vand.u32 4294901760, %v6179_v12  ;;  %v9598_v32 = vand.u32 4294901760, %v6496_v63  ;;  %v2114_v12 = vld [vmem:[%s9383_s4 + $0xa8] sm:$0xff] }
 0x126   :  { %2686 = vmatpush.msrb.mxu3 %v2685_v47  ;;  %v2371_v22 = vsub.f32 %v6477_v52, %v9594_v36  ;;  %v6551_v44 = vpop.f32.mrf.mxu0  ;;  %v6554_v47 = vsub.f32 %v2118_v17, %v6514_v0  ;;  %2355 = vmatpush.msra.mxu1 %v2354_v7  ;;  %v6566_v36 = vpop.f32.mrf.mxu3  ;;  %v2697_v17 = vand.u32 4294901760, %v2696_v58  ;;  %v6572_v18 = vsub.f32 %v2117_v40, %v6540_v49 }
 0x127   :  { %9595 = vst [vmem:[#allocation60_spill] sm:$0xff] %v6551_v44  ;;  %2434 = vmatpush.msra.mxu2 %v6477_v52  ;;  %2505 = vmatpush.msrb.mxu0 %v9596_v1  ;;  %v2366_v44 = vand.u32 4294901760, %v2365_v62  ;;  %v2708_v31 = vsub.f32 %v6496_v63, %v9598_v32  ;;  %v6575_v2 = vand.u32 4294901760, %v2115_v61  ;;  %v2703_v1 = vand.u32 4294901760, %v2702_v23 }
 0x128   :  { %9597 = vst [vmem:[#allocation61_spill] sm:$0xff] %v6566_v36  ;;  %2692 = vmatpush.msrb.mxu3 %v2691_v60  ;;  %1947 = vmatmul.f32.gmra.mxu0 %v5612_v27  ;;  %v2372_v7 = vand.u32 4294901760, %v2371_v22  ;;  %v9409_v58 = vand.u32 4294901760, %v6554_v47  ;;  %v6583_v32 = vsub.f32 %v2116_v6, %v6556_v29  ;;  %v6585_v40 = vand.u32 4294901760, %v2069_v42 }
 0x129   :  { %2625 = vmatpush.msrb.mxu2 %v6354_v13  ;;  %2361 = vmatpush.msra.mxu1 %v2360_v51  ;;  %v9599_v27 = vand.u32 4294901760, %v6194_v57  ;;  %v2714_v60 = vsub.f32 %v6523_v10, %v9407_v14  ;;  %v2113_v51 = vld [vmem:[%s9383_s4 + $0xa0] sm:$0xff]  ;;  %v301_v6 = vadd.f32 %v5933_v26, %v5910_v11  ;;  %v2709_v62 = vand.u32 4294901760, %v2708_v31  ;;  %v2112_v11 = vld [vmem:[%s9383_s4 + $0x98] sm:$0xff] }
 0x12a   :  { %2028 = vmatmul.f32.gmra.mxu2 %v5599_v19  ;;  %2698 = vmatpush.msrb.mxu3 %v2697_v17  ;;  %v6600_v57 = vpop.f32.mrf.mxu2  ;;  %v9408_v23 = vand.u32 4294901760, %v6572_v18  ;;  %v6603_v22 = vand.u32 4294901760, %v2114_v12  ;;  %v6609_v14 = vsub.f32 %v2115_v61, %v6575_v2  ;;  %v2720_v31 = vsub.f32 %v6554_v47, %v9409_v58  ;;  %v35_v61 = vld [vmem:[%s9381_s2 + $0x40] sm:$0xff] }
 0x12b   :  { %2509 = vmatpush.msrb.mxu0 %v9599_v27  ;;  %2627 = vmatpush.msrb.mxu2 %v6392_v54  ;;  %v6593_v19 = vpop.f32.mrf.mxu1  ;;  %9601 = vst [vmem:[#allocation63_spill] sm:$0xff] %v6600_v57  ;;  %v9602_v27 = vand.u32 4294901760, %v6203_v38  ;;  %v334_v26 = vadd.f32 %v5940_v30, %v301_v6  ;;  %v9411_v38 = vand.u32 4294901760, %v6583_v32  ;;  %v6622_v17 = vsub.f32 %v2069_v42, %v6585_v40 }
 0x12c   :  { %9600 = vst [vmem:[#allocation62_spill] sm:$0xff] %v6593_v19  ;;  %2367 = vmatpush.msra.mxu1 %v2366_v44  ;;  %2704 = vmatpush.msrb.mxu3 %v2703_v1  ;;  %v6619_v44 = vand.u32 4294901760, %v2113_v51  ;;  %v2715_v30 = vand.u32 4294901760, %v2714_v60  ;;  %v2726_v1 = vsub.f32 %v6572_v18, %v9408_v23  ;;  %v6637_v42 = vsub.f32 %v2114_v12, %v6603_v22 }
 0x12d   :  { %2513 = vmatpush.msrb.mxu0 %v9602_v27  ;;  %2629 = vmatpush.msrb.mxu2 %v6419_v21  ;;  %v9603_v27 = vand.u32 4294901760, %v6216_v53  ;;  %v6639_v6 = vand.u32 4294901760, %v2112_v11  ;;  %v2111_v53 = vld [vmem:[%s9383_s4 + $0x90] sm:$0xff]  ;;  %v2077_v60 = vmul.f32 %v334_v26, %v35_v61  ;;  %v2732_v23 = vsub.f32 %v6583_v32, %v9411_v38 }
 0x12e   :  { %2373 = vmatpush.msra.mxu1 %v2372_v7  ;;  %2710 = vmatpush.msrb.mxu3 %v2709_v62  ;;  %v6634_v7 = vpop.f32.mrf.mxu0  ;;  %v9605_v62 = vand.u32 4294901760, %v6239_v41  ;;  %v6650_v12 = vpop.f32.mrf.mxu3  ;;  %v6656_v58 = vsub.f32 %v2113_v51, %v6619_v44  ;;  %v6660_v26 = vand.u32 4294901760, %v2111_v53  ;;  %v2727_v41 = vand.u32 4294901760, %v2726_v1 }
 0x12f   :  { %2517 = vmatpush.msrb.mxu0 %v9603_v27  ;;  %2631 = vmatpush.msrb.mxu2 %v6439_v48  ;;  %9604 = vst [vmem:[#allocation64_spill] sm:$0xff] %v6634_v7  ;;  %v2721_v27 = vand.u32 4294901760, %v2720_v31  ;;  %v9412_v31 = vand.u32 4294901760, %v6637_v42  ;;  %v6671_v61 = vsub.f32 %v2112_v11, %v6639_v6  ;;  %v6684_v1 = vand.u32 4294901760, %v2077_v60 }
 0x130   :  { %2580 = vmatpush.msrb.mxu1 %v6161_v8  ;;  %2065 = vmatmul.f32.gmra.mxu3 %v5626_v34  ;;  %v9410_v8 = vand.u32 4294901760, %v6609_v14  ;;  %9606 = vst [vmem:[#allocation65_spill] sm:$0xff] %v6650_v12  ;;  %v2733_v11 = vand.u32 4294901760, %v2732_v23 }
 0x131   :  { %1985 = vmatmul.f32.gmra.mxu1 %v5624_v33  ;;  %2521 = vmatpush.msrb.mxu0 %v9605_v62  ;;  %v2255_v33 = vand.u32 4294901760, %v6622_v17  ;;  %v9608_v62 = vand.u32 4294901760, %v6261_v28  ;;  %v2744_v23 = vsub.f32 %v6637_v42, %v9412_v31 }
 0x132   :  { %2582 = vmatpush.msrb.mxu1 %v6174_v5  ;;  %2633 = vmatpush.msrb.mxu2 %v6458_v24  ;;  %v2110_v5 = vld [vmem:[%s9383_s4 + $0x88] sm:$0xff] }
 0x133   :  { %2716 = vmatpush.msrb.mxu3 %v2715_v30  ;;  %1952 = vmatmul.f32.gmra.mxu0 %v5659_v50  ;;  %v6668_v51 = vpop.f32.mrf.mxu1  ;;  %v305_v30 = vadd.f32 %v5944_v35, %v5924_v20  ;;  %v2109_v50 = vld [vmem:[%s9383_s4 + $0x80] sm:$0xff]  ;;  %v6687_v20 = vpop.f32.mrf.mxu2  ;;  %v6690_v28 = vand.u32 4294901760, %v2110_v5 }
 0x134   :  { %2032 = vmatmul.f32.gmra.mxu2 %v5626_v34  ;;  %9607 = vst [vmem:[#allocation66_spill] sm:$0xff] %v6668_v51  ;;  %2525 = vmatpush.msrb.mxu0 %v9608_v62  ;;  %v2738_v34 = vsub.f32 %v6609_v14, %v9410_v8  ;;  %v9610_v62 = vand.u32 4294901760, %v6277_v55  ;;  %v6697_v8 = vsub.f32 %v2111_v53, %v6660_v26  ;;  %v6705_v35 = vand.u32 4294901760, %v2109_v50  ;;  %v43_v55 = vld [vmem:[%s9381_s2 + $0x80] sm:$0xff] }
 0x135   :  { %2584 = vmatpush.msrb.mxu1 %v6187_v16  ;;  %2635 = vmatpush.msrb.mxu2 %v6486_v46  ;;  %9609 = vst [vmem:[#allocation67_spill] sm:$0xff] %v6687_v20  ;;  %v2256_v16 = vsub.f32 %v6622_v17, %v2255_v33  ;;  %v338_v38 = vadd.f32 %v5950_v37, %v305_v30 }
 0x136   :  { %2722 = vmatpush.msrb.mxu3 %v2721_v27  ;;  %2529 = vmatpush.msrb.mxu0 %v9610_v62  ;;  %v2739_v37 = vand.u32 4294901760, %v2738_v34  ;;  %v2262_v53 = vsub.f32 %v2077_v60, %v6684_v1  ;;  %v6718_v62 = vpop.f32.mrf.mxu0  ;;  %v6721_v31 = vsub.f32 %v2110_v5, %v6690_v28  ;;  %v9614_v60 = vand.u32 4294901760, %v6312_v45  ;;  %v6728_v34 = vpop.f32.mrf.mxu3 }
 0x137   :  { %2586 = vmatpush.msrb.mxu1 %v6196_v15  ;;  %2637 = vmatpush.msrb.mxu2 %v6514_v0  ;;  %v9611_v15 = vand.u32 4294901760, %v6281_v56  ;;  %9613 = vst [vmem:[#allocation68_spill] sm:$0xff] %v6718_v62  ;;  %v2257_v27 = vand.u32 4294901760, %v2256_v16  ;;  %v2085_v56 = vmul.f32 %v338_v38, %v43_v55  ;;  %v6734_v16 = vsub.f32 %v2109_v50, %v6705_v35 }
 0x138   :  { %2728 = vmatpush.msrb.mxu3 %v2727_v41  ;;  %v9612_v41 = vand.u32 4294901760, %v6656_v58  ;;  %9615 = vst [vmem:[#allocation69_spill] sm:$0xff] %v6728_v34  ;;  %v2263_v45 = vand.u32 4294901760, %v2262_v53 }
 0x139   :  { %2533 = vmatpush.msrb.mxu0 %v9611_v15  ;;  %2588 = vmatpush.msrb.mxu1 %v6209_v39  ;;  %v9415_v39 = vand.u32 4294901760, %v6697_v8  ;;  %v9616_v15 = vand.u32 4294901760, %v6671_v61  ;;  %v6747_v55 = vand.u32 4294901760, %v2085_v56 }
 0x13a   :  { %2639 = vmatpush.msrb.mxu2 %v6540_v49  ;;  %2734 = vmatpush.msrb.mxu3 %v2733_v11  ;;  %v2750_v30 = vsub.f32 %v6656_v58, %v9612_v41  ;;  %v2745_v11 = vand.u32 4294901760, %v2744_v23  ;;  %v9619_v23 = vld [vmem:[#allocation29_spill] sm:$0xff]  ;;  %v9621_v41 = vld [vmem:[#allocation40_spill] sm:$0xff] }
 0x13b   :  { %1991 = vmatmul.f32.gmra.mxu1 %v5667_v59  ;;  %2486 = vmatmul.f32.vlgmr.msra.gmra.mxu3 %v2255_v33  ;;  %v2756_v5 = vsub.f32 %v6671_v61, %v9616_v15  ;;  %v6739_v38 = vpop.f32.mrf.mxu1  ;;  %v9618_v33 = vand.u32 4294901760, %v6336_v25  ;;  %v2762_v50 = vsub.f32 %v6697_v8, %v9415_v39  ;;  %v9623_v25 = vld [vmem:[#allocation30_spill] sm:$0xff] }
 0x13c   :  { %2537 = vmatpush.msrb.mxu0 %v9614_v60  ;;  %2590 = vmatpush.msrb.mxu1 %v6230_v4  ;;  %v2751_v59 = vand.u32 4294901760, %v2750_v30  ;;  %v9413_v4 = vand.u32 4294901760, %v6721_v31  ;;  %9617 = vst [vmem:[#allocation70_spill] sm:$0xff] %v6739_v38  ;;  %v9622_v30 = vand.u32 4294901760, %v9621_v41  ;;  %v2264_v60 = vsub.f32 %v2262_v53, %v2263_v45  ;;  %v9730_v38 = vld [vmem:[#allocation25_spill] sm:$0xff] }
 0x13d   :  { %2641 = vmatpush.msrb.mxu2 %v6556_v29  ;;  %2740 = vmatpush.msrb.mxu3 %v2739_v37  ;;  %v9414_v37 = vand.u32 4294901760, %v6734_v16  ;;  %v2763_v41 = vand.u32 4294901760, %v2762_v50  ;;  %v9630_v50 = vld [vmem:[#allocation36_spill] sm:$0xff] }
 0x13e   :  { %2258 = vmatmul.f32.vlgmr.msra.gmra.mxu0 %v2257_v27  ;;  %2437 = vmatmul.f32.vlgmr.msra.gmra.mxu2 %v6622_v17  ;;  %v2757_v17 = vand.u32 4294901760, %v2756_v5  ;;  %v6750_v27 = vpop.f32.mrf.mxu2  ;;  %v2768_v15 = vsub.f32 %v6721_v31, %v9413_v4  ;;  %v9624_v5 = vld [vmem:[#allocation43_spill] sm:$0xff]  ;;  %v9628_v4 = vld [vmem:[#allocation5_spill] sm:$0xff] }
 0x13f   :  { %2541 = vmatpush.msrb.mxu0 %v9618_v33  ;;  %2592 = vmatpush.msrb.mxu1 %v9619_v23  ;;  %9620 = vst [vmem:[#allocation29_spill] sm:$0xff] %v6750_v27  ;;  %v9625_v33 = vand.u32 4294901760, %v9624_v5  ;;  %v9626_v23 = vld [vmem:[#allocation32_spill] sm:$0xff] }
 0x140   :  { %2643 = vmatpush.msrb.mxu2 %v6575_v2  ;;  %2746 = vmatpush.msrb.mxu3 %v2745_v11  ;;  %v28_v11 = vld [vmem:[%s9381_s2 + $0x8] sm:$0xff] }
 0x141   :  { %2545 = vmatpush.msrb.mxu0 %v9622_v30  ;;  %2594 = vmatpush.msrb.mxu1 %v9623_v25  ;;  %v2270_v30 = vsub.f32 %v2085_v56, %v6747_v55  ;;  %v6771_v25 = vpop.f32.mrf.mxu0  ;;  %v2070_v5 = vmul.f32 %v9628_v4, %v28_v11  ;;  %v2265_v56 = vand.u32 4294901760, %v2264_v60 }
 0x142   :  { %2645 = vmatpush.msrb.mxu2 %v6603_v22  ;;  %2752 = vmatpush.msrb.mxu3 %v2751_v59  ;;  %v2774_v59 = vsub.f32 %v6734_v16, %v9414_v37  ;;  %9627 = vst [vmem:[#allocation40_spill] sm:$0xff] %v6771_v25 }
 0x143   :  { %2549 = vmatpush.msrb.mxu0 %v9625_v33  ;;  %2596 = vmatpush.msrb.mxu1 %v9626_v23  ;;  %v9629_v33 = vand.u32 4294901760, %v6406_v3  ;;  %v6778_v23 = vpop.f32.mrf.mxu3  ;;  %v2271_v39 = vand.u32 4294901760, %v2270_v30  ;;  %v6781_v27 = vpop.f32.mrf.mxu1  ;;  %v9634_v3 = vld [vmem:[#allocation37_spill] sm:$0xff]  ;;  %v6786_v4 = vand.u32 4294901760, %v2070_v5 }
 0x144   :  { %2647 = vmatpush.msrb.mxu2 %v6619_v44  ;;  %2758 = vmatpush.msrb.mxu3 %v2757_v17  ;;  %9631 = vst [vmem:[#allocation30_spill] sm:$0xff] %v6778_v23  ;;  %v2769_v17 = vand.u32 4294901760, %v2768_v15  ;;  %v2775_v37 = vand.u32 4294901760, %v2774_v59  ;;  %v9636_v15 = vand.u32 4294901760, %v6453_v43  ;;  %v9639_v43 = vld [vmem:[#allocation44_spill] sm:$0xff] }
 0x145   :  { %2375 = vmatmul.f32.vlgmr.msra.gmra.mxu1 %v6585_v40  ;;  %2492 = vmatmul.f32.gmra.mxu3 %v2263_v45  ;;  %9632 = vst [vmem:[#allocation43_spill] sm:$0xff] %v6781_v27  ;;  %v9633_v45 = vand.u32 4294901760, %v6426_v9  ;;  %v2272_v11 = vsub.f32 %v2270_v30, %v2271_v39  ;;  %v36_v9 = vld [vmem:[%s9381_s2 + $0x48] sm:$0xff]  ;;  %v6802_v59 = vsub.f32 %v2070_v5, %v6786_v4 }
 0x146   :  { %2553 = vmatpush.msrb.mxu0 %v9629_v33  ;;  %2598 = vmatpush.msrb.mxu1 %v9630_v50  ;;  %v6789_v60 = vpop.f32.mrf.mxu2  ;;  %v9645_v5 = vld [vmem:[#allocation46_spill] sm:$0xff] }
 0x147   :  { %2649 = vmatpush.msrb.mxu2 %v6639_v6  ;;  %2764 = vmatpush.msrb.mxu3 %v2763_v41  ;;  %9635 = vst [vmem:[#allocation32_spill] sm:$0xff] %v6789_v60  ;;  %v9638_v41 = vand.u32 4294901760, %v6477_v52  ;;  %v2273_v52 = vand.u32 4294901760, %v2272_v11  ;;  %v9649_v11 = vld [vmem:[#allocation49_spill] sm:$0xff]  ;;  %v9705_v60 = vld [vmem:[#allocation15_spill] sm:$0xff] }
 0x148   :  { %2266 = vmatmul.f32.gmra.mxu0 %v2265_v56  ;;  %2442 = vmatmul.f32.gmra.mxu2 %v2262_v53  ;;  %v9637_v53 = vld [vmem:[#allocation39_spill] sm:$0xff] }
 0x149   :  { %2557 = vmatpush.msrb.mxu0 %v9633_v45  ;;  %2600 = vmatpush.msrb.mxu1 %v9634_v3  ;;  %v6806_v33 = vpop.f32.mrf.mxu0  ;;  %v9642_v56 = vld [vmem:[#allocation47_spill] sm:$0xff]  ;;  %v9420_v3 = vand.u32 4294901760, %v6802_v59 }
 0x14a   :  { %2651 = vmatpush.msrb.mxu2 %v6660_v26  ;;  %2770 = vmatpush.msrb.mxu3 %v2769_v17  ;;  %9640 = vst [vmem:[#allocation5_spill] sm:$0xff] %v6806_v33  ;;  %v9643_v17 = vand.u32 4294901760, %v9642_v56 }
 0x14b   :  { %2561 = vmatpush.msrb.mxu0 %v9636_v15  ;;  %2602 = vmatpush.msrb.mxu1 %v9637_v53  ;;  %v6813_v45 = vpop.f32.mrf.mxu3  ;;  %v6818_v15 = vpop.f32.mrf.mxu1 }
 0x14c   :  { %2653 = vmatpush.msrb.mxu2 %v6690_v28  ;;  %2776 = vmatpush.msrb.mxu3 %v2775_v37  ;;  %v9641_v37 = vld [vmem:[#allocation6_spill] sm:$0xff]  ;;  %9644 = vst [vmem:[#allocation36_spill] sm:$0xff] %v6813_v45  ;;  %v9704_v45 = vld [vmem:[#allocation13_spill] sm:$0xff] }
 0x14d   :  { %2565 = vmatpush.msrb.mxu0 %v9638_v41  ;;  %2604 = vmatpush.msrb.mxu1 %v9639_v43  ;;  %v2078_v50 = vmul.f32 %v9641_v37, %v36_v9  ;;  %9646 = vst [vmem:[#allocation37_spill] sm:$0xff] %v6818_v15  ;;  %v9651_v43 = vld [vmem:[#allocation54_spill] sm:$0xff] }
 0x14e   :  { %2983 = vmatpush.msra.mxu3 %v6354_v13  ;;  %2655 = vmatpush.msrb.mxu2 %v6705_v35  ;;  %v6825_v9 = vpop.f32.mrf.mxu2  ;;  %v9652_v37 = vand.u32 4294901760, %v9651_v43 }
 0x14f   :  { %2379 = vmatmul.f32.gmra.mxu1 %v6684_v1  ;;  %2498 = vmatmul.f32.gmra.mxu3 %v2271_v39  ;;  %v9647_v39 = vld [vmem:[#allocation50_spill] sm:$0xff]  ;;  %9650 = vst [vmem:[#allocation39_spill] sm:$0xff] %v6825_v9  ;;  %v6827_v41 = vand.u32 4294901760, %v2078_v50  ;;  %v2129_v9 = vld [vmem:[%s9383_s4 + $0x120] sm:$0xff] }
 0x150   :  { %2792 = vmatpush.msra.mxu0 %v9642_v56  ;;  %2908 = vmatpush.msra.mxu2 %v9643_v17  ;;  %v9648_v53 = vand.u32 4294901760, %v9647_v39  ;;  %v9653_v56 = vld [vmem:[#allocation51_spill] sm:$0xff]  ;;  %v44_v17 = vld [vmem:[%s9381_s2 + $0x88] sm:$0xff] }
 0x151   :  { %2985 = vmatpush.msra.mxu3 %v6392_v54  ;;  %2606 = vmatpush.msrb.mxu1 %v9645_v5 }
 0x152   :  { %2274 = vmatmul.f32.gmra.mxu0 %v2273_v52  ;;  %2447 = vmatmul.f32.gmra.mxu2 %v2270_v30  ;;  %v2659_v30 = vsub.f32 %v6802_v59, %v9420_v3  ;;  %v9654_v52 = vld [vmem:[#allocation57_spill] sm:$0xff] }
 0x153   :  { %2795 = vmatpush.msra.mxu0 %v9647_v39  ;;  %2912 = vmatpush.msra.mxu2 %v9648_v53  ;;  %v9655_v5 = vand.u32 4294901760, %v9654_v52  ;;  %v6845_v39 = vpop.f32.mrf.mxu0  ;;  %v6848_v53 = vsub.f32 %v2078_v50, %v6827_v41 }
 0x154   :  { %2987 = vmatpush.msra.mxu3 %v6419_v21  ;;  %2608 = vmatpush.msrb.mxu1 %v9649_v11  ;;  %9656 = vst [vmem:[#allocation44_spill] sm:$0xff] %v6845_v39  ;;  %v9657_v11 = vld [vmem:[#allocation7_spill] sm:$0xff] }
 0x155   :  { %2798 = vmatpush.msra.mxu0 %v9651_v43  ;;  %2916 = vmatpush.msra.mxu2 %v9652_v37  ;;  %v2086_v43 = vmul.f32 %v9657_v11, %v44_v17  ;;  %v6855_v37 = vpop.f32.mrf.mxu3  ;;  %v9419_v50 = vand.u32 4294901760, %v6848_v53  ;;  %v9663_v17 = vand.u32 4294901760, %v6554_v47  ;;  %v9712_v23 = vand.u32 4294901760, %v6848_v53 }
 0x156   :  { %2989 = vmatpush.msra.mxu3 %v6439_v48  ;;  %2610 = vmatpush.msrb.mxu1 %v9653_v56  ;;  %9658 = vst [vmem:[#allocation6_spill] sm:$0xff] %v6855_v37  ;;  %v9659_v56 = vand.u32 4294901760, %v6496_v63 }
 0x157   :  { %2801 = vmatpush.msra.mxu0 %v9654_v52  ;;  %2920 = vmatpush.msra.mxu2 %v9655_v5  ;;  %v6862_v52 = vpop.f32.mrf.mxu1 }
 0x158   :  { %2855 = vmatpush.msra.mxu1 %v6354_v13  ;;  %2991 = vmatpush.msra.mxu3 %v6458_v24  ;;  %v2660_v13 = vand.u32 4294901760, %v2659_v30  ;;  %9660 = vst [vmem:[#allocation47_spill] sm:$0xff] %v6862_v52  ;;  %v6871_v30 = vand.u32 4294901760, %v2086_v43 }
 0x159   :  { %2383 = vmatmul.f32.gmra.mxu1 %v6747_v55  ;;  %2778 = vmatmul.f32.vlgmr.msrb.gmra.mxu3 %v6786_v4 }
 0x15a   :  { %2804 = vmatpush.msra.mxu0 %v6496_v63  ;;  %2857 = vmatpush.msra.mxu1 %v6392_v54  ;;  %v9661_v54 = vand.u32 4294901760, %v6523_v10  ;;  %v6869_v63 = vpop.f32.mrf.mxu2 }
 0x15b   :  { %2924 = vmatpush.msra.mxu2 %v9659_v56  ;;  %2993 = vmatpush.msra.mxu3 %v6486_v46  ;;  %9662 = vst [vmem:[#allocation46_spill] sm:$0xff] %v6869_v63  ;;  %v6886_v5 = vpop.f32.mrf.mxu0  ;;  %v679_v63 = vadd.f32 %v9705_v60, %v9704_v45  ;;  %v2126_v45 = vld [vmem:[%s9383_s4 + $0x108] sm:$0xff] }
 0x15c   :  { %2567 = vmatmul.f32.vlgmr.msrb.gmra.mxu0 %v6585_v40  ;;  %2661 = vmatmul.f32.vlgmr.msrb.gmra.mxu2 %v2660_v13  ;;  %9665 = vst [vmem:[#allocation50_spill] sm:$0xff] %v6886_v5  ;;  %v9671_v13 = vand.u32 4294901760, %v6637_v42 }
 0x15d   :  { %2807 = vmatpush.msra.mxu0 %v6523_v10  ;;  %2859 = vmatpush.msra.mxu1 %v6419_v21  ;;  %v2667_v10 = vsub.f32 %v6848_v53, %v9419_v50  ;;  %v9664_v21 = vand.u32 4294901760, %v6572_v18 }
 0x15e   :  { %2928 = vmatpush.msra.mxu2 %v9661_v54  ;;  %2995 = vmatpush.msra.mxu3 %v6514_v0 }
 0x15f   :  { %2810 = vmatpush.msra.mxu0 %v6554_v47  ;;  %2861 = vmatpush.msra.mxu1 %v6439_v48  ;;  %v6889_v48 = vsub.f32 %v2086_v43, %v6871_v30  ;;  %v2668_v47 = vand.u32 4294901760, %v2667_v10  ;;  %v2140_v43 = vld [vmem:[%s9383_s4 + $0x178] sm:$0xff]  ;;  %v9675_v10 = vand.u32 4294901760, %v6671_v61 }
 0x160   :  { %2932 = vmatpush.msra.mxu2 %v9663_v17  ;;  %2997 = vmatpush.msra.mxu3 %v6540_v49  ;;  %v6927_v56 = vand.u32 4294901760, %v2140_v43  ;;  %v2138_v17 = vld [vmem:[%s9383_s4 + $0x168] sm:$0xff] }
 0x161   :  { %2813 = vmatpush.msra.mxu0 %v6572_v18  ;;  %2863 = vmatpush.msra.mxu1 %v6458_v24  ;;  %v6895_v24 = vpop.f32.mrf.mxu3  ;;  %v9667_v18 = vand.u32 4294901760, %v6583_v32  ;;  %v9418_v11 = vand.u32 4294901760, %v6889_v48 }
 0x162   :  { %2936 = vmatpush.msra.mxu2 %v9664_v21  ;;  %2999 = vmatpush.msra.mxu3 %v6556_v29  ;;  %9666 = vst [vmem:[#allocation49_spill] sm:$0xff] %v6895_v24  ;;  %v6952_v21 = vand.u32 4294901760, %v2138_v17 }
 0x163   :  { %2612 = vmatmul.f32.vlgmr.msrb.gmra.mxu1 %v6585_v40  ;;  %2782 = vmatmul.f32.gmra.mxu3 %v6827_v41  ;;  %v6902_v40 = vpop.f32.mrf.mxu1 }
 0x164   :  { %2816 = vmatpush.msra.mxu0 %v6583_v32  ;;  %2865 = vmatpush.msra.mxu1 %v6486_v46  ;;  %9668 = vst [vmem:[#allocation54_spill] sm:$0xff] %v6902_v40  ;;  %v9669_v46 = vand.u32 4294901760, %v6609_v14  ;;  %v6909_v32 = vpop.f32.mrf.mxu2  ;;  %v9702_v40 = vld [vmem:[#allocation10_spill] sm:$0xff] }
 0x165   :  { %2940 = vmatpush.msra.mxu2 %v9667_v18  ;;  %3001 = vmatpush.msra.mxu3 %v6575_v2  ;;  %9670 = vst [vmem:[#allocation51_spill] sm:$0xff] %v6909_v32  ;;  %v9677_v18 = vand.u32 4294901760, %v6697_v8  ;;  %v7128_v32 = vand.u32 4294901760, %v2129_v9 }
 0x166   :  { %2571 = vmatmul.f32.gmra.mxu0 %v6684_v1  ;;  %2669 = vmatmul.f32.gmra.mxu2 %v2668_v47 }
 0x167   :  { %2819 = vmatpush.msra.mxu0 %v6609_v14  ;;  %2867 = vmatpush.msra.mxu1 %v6514_v0  ;;  %v2675_v0 = vsub.f32 %v6889_v48, %v9418_v11  ;;  %v2139_v14 = vld [vmem:[%s9383_s4 + $0x170] sm:$0xff]  ;;  %v9686_v11 = vld [vmem:[#allocation17_spill] sm:$0xff] }
 0x168   :  { %2944 = vmatpush.msra.mxu2 %v9669_v46  ;;  %3003 = vmatpush.msra.mxu3 %v6603_v22  ;;  %v6936_v54 = vand.u32 4294901760, %v2139_v14 }
 0x169   :  { %2822 = vmatpush.msra.mxu0 %v6637_v42  ;;  %2869 = vmatpush.msra.mxu1 %v6540_v49  ;;  %v9672_v49 = vand.u32 4294901760, %v6656_v58  ;;  %v6932_v42 = vpop.f32.mrf.mxu0 }
 0x16a   :  { %2948 = vmatpush.msra.mxu2 %v9671_v13  ;;  %3005 = vmatpush.msra.mxu3 %v6619_v44  ;;  %9673 = vst [vmem:[#allocation57_spill] sm:$0xff] %v6932_v42  ;;  %v9691_v42 = vld [vmem:[#allocation11_spill] sm:$0xff] }
 0x16b   :  { %2825 = vmatpush.msra.mxu0 %v6656_v58  ;;  %2871 = vmatpush.msra.mxu1 %v6556_v29  ;;  %v2676_v29 = vand.u32 4294901760, %v2675_v0  ;;  %v6943_v58 = vpop.f32.mrf.mxu3  ;;  %v6957_v47 = vpop.f32.mrf.mxu1  ;;  %v9679_v0 = vand.u32 4294901760, %v6721_v31 }
 0x16c   :  { %2952 = vmatpush.msra.mxu2 %v9672_v49  ;;  %3007 = vmatpush.msra.mxu3 %v6639_v6  ;;  %9674 = vst [vmem:[#allocation7_spill] sm:$0xff] %v6943_v58  ;;  %v6967_v46 = vpop.f32.mrf.mxu2 }
 0x16d   :  { %2616 = vmatmul.f32.gmra.mxu1 %v6684_v1  ;;  %2786 = vmatmul.f32.gmra.mxu3 %v6871_v30  ;;  %v6949_v1 = vsub.f32 %v2140_v43, %v6927_v56  ;;  %9676 = vst [vmem:[#allocation71_spill] sm:$0xff] %v6957_v47  ;;  %v2136_v43 = vld [vmem:[%s9383_s4 + $0x158] sm:$0xff] }
 0x16e   :  { %2828 = vmatpush.msra.mxu0 %v6671_v61  ;;  %2873 = vmatpush.msra.mxu1 %v6575_v2  ;;  %v2137_v2 = vld [vmem:[%s9383_s4 + $0x160] sm:$0xff]  ;;  %v6962_v61 = vsub.f32 %v2139_v14, %v6936_v54  ;;  %9678 = vst [vmem:[#allocation72_spill] sm:$0xff] %v6967_v46  ;;  %v2135_v14 = vld [vmem:[%s9383_s4 + $0x150] sm:$0xff] }
 0x16f   :  { %2956 = vmatpush.msra.mxu2 %v9675_v10  ;;  %3009 = vmatpush.msra.mxu3 %v6660_v26  ;;  %v6974_v13 = vand.u32 4294901760, %v2137_v2  ;;  %v9690_v47 = vld [vmem:[#allocation8_spill] sm:$0xff] }
 0x170   :  { %2575 = vmatmul.f32.gmra.mxu0 %v6747_v55  ;;  %2677 = vmatmul.f32.gmra.mxu2 %v2676_v29  ;;  %v9417_v49 = vand.u32 4294901760, %v6962_v61  ;;  %9699 = vst [vmem:[#allocation8_spill] sm:$0xff] %v7128_v32 }
 0x171   :  { %2831 = vmatpush.msra.mxu0 %v6697_v8  ;;  %2875 = vmatpush.msra.mxu1 %v6603_v22  ;;  %v9416_v22 = vand.u32 4294901760, %v6949_v1  ;;  %v6981_v8 = vsub.f32 %v2138_v17, %v6952_v21  ;;  %v6994_v29 = vpop.f32.mrf.mxu0  ;;  %v7002_v10 = vsub.f32 %v2137_v2, %v6974_v13 }
 0x172   :  { %2960 = vmatpush.msra.mxu2 %v9677_v18  ;;  %3011 = vmatpush.msra.mxu3 %v6690_v28  ;;  %9681 = vst [vmem:[#allocation73_spill] sm:$0xff] %v6994_v29  ;;  %v7004_v18 = vand.u32 4294901760, %v2135_v14  ;;  %v3093_v2 = vsub.f32 %v6962_v61, %v9417_v49 }
 0x173   :  { %2834 = vmatpush.msra.mxu0 %v6721_v31  ;;  %2877 = vmatpush.msra.mxu1 %v6619_v44  ;;  %v6988_v44 = vand.u32 4294901760, %v2136_v43  ;;  %v9680_v31 = vand.u32 4294901760, %v6734_v16  ;;  %v3087_v17 = vsub.f32 %v6949_v1, %v9416_v22  ;;  %v2133_v22 = vld [vmem:[%s9383_s4 + $0x140] sm:$0xff] }
 0x174   :  { %2964 = vmatpush.msra.mxu2 %v9679_v0  ;;  %3013 = vmatpush.msra.mxu3 %v6705_v35  ;;  %v9421_v0 = vand.u32 4294901760, %v6981_v8  ;;  %v7042_v3 = vpop.f32.mrf.mxu2 }
 0x175   :  { %2837 = vmatpush.msra.mxu0 %v6734_v16  ;;  %2879 = vmatpush.msra.mxu1 %v6639_v6  ;;  %v2134_v6 = vld [vmem:[%s9383_s4 + $0x148] sm:$0xff]  ;;  %v7011_v16 = vpop.f32.mrf.mxu3  ;;  %v3088_v49 = vand.u32 4294901760, %v3087_v17  ;;  %9684 = vst [vmem:[#allocation76_spill] sm:$0xff] %v7042_v3  ;;  %v7049_v17 = vand.u32 4294901760, %v2133_v22  ;;  %v2131_v3 = vld [vmem:[%s9383_s4 + $0x130] sm:$0xff] }
 0x176   :  { %3258 = vmatpush.msrb.mxu3 %v6927_v56  ;;  %2968 = vmatpush.msra.mxu2 %v9680_v31  ;;  %9682 = vst [vmem:[#allocation74_spill] sm:$0xff] %v7011_v16  ;;  %v7020_v31 = vsub.f32 %v2136_v43, %v6988_v44  ;;  %v7034_v43 = vsub.f32 %v2135_v14, %v7004_v18  ;;  %v3094_v14 = vand.u32 4294901760, %v3093_v2  ;;  %v9687_v2 = vand.u32 4294901760, %v7002_v10 }
 0x177   :  { %3028 = vmatpush.msrb.mxu0 %v6927_v56  ;;  %2620 = vmatmul.f32.gmra.mxu1 %v6747_v55  ;;  %v7024_v55 = vand.u32 4294901760, %v2134_v6  ;;  %v3099_v50 = vsub.f32 %v6981_v8, %v9421_v0 }
 0x178   :  { %3195 = vmatpush.msrb.mxu2 %v6949_v1  ;;  %3260 = vmatpush.msrb.mxu3 %v6936_v54 }
 0x179   :  { %2881 = vmatpush.msra.mxu1 %v6660_v26  ;;  %3015 = vmatmul.f32.vlgmr.msra.gmra.mxu3 %v6786_v4  ;;  %v7029_v26 = vpop.f32.mrf.mxu1  ;;  %v7057_v0 = vsub.f32 %v2134_v6, %v7024_v55  ;;  %v3100_v6 = vand.u32 4294901760, %v3099_v50  ;;  %v7072_v46 = vpop.f32.mrf.mxu0  ;;  %v7086_v50 = vand.u32 4294901760, %v2131_v3 }
 0x17a   :  { %3030 = vmatpush.msrb.mxu0 %v6936_v54  ;;  %3198 = vmatpush.msrb.mxu2 %v6962_v61  ;;  %9683 = vst [vmem:[#allocation75_spill] sm:$0xff] %v7029_v26  ;;  %v2132_v26 = vld [vmem:[%s9383_s4 + $0x138] sm:$0xff] }
 0x17b   :  { %3262 = vmatpush.msrb.mxu3 %v6952_v21  ;;  %2840 = vmatmul.f32.vlgmr.msra.gmra.mxu0 %v6802_v59  ;;  %v7066_v16 = vand.u32 4294901760, %v2132_v26 }
 0x17c   :  { %2883 = vmatpush.msra.mxu1 %v6690_v28  ;;  %2970 = vmatmul.f32.vlgmr.msra.gmra.mxu2 %v6786_v4  ;;  %v9685_v4 = vld [vmem:[#allocation9_spill] sm:$0xff]  ;;  %v3105_v28 = vsub.f32 %v7002_v10, %v9687_v2  ;;  %v29_v2 = vld [vmem:[%s9381_s2 + $0x10] sm:$0xff] }
 0x17d   :  { %3032 = vmatpush.msrb.mxu0 %v6952_v21  ;;  %3201 = vmatpush.msrb.mxu2 %v6981_v8  ;;  %v791_v29 = vadd.f32 %v9686_v11, %v9685_v4  ;;  %v9688_v4 = vld [vmem:[#allocation19_spill] sm:$0xff]  ;;  %9689 = vst [vmem:[#allocation9_spill] sm:$0xff] %v7072_v46  ;;  %v9692_v11 = vand.u32 4294901760, %v7020_v31  ;;  %v9694_v46 = vand.u32 4294901760, %v6802_v59  ;;  %v7103_v37 = vsub.f32 %v2132_v26, %v7066_v16 }
 0x17e   :  { %3264 = vmatpush.msrb.mxu3 %v6974_v13  ;;  %2885 = vmatpush.msra.mxu1 %v6705_v35 }
 0x17f   :  { %3034 = vmatpush.msrb.mxu0 %v6974_v13  ;;  %v824_v35 = vadd.f32 %v9688_v4, %v791_v29  ;;  %3204 = vmatpush.msrb.mxu2 %v7002_v10  ;;  %v3111_v29 = vsub.f32 %v7020_v31, %v9692_v11  ;;  %v7084_v4 = vsub.f32 %v2133_v22, %v7049_v17  ;;  %v3106_v22 = vand.u32 4294901760, %v3105_v28  ;;  %v2128_v28 = vld [vmem:[%s9383_s4 + $0x118] sm:$0xff] }
 0x180   :  { %3089 = vmatpush.msrb.mxu1 %v3088_v49  ;;  %3266 = vmatpush.msrb.mxu3 %v6988_v44  ;;  %v675_v49 = vadd.f32 %v9691_v42, %v9690_v47  ;;  %v2130_v42 = vld [vmem:[%s9383_s4 + $0x128] sm:$0xff]  ;;  %v7093_v47 = vpop.f32.mrf.mxu3  ;;  %v9695_v11 = vand.u32 4294901760, %v7034_v43  ;;  %v9708_v52 = vand.u32 4294901760, %v7103_v37 }
 0x181   :  { %3036 = vmatpush.msrb.mxu0 %v6988_v44  ;;  %3207 = vmatpush.msrb.mxu2 %v7020_v31  ;;  %9693 = vst [vmem:[#allocation17_spill] sm:$0xff] %v7093_v47  ;;  %v2071_v47 = vmul.f32 %v824_v35, %v29_v2  ;;  %v7109_v59 = vand.u32 4294901760, %v2130_v42  ;;  %v3112_v26 = vand.u32 4294901760, %v3111_v29  ;;  %v7120_v35 = vsub.f32 %v2131_v3, %v7086_v50  ;;  %v2156_v29 = vld [vmem:[%s9383_s4 + $0x1f8] sm:$0xff] }
 0x182   :  { %3095 = vmatpush.msrb.mxu1 %v3094_v14  ;;  %3268 = vmatpush.msrb.mxu3 %v7004_v18  ;;  %v3117_v58 = vsub.f32 %v7034_v43, %v9695_v11  ;;  %v9697_v11 = vld [vmem:[#allocation12_spill] sm:$0xff]  ;;  %v9698_v2 = vand.u32 4294901760, %v7057_v0  ;;  %v7158_v24 = vand.u32 4294901760, %v2156_v29  ;;  %v3135_v39 = vsub.f32 %v7103_v37, %v9708_v52 }
 0x183   :  { %2889 = vmatmul.f32.vlgmr.msra.gmra.mxu1 %v9694_v46  ;;  %3019 = vmatmul.f32.gmra.mxu3 %v6827_v41  ;;  %v7111_v46 = vpop.f32.mrf.mxu1  ;;  %v714_v14 = vadd.f32 %v9697_v11, %v675_v49  ;;  %v7130_v49 = vpop.f32.mrf.mxu2 }
 0x184   :  { %3038 = vmatpush.msrb.mxu0 %v7004_v18  ;;  %3101 = vmatpush.msrb.mxu1 %v3100_v6  ;;  %9696 = vst [vmem:[#allocation19_spill] sm:$0xff] %v7111_v46  ;;  %v3123_v46 = vsub.f32 %v7057_v0, %v9698_v2  ;;  %v3118_v3 = vand.u32 4294901760, %v3117_v58  ;;  %v7137_v6 = vand.u32 4294901760, %v2128_v28  ;;  %v7144_v2 = vsub.f32 %v2130_v42, %v7109_v59  ;;  %v2127_v42 = vld [vmem:[%s9383_s4 + $0x110] sm:$0xff] }
 0x185   :  { %3210 = vmatpush.msrb.mxu2 %v7034_v43  ;;  %3270 = vmatpush.msrb.mxu3 %v7024_v55  ;;  %9700 = vst [vmem:[#allocation11_spill] sm:$0xff] %v7130_v49  ;;  %v2155_v49 = vld [vmem:[%s9383_s4 + $0x1f0] sm:$0xff]  ;;  %v9703_v58 = vand.u32 4294901760, %v7084_v4  ;;  %v7206_v34 = vsub.f32 %v2156_v29, %v7158_v24  ;;  %v9717_v29 = vld [vmem:[#allocation16_spill] sm:$0xff]  ;;  %v3136_v20 = vand.u32 4294901760, %v3135_v39 }
 0x186   :  { %2845 = vmatmul.f32.gmra.mxu0 %v6848_v53  ;;  %2974 = vmatmul.f32.gmra.mxu2 %v6827_v41  ;;  %9701 = vst [vmem:[#allocation12_spill] sm:$0xff] %v7137_v6  ;;  %v7139_v41 = vand.u32 4294901760, %v2071_v47  ;;  %v7175_v60 = vsub.f32 %v2128_v28, %v7137_v6  ;;  %v7192_v28 = vand.u32 4294901760, %v2127_v42  ;;  %v7215_v53 = vand.u32 4294901760, %v2126_v45 }
 0x187   :  { %3040 = vmatpush.msrb.mxu0 %v7024_v55  ;;  %3107 = vmatpush.msrb.mxu1 %v3106_v22  ;;  %v752_v22 = vadd.f32 %v9702_v40, %v714_v14  ;;  %v3129_v11 = vsub.f32 %v7084_v4, %v9703_v58  ;;  %v3124_v40 = vand.u32 4294901760, %v3123_v46  ;;  %v7165_v14 = vsub.f32 %v2129_v9, %v7128_v32  ;;  %v9707_v58 = vld [vmem:[#allocation21_spill] sm:$0xff] }
 0x188   :  { %3213 = vmatpush.msrb.mxu2 %v7057_v0  ;;  %3272 = vmatpush.msrb.mxu3 %v7049_v17  ;;  %v7180_v9 = vand.u32 4294901760, %v2155_v49  ;;  %v2154_v46 = vld [vmem:[%s9383_s4 + $0x1e8] sm:$0xff]  ;;  %v7190_v52 = vpop.f32.mrf.mxu3  ;;  %9710 = vst [vmem:[#allocation15_spill] sm:$0xff] %v7192_v28  ;;  %v7255_v7 = vsub.f32 %v2126_v45, %v7215_v53  ;;  %v2151_v45 = vld [vmem:[%s9383_s4 + $0x1d0] sm:$0xff] }
 0x189   :  { %3042 = vmatpush.msrb.mxu0 %v7049_v17  ;;  %3113 = vmatpush.msrb.mxu1 %v3112_v26  ;;  %v7167_v26 = vpop.f32.mrf.mxu0  ;;  %v795_v5 = vadd.f32 %v9707_v58, %v752_v22  ;;  %v7186_v22 = vsub.f32 %v2071_v47, %v7139_v41  ;;  %9709 = vst [vmem:[#allocation13_spill] sm:$0xff] %v7190_v52  ;;  %v9711_v58 = vld [vmem:[#allocation23_spill] sm:$0xff]  ;;  %v3130_v15 = vand.u32 4294901760, %v3129_v11  ;;  %v9713_v47 = vand.u32 4294901760, %v7120_v35  ;;  %v2125_v52 = vld [vmem:[%s9383_s4 + $0x100] sm:$0xff] }
 0x18a   :  { %3216 = vmatpush.msrb.mxu2 %v7084_v4  ;;  %3274 = vmatpush.msrb.mxu3 %v7066_v16  ;;  %9706 = vst [vmem:[#allocation10_spill] sm:$0xff] %v7167_v26  ;;  %v7227_v25 = vsub.f32 %v2155_v49, %v7180_v9  ;;  %v2152_v49 = vld [vmem:[%s9383_s4 + $0x1d8] sm:$0xff] }
 0x18b   :  { %3044 = vmatpush.msrb.mxu0 %v7066_v16  ;;  %3119 = vmatpush.msrb.mxu1 %v3118_v3  ;;  %v828_v26 = vadd.f32 %v9711_v58, %v795_v5  ;;  %v3141_v33 = vsub.f32 %v7120_v35, %v9713_v47  ;;  %9714 = vst [vmem:[#allocation21_spill] sm:$0xff] %v7206_v34  ;;  %v2153_v5 = vld [vmem:[%s9383_s4 + $0x1e0] sm:$0xff]  ;;  %v7218_v58 = vpop.f32.mrf.mxu1  ;;  %v7220_v47 = vand.u32 4294901760, %v2154_v46  ;;  %v7266_v12 = vand.u32 4294901760, %v2152_v49 }
 0x18c   :  { %3219 = vmatpush.msrb.mxu2 %v7103_v37  ;;  %3276 = vmatpush.msrb.mxu3 %v7086_v50  ;;  %9715 = vst [vmem:[#allocation23_spill] sm:$0xff] %v7215_v53  ;;  %v719_v3 = vadd.f32 %v9717_v29, %v679_v63  ;;  %v7235_v63 = vsub.f32 %v2127_v42, %v7192_v28  ;;  %v7237_v29 = vand.u32 4294901760, %v2125_v52  ;;  %v7241_v39 = vand.u32 4294901760, %v2153_v5 }
 0x18d   :  { %2895 = vmatmul.f32.gmra.mxu1 %v9712_v23  ;;  %3023 = vmatmul.f32.gmra.mxu3 %v6871_v30  ;;  %v37_v23 = vld [vmem:[%s9381_s2 + $0x50] sm:$0xff]  ;;  %9716 = vst [vmem:[#allocation77_spill] sm:$0xff] %v7218_v58  ;;  %v7239_v58 = vpop.f32.mrf.mxu2  ;;  %v7258_v27 = vsub.f32 %v2154_v46, %v7220_v47 }
 0x18e   :  { %3046 = vmatpush.msrb.mxu0 %v7086_v50  ;;  %3125 = vmatpush.msrb.mxu1 %v3124_v40  ;;  %9718 = vst [vmem:[#allocation16_spill] sm:$0xff] %v7227_v25  ;;  %v9719_v40 = vand.u32 4294901760, %v7144_v2 }
 0x18f   :  { %3222 = vmatpush.msrb.mxu2 %v7120_v35  ;;  %3278 = vmatpush.msrb.mxu3 %v7109_v59  ;;  %9720 = vst [vmem:[#allocation78_spill] sm:$0xff] %v7237_v29 }
 0x190   :  { %2850 = vmatmul.f32.gmra.mxu0 %v6889_v48  ;;  %2978 = vmatmul.f32.gmra.mxu2 %v6871_v30  ;;  %v3147_v11 = vsub.f32 %v7144_v2, %v9719_v40  ;;  %9721 = vst [vmem:[#allocation79_spill] sm:$0xff] %v7239_v58  ;;  %v2079_v30 = vmul.f32 %v828_v26, %v37_v23  ;;  %v3142_v40 = vand.u32 4294901760, %v3141_v33  ;;  %v9722_v58 = vand.u32 4294901760, %v7165_v14  ;;  %v9724_v26 = vld [vmem:[#allocation14_spill] sm:$0xff] }
 0x191   :  { %3048 = vmatpush.msrb.mxu0 %v7109_v59  ;;  %3131 = vmatpush.msrb.mxu1 %v3130_v15  ;;  %9723 = vst [vmem:[#allocation80_spill] sm:$0xff] %v7258_v27  ;;  %v758_v23 = vadd.f32 %v9724_v26, %v719_v3  ;;  %v9725_v33 = vand.u32 4294901760, %v7175_v60  ;;  %v7274_v3 = vsub.f32 %v2125_v52, %v7237_v29  ;;  %v9731_v52 = vand.u32 4294901760, %v7206_v34 }
 0x192   :  { %3225 = vmatpush.msrb.mxu2 %v7144_v2  ;;  %3280 = vmatpush.msrb.mxu3 %v7128_v32  ;;  %v3153_v51 = vsub.f32 %v7165_v14, %v9722_v58  ;;  %v3148_v46 = vand.u32 4294901760, %v3147_v11  ;;  %v7280_v26 = vsub.f32 %v2153_v5, %v7241_v39  ;;  %v7285_v57 = vand.u32 4294901760, %v2079_v30  ;;  %v2150_v5 = vld [vmem:[%s9383_s4 + $0x1c8] sm:$0xff] }
 0x193   :  { %3050 = vmatpush.msrb.mxu0 %v7128_v32  ;;  %3137 = vmatpush.msrb.mxu1 %v3136_v20  ;;  %v3159_v15 = vsub.f32 %v7175_v60, %v9725_v33  ;;  %9726 = vst [vmem:[#allocation14_spill] sm:$0xff] %v7274_v3  ;;  %v7276_v20 = vpop.f32.mrf.mxu0  ;;  %v9729_v33 = vand.u32 4294901760, %v7186_v22  ;;  %v799_v19 = vadd.f32 %v9730_v38, %v758_v23  ;;  %v2149_v23 = vld [vmem:[%s9383_s4 + $0x1c0] sm:$0xff]  ;;  %v9743_v32 = vand.u32 4294901760, %v7274_v3 }
 0x194   :  { %3228 = vmatpush.msrb.mxu2 %v7165_v14  ;;  %3282 = vmatpush.msrb.mxu3 %v7137_v6  ;;  %9727 = vst [vmem:[#allocation81_spill] sm:$0xff] %v7276_v20  ;;  %v3490_v11 = vsub.f32 %v7206_v34, %v9731_v52  ;;  %v3154_v58 = vand.u32 4294901760, %v3153_v51  ;;  %v9733_v20 = vld [vmem:[#allocation27_spill] sm:$0xff]  ;;  %v9734_v52 = vand.u32 4294901760, %v6889_v48  ;;  %v9735_v34 = vand.u32 4294901760, %v7227_v25 }
 0x195   :  { %9728 = vst [vmem:[#allocation82_spill] sm:$0xff] %v7280_v26  ;;  %v3062_v42 = vsub.f32 %v7186_v22, %v9729_v33  ;;  %3052 = vmatpush.msrb.mxu0 %v7137_v6  ;;  %3143 = vmatpush.msrb.mxu1 %v3142_v40  ;;  %v7297_v33 = vpop.f32.mrf.mxu3  ;;  %v7301_v40 = vand.u32 4294901760, %v2151_v45  ;;  %v832_v62 = vadd.f32 %v9733_v20, %v799_v19  ;;  %v3160_v36 = vand.u32 4294901760, %v3159_v15  ;;  %v45_v19 = vld [vmem:[%s9381_s2 + $0x90] sm:$0xff]  ;;  %v7325_v20 = vpop.f32.mrf.mxu1 }
 0x196   :  { %3231 = vmatpush.msrb.mxu2 %v7175_v60  ;;  %3284 = vmatpush.msrb.mxu3 %v7192_v28  ;;  %9732 = vst [vmem:[#allocation25_spill] sm:$0xff] %v7297_v33  ;;  %v3496_v6 = vsub.f32 %v7227_v25, %v9735_v34  ;;  %v7311_v51 = vsub.f32 %v2152_v49, %v7266_v12  ;;  %v9736_v48 = vand.u32 4294901760, %v7235_v63  ;;  %v9739_v49 = vand.u32 4294901760, %v7255_v7 }
 0x197   :  { %2901 = vmatmul.f32.gmra.mxu1 %v9734_v52  ;;  %3054 = vmatpush.msrb.mxu0 %v7192_v28  ;;  %9737 = vst [vmem:[#allocation27_spill] sm:$0xff] %v7325_v20  ;;  %v7327_v52 = vand.u32 4294901760, %v2150_v5  ;;  %v7330_v38 = vsub.f32 %v2079_v30, %v7285_v57  ;;  %v7341_v20 = vpop.f32.mrf.mxu2  ;;  %v7344_v30 = vsub.f32 %v2151_v45, %v7301_v40  ;;  %v7346_v25 = vand.u32 4294901760, %v2149_v23 }
 0x198   :  { %3149 = vmatpush.msrb.mxu1 %v3148_v46  ;;  %3234 = vmatpush.msrb.mxu2 %v7235_v63  ;;  %v3165_v15 = vsub.f32 %v7235_v63, %v9736_v48  ;;  %v3491_v46 = vand.u32 4294901760, %v3490_v11  ;;  %v9738_v48 = vand.u32 4294901760, %v7258_v27  ;;  %v3171_v33 = vsub.f32 %v7255_v7, %v9739_v49  ;;  %9740 = vst [vmem:[#allocation83_spill] sm:$0xff] %v7341_v20 }
 0x199   :  { %3286 = vmatpush.msrb.mxu3 %v7215_v53  ;;  %3056 = vmatpush.msrb.mxu0 %v7215_v53  ;;  %v3063_v11 = vand.u32 4294901760, %v3062_v42  ;;  %v2087_v53 = vmul.f32 %v832_v62, %v45_v19  ;;  %v9741_v20 = vand.u32 4294901760, %v7186_v22  ;;  %v3177_v62 = vsub.f32 %v7274_v3, %v9743_v32  ;;  %v9744_v19 = vld [vmem:[#allocation20_spill] sm:$0xff] }
 0x19a   :  { %3155 = vmatpush.msrb.mxu1 %v3154_v58  ;;  %3237 = vmatpush.msrb.mxu2 %v7255_v7  ;;  %v3502_v34 = vsub.f32 %v7258_v27, %v9738_v48  ;;  %v2148_v58 = vld [vmem:[%s9383_s4 + $0x1b8] sm:$0xff]  ;;  %v3497_v48 = vand.u32 4294901760, %v3496_v6  ;;  %v3166_v45 = vand.u32 4294901760, %v3165_v15  ;;  %v9742_v27 = vand.u32 4294901760, %v7280_v26  ;;  %v9745_v6 = vld [vmem:[#allocation18_spill] sm:$0xff] }
 0x19b   :  { %3288 = vmatpush.msrb.mxu3 %v7237_v29  ;;  %3058 = vmatpush.msrb.mxu0 %v7237_v29  ;;  %v7363_v42 = vsub.f32 %v2150_v5, %v7327_v52  ;;  %v918_v29 = vadd.f32 %v9745_v6, %v9744_v19  ;;  %v7369_v15 = vand.u32 4294901760, %v2148_v58  ;;  %v3172_v5 = vand.u32 4294901760, %v3171_v33  ;;  %v7376_v49 = vpop.f32.mrf.mxu0  ;;  %v9748_v6 = vld [vmem:[#allocation31_spill] sm:$0xff] }
 0x19c   :  { %3292 = vmatmul.f32.vlgmr.msrb.gmra.mxu3 %v9741_v20  ;;  %3161 = vmatpush.msrb.mxu1 %v3160_v36  ;;  %v3508_v28 = vsub.f32 %v7280_v26, %v9742_v27  ;;  %v3069_v36 = vand.u32 4294901760, %v7330_v38  ;;  %v2147_v27 = vld [vmem:[%s9383_s4 + $0x1b0] sm:$0xff]  ;;  %v3503_v32 = vand.u32 4294901760, %v3502_v34  ;;  %9746 = vst [vmem:[#allocation20_spill] sm:$0xff] %v7376_v49  ;;  %v7381_v19 = vand.u32 4294901760, %v2087_v53  ;;  %v2146_v34 = vld [vmem:[%s9383_s4 + $0x1a8] sm:$0xff] }
 0x19d   :  { %3492 = vmatpush.msra.mxu3 %v3491_v46  ;;  %3240 = vmatpush.msrb.mxu2 %v7274_v3  ;;  %v7379_v46 = vsub.f32 %v2149_v23, %v7346_v25  ;;  %v956_v26 = vadd.f32 %v9748_v6, %v918_v29  ;;  %v9749_v3 = vand.u32 4294901760, %v6949_v1  ;;  %v3178_v20 = vand.u32 4294901760, %v3177_v62 }
 0x19e   :  { %3064 = vmatmul.f32.vlgmr.msrb.gmra.mxu0 %v3063_v11  ;;  %3243 = vmatmul.f32.vlgmr.msrb.gmra.mxu2 %v7186_v22  ;;  %v9750_v22 = vand.u32 4294901760, %v7311_v51  ;;  %v3509_v23 = vand.u32 4294901760, %v3508_v28  ;;  %v7393_v11 = vpop.f32.mrf.mxu3  ;;  %v9436_v29 = vand.u32 4294901760, %v7363_v42  ;;  %v7396_v1 = vand.u32 4294901760, %v2147_v27  ;;  %v2145_v28 = vld [vmem:[%s9383_s4 + $0x1a0] sm:$0xff] }
 0x19f   :  { %9747 = vst [vmem:[#allocation18_spill] sm:$0xff] %v7379_v46  ;;  %3311 = vmatpush.msra.mxu0 %v9749_v3  ;;  %3431 = vmatpush.msra.mxu2 %v7158_v24  ;;  %v9752_v3 = vld [vmem:[#allocation34_spill] sm:$0xff]  ;;  %v9753_v49 = vand.u32 4294901760, %v6962_v61  ;;  %v7415_v62 = vand.u32 4294901760, %v2146_v34 }
 0x1a0   :  { %v3514_v33 = vsub.f32 %v7311_v51, %v9750_v22  ;;  %3498 = vmatpush.msra.mxu3 %v3497_v48  ;;  %3167 = vmatpush.msrb.mxu1 %v3166_v45  ;;  %9751 = vst [vmem:[#allocation31_spill] sm:$0xff] %v7393_v11  ;;  %v993_v6 = vadd.f32 %v9752_v3, %v956_v26  ;;  %v9754_v45 = vand.u32 4294901760, %v7344_v30  ;;  %v7431_v11 = vand.u32 4294901760, %v2145_v28 }
 0x1a1   :  { %3315 = vmatpush.msra.mxu0 %v9753_v49  ;;  %3433 = vmatpush.msra.mxu2 %v7180_v9  ;;  %v7403_v22 = vsub.f32 %v2148_v58, %v7369_v15  ;;  %v3070_v48 = vsub.f32 %v7330_v38, %v3069_v36  ;;  %v7413_v49 = vpop.f32.mrf.mxu1  ;;  %v9756_v58 = vand.u32 4294901760, %v6981_v8  ;;  %v7429_v61 = vsub.f32 %v2147_v27, %v7396_v1  ;;  %v2144_v8 = vld [vmem:[%s9383_s4 + $0x198] sm:$0xff] }
 0x1a2   :  { %3504 = vmatpush.msra.mxu3 %v3503_v32  ;;  %3173 = vmatpush.msrb.mxu1 %v3172_v5  ;;  %v3520_v26 = vsub.f32 %v7344_v30, %v9754_v45  ;;  %9755 = vst [vmem:[#allocation34_spill] sm:$0xff] %v7413_v49  ;;  %v3515_v3 = vand.u32 4294901760, %v3514_v33  ;;  %v7421_v32 = vsub.f32 %v2087_v53, %v7381_v19  ;;  %v7426_v45 = vpop.f32.mrf.mxu2  ;;  %v9758_v33 = vld [vmem:[#allocation35_spill] sm:$0xff] }
 0x1a3   :  { %3319 = vmatpush.msra.mxu0 %v9756_v58  ;;  %3435 = vmatpush.msra.mxu2 %v7220_v47  ;;  %v3526_v5 = vsub.f32 %v7363_v42, %v9436_v29  ;;  %9757 = vst [vmem:[#allocation84_spill] sm:$0xff] %v7426_v45  ;;  %v1038_v53 = vadd.f32 %v9758_v33, %v993_v6  ;;  %v3071_v27 = vand.u32 4294901760, %v3070_v48  ;;  %v9760_v29 = vand.u32 4294901760, %v7379_v46  ;;  %v9761_v6 = vld [vmem:[#allocation24_spill] sm:$0xff]  ;;  %v9762_v33 = vld [vmem:[#allocation22_spill] sm:$0xff]  ;;  %v7459_v48 = vpop.f32.mrf.mxu0 }
 0x1a4   :  { %3510 = vmatpush.msra.mxu3 %v3509_v23  ;;  %3179 = vmatpush.msrb.mxu1 %v3178_v20  ;;  %v9759_v23 = vand.u32 4294901760, %v7002_v10  ;;  %v3521_v58 = vand.u32 4294901760, %v3520_v26  ;;  %v7446_v49 = vsub.f32 %v2146_v34, %v7415_v62  ;;  %v922_v20 = vadd.f32 %v9762_v33, %v9761_v6  ;;  %9763 = vst [vmem:[#allocation35_spill] sm:$0xff] %v7459_v48  ;;  %v9766_v6 = vld [vmem:[#allocation33_spill] sm:$0xff]  ;;  %v9767_v34 = vld [vmem:[#allocation38_spill] sm:$0xff] }
 0x1a5   :  { %3181 = vmatmul.f32.vlgmr.msrb.gmra.mxu1 %v7139_v41  ;;  %3298 = vmatmul.f32.gmra.mxu3 %v3069_v36  ;;  %v3532_v45 = vsub.f32 %v7379_v46, %v9760_v29  ;;  %v2143_v36 = vld [vmem:[%s9383_s4 + $0x190] sm:$0xff]  ;;  %v3527_v10 = vand.u32 4294901760, %v3526_v5  ;;  %v3077_v29 = vand.u32 4294901760, %v7421_v32  ;;  %v7462_v26 = vsub.f32 %v2145_v28, %v7431_v11 }
 0x1a6   :  { %3323 = vmatpush.msra.mxu0 %v9759_v23  ;;  %3386 = vmatpush.msra.mxu1 %v6927_v56  ;;  %v7454_v56 = vand.u32 4294901760, %v2144_v8  ;;  %v2142_v23 = vld [vmem:[%s9383_s4 + $0x188] sm:$0xff]  ;;  %v1071_v33 = vadd.f32 %v9766_v6, %v1038_v53  ;;  %v961_v28 = vadd.f32 %v9767_v34, %v922_v20  ;;  %v7478_v46 = vpop.f32.mrf.mxu3  ;;  %v9769_v53 = vand.u32 4294901760, %v7034_v43 }
 0x1a7   :  { %3437 = vmatpush.msra.mxu2 %v7241_v39  ;;  %3516 = vmatpush.msra.mxu3 %v3515_v3  ;;  %v9764_v3 = vand.u32 4294901760, %v7020_v31  ;;  %v3533_v48 = vand.u32 4294901760, %v3532_v45  ;;  %9768 = vst [vmem:[#allocation24_spill] sm:$0xff] %v7478_v46  ;;  %v7493_v45 = vand.u32 4294901760, %v2142_v23  ;;  %v9771_v6 = vand.u32 4294901760, %v7429_v61 }
 0x1a8   :  { %3072 = vmatmul.f32.gmra.mxu0 %v3071_v27  ;;  %3248 = vmatmul.f32.gmra.mxu2 %v7330_v38  ;;  %v9765_v38 = vand.u32 4294901760, %v7403_v22  ;;  %v7473_v27 = vand.u32 4294901760, %v2143_v36  ;;  %v7491_v20 = vsub.f32 %v2144_v8, %v7454_v56 }
 0x1a9   :  { %3327 = vmatpush.msra.mxu0 %v9764_v3  ;;  %3388 = vmatpush.msra.mxu1 %v6936_v54  ;;  %v2141_v54 = vld [vmem:[%s9383_s4 + $0x180] sm:$0xff]  ;;  %v30_v3 = vld [vmem:[%s9381_s2 + $0x18] sm:$0xff]  ;;  %v3544_v31 = vsub.f32 %v7429_v61, %v9771_v6  ;;  %v9774_v6 = vand.u32 4294901760, %v7446_v49 }
 0x1aa   :  { %v3538_v5 = vsub.f32 %v7403_v22, %v9765_v38  ;;  %3439 = vmatpush.msra.mxu2 %v7266_v12  ;;  %3522 = vmatpush.msra.mxu3 %v3521_v58  ;;  %v9770_v58 = vld [vmem:[#allocation41_spill] sm:$0xff]  ;;  %v3078_v38 = vsub.f32 %v7421_v32, %v3077_v29  ;;  %v7516_v46 = vpop.f32.mrf.mxu2 }
 0x1ab   :  { %3331 = vmatpush.msra.mxu0 %v9769_v53  ;;  %3390 = vmatpush.msra.mxu1 %v6952_v21  ;;  %v999_v34 = vadd.f32 %v9770_v58, %v961_v28  ;;  %v7502_v53 = vpop.f32.mrf.mxu1  ;;  %v9773_v21 = vand.u32 4294901760, %v7057_v0  ;;  %v7508_v28 = vsub.f32 %v2143_v36, %v7473_v27  ;;  %v2072_v58 = vmul.f32 %v1071_v33, %v30_v3  ;;  %v9776_v36 = vld [vmem:[#allocation42_spill] sm:$0xff] }
 0x1ac   :  { %3441 = vmatpush.msra.mxu2 %v7301_v40  ;;  %3528 = vmatpush.msra.mxu3 %v3527_v10  ;;  %9772 = vst [vmem:[#allocation22_spill] sm:$0xff] %v7502_v53  ;;  %v3539_v8 = vand.u32 4294901760, %v3538_v5  ;;  %v7510_v10 = vand.u32 4294901760, %v2141_v54  ;;  %v3550_v43 = vsub.f32 %v7446_v49, %v9774_v6  ;;  %v7521_v0 = vsub.f32 %v2142_v23, %v7493_v45  ;;  %v9863_v53 = vld [vmem:[#allocation40_spill] sm:$0xff] }
 0x1ad   :  { %3335 = vmatpush.msra.mxu0 %v9773_v21  ;;  %3392 = vmatpush.msra.mxu1 %v6974_v13  ;;  %9775 = vst [vmem:[#allocation33_spill] sm:$0xff] %v7516_v46  ;;  %v3561_v13 = vand.u32 4294901760, %v7491_v20  ;;  %v1042_v5 = vadd.f32 %v9776_v36, %v999_v34  ;;  %v9777_v33 = vand.u32 4294901760, %v7084_v4  ;;  %v3545_v3 = vand.u32 4294901760, %v3544_v31  ;;  %v9779_v34 = vld [vmem:[#allocation28_spill] sm:$0xff]  ;;  %v9780_v36 = vld [vmem:[#allocation26_spill] sm:$0xff]  ;;  %v7540_v31 = vpop.f32.mrf.mxu0 }
 0x1ae   :  { %3443 = vmatpush.msra.mxu2 %v7327_v52  ;;  %3534 = vmatpush.msra.mxu3 %v3533_v48  ;;  %v3079_v48 = vand.u32 4294901760, %v3078_v38  ;;  %v9778_v21 = vand.u32 4294901760, %v7462_v26  ;;  %v7533_v23 = vsub.f32 %v2141_v54, %v7510_v10  ;;  %v926_v4 = vadd.f32 %v9780_v36, %v9779_v34  ;;  %9781 = vst [vmem:[#allocation38_spill] sm:$0xff] %v7540_v31  ;;  %v9784_v36 = vld [vmem:[#allocation48_spill] sm:$0xff] }
 0x1af   :  { %3185 = vmatmul.f32.gmra.mxu1 %v7285_v57  ;;  %3304 = vmatmul.f32.gmra.mxu3 %v3077_v29  ;;  %v3567_v29 = vand.u32 4294901760, %v7508_v28  ;;  %v9782_v38 = vand.u32 4294901760, %v7103_v37  ;;  %v3562_v54 = vsub.f32 %v7491_v20, %v3561_v13  ;;  %v38_v37 = vld [vmem:[%s9381_s2 + $0x58] sm:$0xff] }
 0x1b0   :  { %3339 = vmatpush.msra.mxu0 %v9777_v33  ;;  %3394 = vmatpush.msra.mxu1 %v6988_v44  ;;  %v3556_v6 = vsub.f32 %v7462_v26, %v9778_v21  ;;  %v7537_v33 = vand.u32 4294901760, %v2072_v58  ;;  %v3551_v44 = vand.u32 4294901760, %v3550_v43  ;;  %v9783_v21 = vld [vmem:[#allocation45_spill] sm:$0xff]  ;;  %v7552_v43 = vpop.f32.mrf.mxu3 }
 0x1b1   :  { %3445 = vmatpush.msra.mxu2 %v7346_v25  ;;  %3540 = vmatpush.msra.mxu3 %v3539_v8  ;;  %v3573_v8 = vand.u32 4294901760, %v7521_v0  ;;  %v1075_v34 = vadd.f32 %v9783_v21, %v1042_v5  ;;  %9785 = vst [vmem:[#allocation41_spill] sm:$0xff] %v7552_v43  ;;  %v3568_v5 = vsub.f32 %v7508_v28, %v3567_v29 }
 0x1b2   :  { %3080 = vmatmul.f32.gmra.mxu0 %v3079_v48  ;;  %3253 = vmatmul.f32.gmra.mxu2 %v7421_v32  ;;  %v966_v48 = vadd.f32 %v9784_v36, %v926_v4  ;;  %v3557_v32 = vand.u32 4294901760, %v3556_v6  ;;  %v3579_v4 = vand.u32 4294901760, %v7533_v23  ;;  %v9787_v6 = vld [vmem:[#allocation52_spill] sm:$0xff] }
 0x1b3   :  { %3343 = vmatpush.msra.mxu0 %v9782_v38  ;;  %3396 = vmatpush.msra.mxu1 %v7004_v18  ;;  %v9786_v18 = vand.u32 4294901760, %v7120_v35  ;;  %v7569_v21 = vpop.f32.mrf.mxu1  ;;  %v9789_v35 = vand.u32 4294901760, %v7144_v2  ;;  %v3574_v36 = vsub.f32 %v7521_v0, %v3573_v8  ;;  %v3569_v2 = vand.u32 4294901760, %v3568_v5 }
 0x1b4   :  { %3447 = vmatpush.msra.mxu2 %v7369_v15  ;;  %3546 = vmatpush.msra.mxu3 %v3545_v3  ;;  %v7565_v3 = vsub.f32 %v2072_v58, %v7537_v33  ;;  %v1005_v38 = vadd.f32 %v9787_v6, %v966_v48  ;;  %9788 = vst [vmem:[#allocation42_spill] sm:$0xff] %v7569_v21  ;;  %v7578_v58 = vpop.f32.mrf.mxu2  ;;  %v9792_v48 = vld [vmem:[#allocation53_spill] sm:$0xff]  ;;  %v9795_v5 = vand.u32 4294901760, %v7235_v63  ;;  %v9798_v63 = vand.u32 4294901760, %v7255_v7  ;;  %v9862_v21 = vld [vmem:[#allocation66_spill] sm:$0xff] }
 0x1b5   :  { %3347 = vmatpush.msra.mxu0 %v9786_v18  ;;  %3398 = vmatpush.msra.mxu1 %v7024_v55  ;;  %v3563_v55 = vand.u32 4294901760, %v3562_v54  ;;  %v2080_v18 = vmul.f32 %v1075_v34, %v38_v37  ;;  %9790 = vst [vmem:[#allocation28_spill] sm:$0xff] %v7578_v58  ;;  %v9793_v34 = vand.u32 4294901760, %v7175_v60  ;;  %v9796_v60 = vld [vmem:[#allocation55_spill] sm:$0xff]  ;;  %v9861_v58 = vld [vmem:[#allocation64_spill] sm:$0xff] }
 0x1b6   :  { %3449 = vmatpush.msra.mxu2 %v7396_v1  ;;  %3552 = vmatpush.msra.mxu3 %v3551_v44  ;;  %v9791_v44 = vand.u32 4294901760, %v7165_v14  ;;  %v3464_v54 = vand.u32 4294901760, %v7565_v3  ;;  %v1046_v6 = vadd.f32 %v9792_v48, %v1005_v38  ;;  %v7594_v14 = vpop.f32.mrf.mxu0  ;;  %v1173_v31 = vadd.f32 %v9862_v21, %v9861_v58 }
 0x1b7   :  { %3351 = vmatpush.msra.mxu0 %v9789_v35  ;;  %3400 = vmatpush.msra.mxu1 %v7049_v17  ;;  %v3580_v17 = vsub.f32 %v7533_v23, %v3579_v4  ;;  %9794 = vst [vmem:[#allocation26_spill] sm:$0xff] %v7594_v14  ;;  %v7596_v37 = vand.u32 4294901760, %v2080_v18 }
 0x1b8   :  { %3451 = vmatpush.msra.mxu2 %v7415_v62  ;;  %3558 = vmatpush.msra.mxu3 %v3557_v32  ;;  %v3575_v32 = vand.u32 4294901760, %v3574_v36  ;;  %v3465_v38 = vsub.f32 %v7565_v3, %v3464_v54  ;;  %v1079_v35 = vadd.f32 %v9796_v60, %v1046_v6  ;;  %v9799_v36 = vld [vmem:[#allocation8_spill] sm:$0xff] }
 0x1b9   :  { %3189 = vmatmul.f32.gmra.mxu1 %v7381_v19  ;;  %3355 = vmatpush.msra.mxu0 %v9791_v44  ;;  %v9803_v6 = vld [vmem:[#allocation12_spill] sm:$0xff] }
 0x1ba   :  { %3402 = vmatpush.msra.mxu1 %v7066_v16  ;;  %3453 = vmatpush.msra.mxu2 %v7431_v11  ;;  %v3581_v16 = vand.u32 4294901760, %v3580_v17  ;;  %v3466_v7 = vand.u32 4294901760, %v3465_v38 }
 0x1bb   :  { %3564 = vmatpush.msra.mxu3 %v3563_v55  ;;  %3359 = vmatpush.msra.mxu0 %v9793_v34  ;;  %v46_v55 = vld [vmem:[%s9381_s2 + $0x98] sm:$0xff]  ;;  %v7615_v44 = vpop.f32.mrf.mxu1 }
 0x1bc   :  { %3404 = vmatpush.msra.mxu1 %v7086_v50  ;;  %3455 = vmatpush.msra.mxu2 %v7454_v56  ;;  %v7606_v50 = vpop.f32.mrf.mxu3  ;;  %9800 = vst [vmem:[#allocation48_spill] sm:$0xff] %v7615_v44  ;;  %v2088_v48 = vmul.f32 %v1079_v35, %v46_v55  ;;  %v7624_v34 = vpop.f32.mrf.mxu2  ;;  %v9809_v35 = vld [vmem:[#allocation16_spill] sm:$0xff] }
 0x1bd   :  { %3570 = vmatpush.msra.mxu3 %v3569_v2  ;;  %3363 = vmatpush.msra.mxu0 %v9795_v5  ;;  %9797 = vst [vmem:[#allocation45_spill] sm:$0xff] %v7606_v50  ;;  %v9801_v2 = vld [vmem:[#allocation14_spill] sm:$0xff]  ;;  %v9810_v55 = vand.u32 4294901760, %v9809_v35 }
 0x1be   :  { %3406 = vmatpush.msra.mxu1 %v7109_v59  ;;  %3457 = vmatpush.msra.mxu2 %v7473_v27  ;;  %v7618_v59 = vsub.f32 %v2080_v18, %v7596_v37  ;;  %v9802_v17 = vand.u32 4294901760, %v9801_v2  ;;  %9804 = vst [vmem:[#allocation52_spill] sm:$0xff] %v7624_v34  ;;  %v7635_v38 = vpop.f32.mrf.mxu0  ;;  %v7637_v60 = vand.u32 4294901760, %v2088_v48 }
 0x1bf   :  { %3576 = vmatpush.msra.mxu3 %v3575_v32  ;;  %3367 = vmatpush.msra.mxu0 %v9798_v63  ;;  %v9805_v32 = vld [vmem:[#allocation21_spill] sm:$0xff]  ;;  %9808 = vst [vmem:[#allocation53_spill] sm:$0xff] %v7635_v38  ;;  %v9811_v63 = vld [vmem:[#allocation23_spill] sm:$0xff] }
 0x1c0   :  { %3408 = vmatpush.msra.mxu1 %v9799_v36  ;;  %3459 = vmatpush.msra.mxu2 %v7493_v45  ;;  %v9443_v18 = vand.u32 4294901760, %v7618_v59  ;;  %v9806_v5 = vand.u32 4294901760, %v9805_v32 }
 0x1c1   :  { %3582 = vmatpush.msra.mxu3 %v3581_v16  ;;  %3371 = vmatpush.msra.mxu0 %v9802_v17  ;;  %v9807_v16 = vld [vmem:[#allocation15_spill] sm:$0xff]  ;;  %v9813_v17 = vld [vmem:[#allocation80_spill] sm:$0xff] }
 0x1c2   :  { %3584 = vmatmul.f32.vlgmr.msra.gmra.mxu3 %v7537_v33  ;;  %3410 = vmatpush.msra.mxu1 %v9803_v6  ;;  %v3473_v2 = vsub.f32 %v7618_v59, %v9443_v18  ;;  %v9814_v6 = vand.u32 4294901760, %v9813_v17  ;;  %v9844_v18 = vld [vmem:[#allocation62_spill] sm:$0xff] }
 0x1c3   :  { %3789 = vmatpush.msrb.mxu3 %v7158_v24  ;;  %3461 = vmatpush.msra.mxu2 %v7510_v10 }
 0x1c4   :  { %3373 = vmatmul.f32.vlgmr.msra.gmra.mxu0 %v7139_v41  ;;  %3467 = vmatmul.f32.vlgmr.msra.gmra.mxu2 %v3466_v7  ;;  %v7644_v36 = vpop.f32.mrf.mxu3  ;;  %v9815_v7 = vld [vmem:[#allocation78_spill] sm:$0xff] }
 0x1c5   :  { %3598 = vmatpush.msrb.mxu0 %v9805_v32  ;;  %3714 = vmatpush.msrb.mxu2 %v9806_v5  ;;  %9812 = vst [vmem:[#allocation55_spill] sm:$0xff] %v7644_v36  ;;  %v7654_v32 = vpop.f32.mrf.mxu1  ;;  %v7657_v5 = vsub.f32 %v2088_v48, %v7637_v60 }
 0x1c6   :  { %3791 = vmatpush.msrb.mxu3 %v7180_v9  ;;  %3412 = vmatpush.msra.mxu1 %v9807_v16  ;;  %9816 = vst [vmem:[#allocation8_spill] sm:$0xff] %v7654_v32  ;;  %v9817_v16 = vld [vmem:[#allocation82_spill] sm:$0xff]  ;;  %v9849_v32 = vld [vmem:[#allocation63_spill] sm:$0xff] }
 0x1c7   :  { %3601 = vmatpush.msrb.mxu0 %v9809_v35  ;;  %3718 = vmatpush.msrb.mxu2 %v9810_v55  ;;  %v3474_v35 = vand.u32 4294901760, %v3473_v2  ;;  %v7663_v55 = vpop.f32.mrf.mxu2  ;;  %v9442_v48 = vand.u32 4294901760, %v7657_v5  ;;  %v9821_v2 = vand.u32 4294901760, %v7344_v30 }
 0x1c8   :  { %3793 = vmatpush.msrb.mxu3 %v7220_v47  ;;  %3414 = vmatpush.msra.mxu1 %v9811_v63  ;;  %9818 = vst [vmem:[#allocation14_spill] sm:$0xff] %v7663_v55  ;;  %v9819_v63 = vand.u32 4294901760, %v9817_v16 }
 0x1c9   :  { %3604 = vmatpush.msrb.mxu0 %v9813_v17  ;;  %3722 = vmatpush.msrb.mxu2 %v9814_v6 }
 0x1ca   :  { %3795 = vmatpush.msrb.mxu3 %v7241_v39  ;;  %3416 = vmatpush.msra.mxu1 %v9815_v7 }
 0x1cb   :  { %3418 = vmatmul.f32.vlgmr.msra.gmra.mxu1 %v7139_v41  ;;  %3588 = vmatmul.f32.gmra.mxu3 %v7596_v37  ;;  %v9820_v41 = vand.u32 4294901760, %v7311_v51 }
 0x1cc   :  { %3607 = vmatpush.msrb.mxu0 %v9817_v16  ;;  %3661 = vmatpush.msrb.mxu1 %v7158_v24  ;;  %v7675_v24 = vpop.f32.mrf.mxu0  ;;  %v7682_v17 = vpop.f32.mrf.mxu3  ;;  %v9827_v16 = vand.u32 4294901760, %v7429_v61 }
 0x1cd   :  { %3726 = vmatpush.msrb.mxu2 %v9819_v63  ;;  %3797 = vmatpush.msrb.mxu3 %v7266_v12  ;;  %9822 = vst [vmem:[#allocation12_spill] sm:$0xff] %v7682_v17  ;;  %v2170_v63 = vld [vmem:[%s9383_s4 + $0x268] sm:$0xff] }
 0x1ce   :  { %3377 = vmatmul.f32.gmra.mxu0 %v7285_v57  ;;  %3475 = vmatmul.f32.gmra.mxu2 %v3474_v35 }
 0x1cf   :  { %3610 = vmatpush.msrb.mxu0 %v7311_v51  ;;  %3663 = vmatpush.msrb.mxu1 %v7180_v9  ;;  %v3481_v9 = vsub.f32 %v7657_v5, %v9442_v48  ;;  %v9823_v51 = vand.u32 4294901760, %v7363_v42  ;;  %v7698_v7 = vpop.f32.mrf.mxu2  ;;  %v9843_v48 = vld [vmem:[#allocation60_spill] sm:$0xff] }
 0x1d0   :  { %3730 = vmatpush.msrb.mxu2 %v9820_v41  ;;  %3799 = vmatpush.msrb.mxu3 %v7301_v40 }
 0x1d1   :  { %3613 = vmatpush.msrb.mxu0 %v7344_v30  ;;  %3665 = vmatpush.msrb.mxu1 %v7220_v47  ;;  %v7692_v47 = vpop.f32.mrf.mxu1  ;;  %v9824_v30 = vld [vmem:[#allocation18_spill] sm:$0xff]  ;;  %v3482_v6 = vand.u32 4294901760, %v3481_v9  ;;  %v9831_v9 = vld [vmem:[#allocation56_spill] sm:$0xff] }
 0x1d2   :  { %3734 = vmatpush.msrb.mxu2 %v9821_v2  ;;  %3801 = vmatpush.msrb.mxu3 %v7327_v52  ;;  %v2168_v2 = vld [vmem:[%s9383_s4 + $0x258] sm:$0xff] }
 0x1d3   :  { %3616 = vmatpush.msrb.mxu0 %v7363_v42  ;;  %3667 = vmatpush.msrb.mxu1 %v7241_v39  ;;  %v9825_v39 = vand.u32 4294901760, %v9824_v30  ;;  %v2172_v42 = vld [vmem:[%s9383_s4 + $0x278] sm:$0xff] }
 0x1d4   :  { %3738 = vmatpush.msrb.mxu2 %v9823_v51  ;;  %3803 = vmatpush.msrb.mxu3 %v7346_v25 }
 0x1d5   :  { %3422 = vmatmul.f32.gmra.mxu1 %v7285_v57  ;;  %3592 = vmatmul.f32.gmra.mxu3 %v7637_v60  ;;  %v9826_v57 = vand.u32 4294901760, %v7403_v22 }
 0x1d6   :  { %3619 = vmatpush.msrb.mxu0 %v9824_v30  ;;  %3669 = vmatpush.msrb.mxu1 %v7266_v12  ;;  %v7709_v12 = vpop.f32.mrf.mxu0 }
 0x1d7   :  { %3742 = vmatpush.msrb.mxu2 %v9825_v39  ;;  %3805 = vmatpush.msrb.mxu3 %v7369_v15 }
 0x1d8   :  { %3381 = vmatmul.f32.gmra.mxu0 %v7381_v19  ;;  %3483 = vmatmul.f32.gmra.mxu2 %v3482_v6  ;;  %v7790_v6 = vand.u32 4294901760, %v2168_v2 }
 0x1d9   :  { %3622 = vmatpush.msrb.mxu0 %v7403_v22  ;;  %3671 = vmatpush.msrb.mxu1 %v7301_v40  ;;  %v7719_v40 = vpop.f32.mrf.mxu3  ;;  %v9828_v22 = vand.u32 4294901760, %v7446_v49  ;;  %v7731_v35 = vpop.f32.mrf.mxu1 }
 0x1da   :  { %3746 = vmatpush.msrb.mxu2 %v9826_v57  ;;  %3807 = vmatpush.msrb.mxu3 %v7396_v1  ;;  %v9835_v57 = vld [vmem:[#allocation59_spill] sm:$0xff] }
 0x1db   :  { %3625 = vmatpush.msrb.mxu0 %v7429_v61  ;;  %3673 = vmatpush.msrb.mxu1 %v7327_v52  ;;  %v7726_v52 = vand.u32 4294901760, %v2172_v42  ;;  %v2171_v61 = vld [vmem:[%s9383_s4 + $0x270] sm:$0xff] }
 0x1dc   :  { %3750 = vmatpush.msrb.mxu2 %v9827_v16  ;;  %3809 = vmatpush.msrb.mxu3 %v7415_v62  ;;  %v7745_v41 = vand.u32 4294901760, %v2171_v61 }
 0x1dd   :  { %3628 = vmatpush.msrb.mxu0 %v7446_v49  ;;  %3675 = vmatpush.msrb.mxu1 %v7346_v25  ;;  %v9829_v25 = vand.u32 4294901760, %v7462_v26  ;;  %v7738_v49 = vpop.f32.mrf.mxu2 }
 0x1de   :  { %3754 = vmatpush.msrb.mxu2 %v9828_v22  ;;  %3811 = vmatpush.msrb.mxu3 %v7431_v11 }
 0x1df   :  { %3426 = vmatmul.f32.gmra.mxu1 %v7381_v19  ;;  %3631 = vmatpush.msrb.mxu0 %v7462_v26  ;;  %v2169_v19 = vld [vmem:[%s9383_s4 + $0x260] sm:$0xff]  ;;  %v7758_v26 = vand.u32 4294901760, %v2170_v63 }
 0x1e0   :  { %3677 = vmatpush.msrb.mxu1 %v7369_v15  ;;  %3758 = vmatpush.msrb.mxu2 %v9829_v25  ;;  %v7751_v15 = vsub.f32 %v2172_v42, %v7726_v52 }
 0x1e1   :  { %3813 = vmatpush.msrb.mxu3 %v7454_v56  ;;  %3634 = vmatpush.msrb.mxu0 %v7491_v20  ;;  %v7768_v20 = vsub.f32 %v2171_v61, %v7745_v41  ;;  %v7786_v30 = vsub.f32 %v2170_v63, %v7758_v26  ;;  %v2165_v61 = vld [vmem:[%s9383_s4 + $0x240] sm:$0xff] }
 0x1e2   :  { %3679 = vmatpush.msrb.mxu1 %v7396_v1  ;;  %3762 = vmatpush.msrb.mxu2 %v3561_v13  ;;  %v7763_v1 = vpop.f32.mrf.mxu0  ;;  %v7770_v13 = vand.u32 4294901760, %v2169_v19 }
 0x1e3   :  { %3815 = vmatpush.msrb.mxu3 %v7473_v27  ;;  %3637 = vmatpush.msrb.mxu0 %v7508_v28  ;;  %9830 = vst [vmem:[#allocation21_spill] sm:$0xff] %v7763_v1  ;;  %v7780_v28 = vpop.f32.mrf.mxu3  ;;  %v9439_v39 = vand.u32 4294901760, %v7768_v20  ;;  %v9441_v22 = vand.u32 4294901760, %v7786_v30 }
 0x1e4   :  { %3681 = vmatpush.msrb.mxu1 %v7415_v62  ;;  %3766 = vmatpush.msrb.mxu2 %v3567_v29  ;;  %v9832_v62 = vld [vmem:[#allocation58_spill] sm:$0xff]  ;;  %9833 = vst [vmem:[#allocation15_spill] sm:$0xff] %v7780_v28  ;;  %v9440_v29 = vand.u32 4294901760, %v7751_v15 }
 0x1e5   :  { %3817 = vmatpush.msrb.mxu3 %v7493_v45  ;;  %3640 = vmatpush.msrb.mxu0 %v7521_v0  ;;  %v1165_v51 = vadd.f32 %v9832_v62, %v9831_v9  ;;  %v7795_v0 = vpop.f32.mrf.mxu1  ;;  %v7810_v16 = vpop.f32.mrf.mxu2  ;;  %v3899_v25 = vsub.f32 %v7768_v20, %v9439_v39 }
 0x1e6   :  { %3683 = vmatpush.msrb.mxu1 %v7431_v11  ;;  %3770 = vmatpush.msrb.mxu2 %v3573_v8  ;;  %v2167_v11 = vld [vmem:[%s9383_s4 + $0x250] sm:$0xff]  ;;  %9834 = vst [vmem:[#allocation16_spill] sm:$0xff] %v7795_v0  ;;  %v7801_v8 = vsub.f32 %v2169_v19, %v7770_v13  ;;  %v3893_v42 = vsub.f32 %v7751_v15, %v9440_v29 }
 0x1e7   :  { %3819 = vmatpush.msrb.mxu3 %v7510_v10  ;;  %3643 = vmatpush.msrb.mxu0 %v7533_v23  ;;  %9836 = vst [vmem:[#allocation23_spill] sm:$0xff] %v7810_v16  ;;  %v2166_v23 = vld [vmem:[%s9383_s4 + $0x248] sm:$0xff] }
 0x1e8   :  { %3821 = vmatmul.f32.vlgmr.msrb.gmra.mxu3 %v7537_v33  ;;  %3685 = vmatpush.msrb.mxu1 %v7454_v56  ;;  %v1203_v56 = vadd.f32 %v9835_v57, %v1165_v51  ;;  %v7833_v63 = vand.u32 4294901760, %v2166_v23  ;;  %v9444_v19 = vand.u32 4294901760, %v7801_v8  ;;  %v2164_v51 = vld [vmem:[%s9383_s4 + $0x238] sm:$0xff]  ;;  %v3905_v57 = vsub.f32 %v7786_v30, %v9441_v22 }
 0x1e9   :  { %4064 = vmatpush.msra.mxu3 %v7726_v52  ;;  %3774 = vmatpush.msrb.mxu2 %v3579_v4  ;;  %v7817_v4 = vand.u32 4294901760, %v2167_v11  ;;  %v3900_v22 = vand.u32 4294901760, %v3899_v25  ;;  %v9845_v25 = vld [vmem:[#allocation70_spill] sm:$0xff] }
 0x1ea   :  { %3646 = vmatmul.f32.vlgmr.msrb.gmra.mxu0 %v7565_v3  ;;  %3776 = vmatmul.f32.vlgmr.msrb.gmra.mxu2 %v7537_v33  ;;  %v7823_v33 = vsub.f32 %v2168_v2, %v7790_v6  ;;  %9837 = vst [vmem:[#allocation80_spill] sm:$0xff] %v7833_v63  ;;  %v3894_v2 = vand.u32 4294901760, %v3893_v42  ;;  %v7839_v62 = vpop.f32.mrf.mxu0  ;;  %v1169_v3 = vadd.f32 %v9844_v18, %v9843_v48  ;;  %v2162_v18 = vld [vmem:[%s9383_s4 + $0x228] sm:$0xff]  ;;  %v31_v48 = vld [vmem:[%s9381_s2 + $0x20] sm:$0xff] }
 0x1eb   :  { %3834 = vmatpush.msra.mxu0 %v7726_v52  ;;  %4001 = vmatpush.msra.mxu2 %v7751_v15  ;;  %v7857_v39 = vpop.f32.mrf.mxu3 }
 0x1ec   :  { %4066 = vmatpush.msra.mxu3 %v7745_v41  ;;  %3687 = vmatpush.msrb.mxu1 %v7473_v27  ;;  %v9838_v27 = vld [vmem:[#allocation61_spill] sm:$0xff]  ;;  %9841 = vst [vmem:[#allocation82_spill] sm:$0xff] %v7857_v39  ;;  %v1208_v38 = vadd.f32 %v9849_v32, %v1169_v3 }
 0x1ed   :  { %3836 = vmatpush.msra.mxu0 %v7745_v41  ;;  %4004 = vmatpush.msra.mxu2 %v7768_v20  ;;  %v1240_v9 = vadd.f32 %v9838_v27, %v1203_v56  ;;  %v7850_v56 = vsub.f32 %v2167_v11, %v7817_v4  ;;  %v7852_v27 = vand.u32 4294901760, %v2165_v61  ;;  %v3911_v11 = vsub.f32 %v7801_v8, %v9444_v19 }
 0x1ee   :  { %4068 = vmatpush.msra.mxu3 %v7758_v26  ;;  %3689 = vmatpush.msrb.mxu1 %v7493_v45  ;;  %v9840_v45 = vld [vmem:[#allocation68_spill] sm:$0xff] }
 0x1ef   :  { %3838 = vmatpush.msra.mxu0 %v7758_v26  ;;  %4007 = vmatpush.msra.mxu2 %v7786_v30  ;;  %9839 = vst [vmem:[#allocation78_spill] sm:$0xff] %v7852_v27  ;;  %v1285_v42 = vadd.f32 %v9840_v45, %v1240_v9  ;;  %v7867_v9 = vsub.f32 %v2166_v23, %v7833_v63  ;;  %v7869_v45 = vand.u32 4294901760, %v2164_v51  ;;  %v3906_v23 = vand.u32 4294901760, %v3905_v57 }
 0x1f0   :  { %4070 = vmatpush.msra.mxu3 %v7770_v13  ;;  %3691 = vmatpush.msrb.mxu1 %v7510_v10  ;;  %v2163_v10 = vld [vmem:[%s9383_s4 + $0x230] sm:$0xff]  ;;  %v7883_v19 = vsub.f32 %v2165_v61, %v7852_v27 }
 0x1f1   :  { %3695 = vmatmul.f32.vlgmr.msrb.gmra.mxu1 %v3464_v54  ;;  %3825 = vmatmul.f32.gmra.mxu3 %v7596_v37  ;;  %9842 = vst [vmem:[#allocation18_spill] sm:$0xff] %v7869_v45  ;;  %v7877_v54 = vpop.f32.mrf.mxu1  ;;  %v1318_v29 = vadd.f32 %v9845_v25, %v1285_v42  ;;  %v7897_v61 = vand.u32 4294901760, %v2163_v10  ;;  %v7899_v42 = vpop.f32.mrf.mxu2  ;;  %v3912_v25 = vand.u32 4294901760, %v3911_v11  ;;  %v7903_v17 = vsub.f32 %v2164_v51, %v7869_v45 }
 0x1f2   :  { %3840 = vmatpush.msra.mxu0 %v7770_v13  ;;  %3895 = vmatpush.msra.mxu1 %v3894_v2  ;;  %v9846_v2 = vand.u32 4294901760, %v7823_v33  ;;  %9848 = vst [vmem:[#allocation58_spill] sm:$0xff] %v7899_v42  ;;  %v9851_v11 = vand.u32 4294901760, %v7850_v56  ;;  %v7927_v43 = vpop.f32.mrf.mxu0 }
 0x1f3   :  { %4010 = vmatpush.msra.mxu2 %v7801_v8  ;;  %4072 = vmatpush.msra.mxu3 %v7790_v6  ;;  %9847 = vst [vmem:[#allocation56_spill] sm:$0xff] %v7897_v61  ;;  %v2073_v51 = vmul.f32 %v1318_v29, %v31_v48  ;;  %v7925_v36 = vsub.f32 %v2163_v10, %v7897_v61  ;;  %v9854_v48 = vand.u32 4294901760, %v7867_v9  ;;  %v9856_v10 = vld [vmem:[#allocation65_spill] sm:$0xff]  ;;  %v7944_v34 = vpop.f32.mrf.mxu3  ;;  %v9866_v16 = vand.u32 4294901760, %v7903_v17 }
 0x1f4   :  { %3651 = vmatmul.f32.gmra.mxu0 %v7618_v59  ;;  %3780 = vmatmul.f32.gmra.mxu2 %v7596_v37  ;;  %v3917_v57 = vsub.f32 %v7823_v33, %v9846_v2  ;;  %v2161_v37 = vld [vmem:[%s9383_s4 + $0x220] sm:$0xff]  ;;  %v7912_v2 = vand.u32 4294901760, %v2162_v18  ;;  %v3923_v55 = vsub.f32 %v7850_v56, %v9851_v11  ;;  %9852 = vst [vmem:[#allocation61_spill] sm:$0xff] %v7927_v43 }
 0x1f5   :  { %3842 = vmatpush.msra.mxu0 %v7790_v6  ;;  %3901 = vmatpush.msra.mxu1 %v3900_v22  ;;  %v2160_v22 = vld [vmem:[%s9383_s4 + $0x218] sm:$0xff]  ;;  %v7929_v29 = vand.u32 4294901760, %v2161_v37  ;;  %v3929_v11 = vsub.f32 %v7867_v9, %v9854_v48  ;;  %v1246_v46 = vadd.f32 %v9856_v10, %v1208_v38  ;;  %9857 = vst [vmem:[#allocation62_spill] sm:$0xff] %v7944_v34  ;;  %v7952_v48 = vand.u32 4294901760, %v2073_v51  ;;  %v2157_v34 = vld [vmem:[%s9383_s4 + $0x200] sm:$0xff] }
 0x1f6   :  { %4013 = vmatpush.msra.mxu2 %v7823_v33  ;;  %4074 = vmatpush.msra.mxu3 %v7817_v4  ;;  %9850 = vst [vmem:[#allocation59_spill] sm:$0xff] %v7912_v2  ;;  %v3918_v3 = vand.u32 4294901760, %v3917_v57  ;;  %v7939_v32 = vand.u32 4294901760, %v2160_v22  ;;  %v7947_v44 = vsub.f32 %v2162_v18, %v7912_v2  ;;  %v9858_v57 = vand.u32 4294901760, %v7618_v59  ;;  %v2159_v18 = vld [vmem:[%s9383_s4 + $0x210] sm:$0xff] }
 0x1f7   :  { %3844 = vmatpush.msra.mxu0 %v7817_v4  ;;  %3907 = vmatpush.msra.mxu1 %v3906_v23  ;;  %9853 = vst [vmem:[#allocation68_spill] sm:$0xff] %v7929_v29  ;;  %v2188_v23 = vld [vmem:[%s9383_s4 + $0x2f8] sm:$0xff]  ;;  %v3924_v38 = vand.u32 4294901760, %v3923_v55  ;;  %v9859_v10 = vand.u32 4294901760, %v7883_v19  ;;  %v1289_v39 = vadd.f32 %v9863_v53, %v1246_v46  ;;  %v7970_v59 = vsub.f32 %v2161_v37, %v7929_v29  ;;  %v2158_v53 = vld [vmem:[%s9383_s4 + $0x208] sm:$0xff] }
 0x1f8   :  { %4016 = vmatpush.msra.mxu2 %v7850_v56  ;;  %4076 = vmatpush.msra.mxu3 %v7833_v63  ;;  %9855 = vst [vmem:[#allocation60_spill] sm:$0xff] %v7939_v32  ;;  %v7963_v14 = vand.u32 4294901760, %v2188_v23  ;;  %v3941_v21 = vsub.f32 %v7903_v17, %v9866_v16  ;;  %v7981_v46 = vsub.f32 %v2160_v22, %v7939_v32  ;;  %v2186_v37 = vld [vmem:[%s9383_s4 + $0x2e8] sm:$0xff]  ;;  %v9870_v55 = vld [vmem:[#allocation43_spill] sm:$0xff]  ;;  %v2185_v22 = vld [vmem:[%s9383_s4 + $0x2e0] sm:$0xff] }
 0x1f9   :  { %3846 = vmatpush.msra.mxu0 %v7833_v63  ;;  %3913 = vmatpush.msra.mxu1 %v3912_v25  ;;  %v2187_v25 = vld [vmem:[%s9383_s4 + $0x2f0] sm:$0xff]  ;;  %v3935_v50 = vsub.f32 %v7883_v19, %v9859_v10  ;;  %9864 = vst [vmem:[#allocation63_spill] sm:$0xff] %v7970_v59  ;;  %v3930_v10 = vand.u32 4294901760, %v3929_v11  ;;  %v7995_v16 = vpop.f32.mrf.mxu2  ;;  %v7999_v11 = vsub.f32 %v2073_v51, %v7952_v48  ;;  %v39_v51 = vld [vmem:[%s9381_s2 + $0x60] sm:$0xff] }
 0x1fa   :  { %4019 = vmatpush.msra.mxu2 %v7867_v9  ;;  %4078 = vmatpush.msra.mxu3 %v7852_v27  ;;  %9860 = vst [vmem:[#allocation70_spill] sm:$0xff] %v7963_v14  ;;  %v7986_v58 = vand.u32 4294901760, %v2187_v25  ;;  %v3942_v1 = vand.u32 4294901760, %v3941_v21  ;;  %v8043_v21 = vand.u32 4294901760, %v2185_v22 }
 0x1fb   :  { %3701 = vmatmul.f32.gmra.mxu1 %v9858_v57  ;;  %3829 = vmatmul.f32.gmra.mxu3 %v7637_v60  ;;  %v7973_v57 = vpop.f32.mrf.mxu1  ;;  %9867 = vst [vmem:[#allocation64_spill] sm:$0xff] %v7981_v46  ;;  %v3936_v43 = vand.u32 4294901760, %v3935_v50  ;;  %v9872_v50 = vand.u32 4294901760, %v7925_v36 }
 0x1fc   :  { %3848 = vmatpush.msra.mxu0 %v7852_v27  ;;  %3919 = vmatpush.msra.mxu1 %v3918_v3  ;;  %9865 = vst [vmem:[#allocation65_spill] sm:$0xff] %v7973_v57  ;;  %v7993_v3 = vand.u32 4294901760, %v2159_v18  ;;  %v1322_v57 = vadd.f32 %v9870_v55, %v1289_v39  ;;  %v8023_v55 = vand.u32 4294901760, %v2186_v37  ;;  %v8029_v28 = vsub.f32 %v2187_v25, %v7986_v58  ;;  %v2184_v25 = vld [vmem:[%s9383_s4 + $0x2d8] sm:$0xff] }
 0x1fd   :  { %4022 = vmatpush.msra.mxu2 %v7883_v19  ;;  %4080 = vmatpush.msra.mxu3 %v7869_v45  ;;  %9869 = vst [vmem:[#allocation40_spill] sm:$0xff] %v7995_v16  ;;  %v3947_v39 = vsub.f32 %v7925_v36, %v9872_v50  ;;  %v9874_v16 = vld [vmem:[#allocation67_spill] sm:$0xff]  ;;  %v9876_v50 = vand.u32 4294901760, %v7947_v44 }
 0x1fe   :  { %3656 = vmatmul.f32.gmra.mxu0 %v7657_v5  ;;  %3784 = vmatmul.f32.gmra.mxu2 %v7637_v60  ;;  %9868 = vst [vmem:[#allocation66_spill] sm:$0xff] %v7993_v3  ;;  %v8007_v60 = vsub.f32 %v2188_v23, %v7963_v14  ;;  %v1213_v0 = vadd.f32 %v9874_v16, %v1173_v31  ;;  %v8039_v31 = vpop.f32.mrf.mxu0  ;;  %v9886_v16 = vand.u32 4294901760, %v7981_v46 }
 0x1ff   :  { %3850 = vmatpush.msra.mxu0 %v7869_v45  ;;  %3925 = vmatpush.msra.mxu1 %v3924_v38  ;;  %v8020_v38 = vand.u32 4294901760, %v2158_v53  ;;  %9875 = vst [vmem:[#allocation67_spill] sm:$0xff] %v8029_v28  ;;  %v3953_v23 = vsub.f32 %v7947_v44, %v9876_v50  ;;  %v8037_v27 = vsub.f32 %v2159_v18, %v7993_v3  ;;  %v8053_v18 = vpop.f32.mrf.mxu3  ;;  %v9885_v50 = vand.u32 4294901760, %v7657_v5 }
 0x200   :  { %9871 = vst [vmem:[#allocation43_spill] sm:$0xff] %v8007_v60  ;;  %4025 = vmatpush.msra.mxu2 %v7903_v17  ;;  %4082 = vmatpush.msra.mxu3 %v7897_v61  ;;  %v2081_v45 = vmul.f32 %v1322_v57, %v39_v51  ;;  %v8062_v57 = vsub.f32 %v2186_v37, %v8023_v55 }
 0x201   :  { %9873 = vst [vmem:[#allocation85_spill] sm:$0xff] %v8020_v38  ;;  %3852 = vmatpush.msra.mxu0 %v7897_v61  ;;  %3931 = vmatpush.msra.mxu1 %v3930_v10  ;;  %v8041_v10 = vand.u32 4294901760, %v2157_v34  ;;  %v9881_v61 = vand.u32 4294901760, %v7970_v59  ;;  %v8059_v63 = vsub.f32 %v2158_v53, %v8020_v38  ;;  %v2183_v53 = vld [vmem:[%s9383_s4 + $0x2d0] sm:$0xff]  ;;  %v8102_v37 = vpop.f32.mrf.mxu2 }
 0x202   :  { %4028 = vmatpush.msra.mxu2 %v7925_v36  ;;  %4084 = vmatpush.msra.mxu3 %v7912_v2  ;;  %9877 = vst [vmem:[#allocation86_spill] sm:$0xff] %v8037_v27 }
 0x203   :  { %9878 = vst [vmem:[#allocation87_spill] sm:$0xff] %v8039_v31  ;;  %3854 = vmatpush.msra.mxu0 %v7912_v2  ;;  %3937 = vmatpush.msra.mxu1 %v3936_v43  ;;  %v3948_v31 = vand.u32 4294901760, %v3947_v39  ;;  %v3959_v42 = vsub.f32 %v7970_v59, %v9881_v61  ;;  %v9884_v43 = vld [vmem:[#allocation69_spill] sm:$0xff]  ;;  %v3965_v39 = vsub.f32 %v7981_v46, %v9886_v16  ;;  %v8072_v61 = vand.u32 4294901760, %v2184_v25 }
 0x204   :  { %9879 = vst [vmem:[#allocation88_spill] sm:$0xff] %v8041_v10  ;;  %4031 = vmatpush.msra.mxu2 %v7947_v44  ;;  %4086 = vmatpush.msra.mxu3 %v7929_v29  ;;  %v1252_v51 = vadd.f32 %v9884_v43, %v1213_v0  ;;  %v3954_v0 = vand.u32 4294901760, %v3953_v23  ;;  %v8079_v5 = vsub.f32 %v2157_v34, %v8041_v10  ;;  %v9890_v43 = vand.u32 4294901760, %v7999_v11 }
 0x205   :  { %9880 = vst [vmem:[#allocation89_spill] sm:$0xff] %v8053_v18  ;;  %3707 = vmatmul.f32.gmra.mxu1 %v9885_v50  ;;  %3856 = vmatpush.msra.mxu0 %v7929_v29  ;;  %v8082_v50 = vpop.f32.mrf.mxu1  ;;  %v8085_v16 = vsub.f32 %v2185_v22, %v8043_v21  ;;  %v8090_v29 = vand.u32 4294901760, %v2081_v45  ;;  %v9892_v34 = vand.u32 4294901760, %v8007_v60  ;;  %v2182_v22 = vld [vmem:[%s9383_s4 + $0x2c8] sm:$0xff] }
 0x206   :  { %9882 = vst [vmem:[#allocation90_spill] sm:$0xff] %v8059_v63  ;;  %3943 = vmatpush.msra.mxu1 %v3942_v1  ;;  %4034 = vmatpush.msra.mxu2 %v7970_v59  ;;  %v3868_v18 = vsub.f32 %v7999_v11, %v9890_v43  ;;  %v9891_v1 = vld [vmem:[#allocation5_spill] sm:$0xff]  ;;  %v3960_v43 = vand.u32 4294901760, %v3959_v42  ;;  %v8115_v42 = vsub.f32 %v2184_v25, %v8072_v61 }
 0x207   :  { %9883 = vst [vmem:[#allocation91_spill] sm:$0xff] %v8062_v57  ;;  %v1293_v2 = vadd.f32 %v9891_v1, %v1252_v51  ;;  %4088 = vmatpush.msra.mxu3 %v7939_v32  ;;  %3858 = vmatpush.msra.mxu0 %v7939_v32  ;;  %v4296_v23 = vsub.f32 %v8007_v60, %v9892_v34  ;;  %v9894_v32 = vld [vmem:[#allocation37_spill] sm:$0xff]  ;;  %v3966_v34 = vand.u32 4294901760, %v3965_v39  ;;  %v8129_v51 = vand.u32 4294901760, %v2182_v22 }
 0x208   :  { %9887 = vst [vmem:[#allocation69_spill] sm:$0xff] %v8079_v5  ;;  %3949 = vmatpush.msra.mxu1 %v3948_v31  ;;  %4037 = vmatpush.msra.mxu2 %v7981_v46  ;;  %v9895_v31 = vand.u32 4294901760, %v8029_v28  ;;  %v2181_v1 = vld [vmem:[%s9383_s4 + $0x2c0] sm:$0xff] }
 0x209   :  { %9888 = vst [vmem:[#allocation92_spill] sm:$0xff] %v8082_v50  ;;  %v8106_v50 = vand.u32 4294901760, %v2183_v53  ;;  %v1326_v59 = vadd.f32 %v9894_v32, %v1293_v2  ;;  %4090 = vmatpush.msra.mxu3 %v7993_v3  ;;  %3860 = vmatpush.msra.mxu0 %v7993_v3  ;;  %v47_v2 = vld [vmem:[%s9381_s2 + $0xa0] sm:$0xff]  ;;  %v9897_v32 = vand.u32 4294901760, %v8037_v27  ;;  %v8143_v3 = vpop.f32.mrf.mxu0 }
 0x20a   :  { %9889 = vst [vmem:[#allocation93_spill] sm:$0xff] %v8085_v16  ;;  %v4302_v60 = vsub.f32 %v8029_v28, %v9895_v31  ;;  %3955 = vmatpush.msra.mxu1 %v3954_v0  ;;  %4040 = vmatpush.msra.mxu2 %v8037_v27  ;;  %v4297_v0 = vand.u32 4294901760, %v4296_v23  ;;  %v9898_v28 = vand.u32 4294901760, %v8062_v57  ;;  %v9899_v31 = vand.u32 4294901760, %v8059_v63  ;;  %v2180_v23 = vld [vmem:[%s9383_s4 + $0x2b8] sm:$0xff] }
 0x20b   :  { %9893 = vst [vmem:[#allocation5_spill] sm:$0xff] %v8102_v37  ;;  %v3971_v39 = vsub.f32 %v8037_v27, %v9897_v32  ;;  %v8132_v37 = vsub.f32 %v2081_v45, %v8090_v29  ;;  %4092 = vmatpush.msra.mxu3 %v8020_v38  ;;  %3862 = vmatpush.msra.mxu0 %v8020_v38  ;;  %v8148_v27 = vand.u32 4294901760, %v2181_v1 }
 0x20c   :  { %9896 = vst [vmem:[#allocation37_spill] sm:$0xff] %v8115_v42  ;;  %3961 = vmatpush.msra.mxu1 %v3960_v43  ;;  %4043 = vmatpush.msra.mxu2 %v8059_v63  ;;  %v4308_v32 = vsub.f32 %v8062_v57, %v9898_v28  ;;  %v3977_v25 = vsub.f32 %v8059_v63, %v9899_v31  ;;  %v3869_v43 = vand.u32 4294901760, %v3868_v18  ;;  %v4303_v28 = vand.u32 4294901760, %v4302_v60  ;;  %v9907_v60 = vld [vmem:[#allocation29_spill] sm:$0xff]  ;;  %v9908_v31 = vld [vmem:[#allocation30_spill] sm:$0xff] }
 0x20d   :  { %9900 = vst [vmem:[#allocation94_spill] sm:$0xff] %v8143_v3  ;;  %v8146_v45 = vsub.f32 %v2183_v53, %v8106_v50  ;;  %v2089_v38 = vmul.f32 %v1326_v59, %v47_v2  ;;  %4094 = vmatpush.msra.mxu3 %v8041_v10  ;;  %3864 = vmatpush.msra.mxu0 %v8041_v10  ;;  %v9902_v57 = vand.u32 4294901760, %v7999_v11  ;;  %v8158_v53 = vpop.f32.mrf.mxu3  ;;  %v3972_v63 = vand.u32 4294901760, %v3971_v39 }
 0x20e   :  { %3967 = vmatpush.msra.mxu1 %v3966_v34  ;;  %9903 = vst [vmem:[#allocation96_spill] sm:$0xff] %v8158_v53  ;;  %v9904_v3 = vand.u32 4294901760, %v8085_v16  ;;  %v9905_v59 = vand.u32 4294901760, %v8079_v5  ;;  %v8167_v2 = vsub.f32 %v2182_v22, %v8129_v51  ;;  %v1412_v10 = vadd.f32 %v9908_v31, %v9907_v60  ;;  %4046 = vmatpush.msra.mxu2 %v8079_v5  ;;  %v8180_v53 = vpop.f32.mrf.mxu1  ;;  %v9910_v60 = vld [vmem:[#allocation44_spill] sm:$0xff] }
 0x20f   :  { %9901 = vst [vmem:[#allocation95_spill] sm:$0xff] %v8146_v45  ;;  %4098 = vmatmul.f32.vlgmr.msra.gmra.mxu3 %v9902_v57  ;;  %v3875_v57 = vand.u32 4294901760, %v8132_v37  ;;  %v8173_v34 = vand.u32 4294901760, %v2180_v23  ;;  %3870 = vmatmul.f32.vlgmr.msra.gmra.mxu0 %v3869_v43  ;;  %v4309_v39 = vand.u32 4294901760, %v4308_v32  ;;  %v3978_v22 = vand.u32 4294901760, %v3977_v25  ;;  %v2178_v32 = vld [vmem:[%s9383_s4 + $0x2a8] sm:$0xff] }
 0x210   :  { %v4314_v46 = vsub.f32 %v8085_v16, %v9904_v3  ;;  %v3983_v18 = vsub.f32 %v8079_v5, %v9905_v59  ;;  %9906 = vst [vmem:[#allocation97_spill] sm:$0xff] %v8167_v2  ;;  %4298 = vmatpush.msrb.mxu3 %v4297_v0  ;;  %v2179_v3 = vld [vmem:[%s9383_s4 + $0x2b0] sm:$0xff]  ;;  %4049 = vmatmul.f32.vlgmr.msra.gmra.mxu2 %v7999_v11  ;;  %v8185_v31 = vand.u32 4294901760, %v2089_v38  ;;  %v9911_v5 = vand.u32 4294901760, %v7751_v15  ;;  %v8197_v59 = vpop.f32.mrf.mxu2 }
 0x211   :  { %v8183_v0 = vsub.f32 %v2181_v1, %v8148_v27  ;;  %v1450_v16 = vadd.f32 %v9910_v60, %v1412_v10  ;;  %4237 = vmatpush.msrb.mxu2 %v7963_v14  ;;  %v9912_v11 = vand.u32 4294901760, %v8115_v42  ;;  %3973 = vmatpush.msra.mxu1 %v3972_v63  ;;  %v9470_v10 = vand.u32 4294901760, %v8167_v2  ;;  %v2177_v63 = vld [vmem:[%s9383_s4 + $0x2a0] sm:$0xff] }
 0x212   :  { %4117 = vmatpush.msrb.mxu0 %v9911_v5  ;;  %4304 = vmatpush.msrb.mxu3 %v4303_v28  ;;  %v4315_v1 = vand.u32 4294901760, %v4314_v46  ;;  %v3984_v43 = vand.u32 4294901760, %v3983_v18  ;;  %v8200_v15 = vand.u32 4294901760, %v2179_v3  ;;  %v9913_v5 = vld [vmem:[#allocation47_spill] sm:$0xff]  ;;  %v9914_v14 = vand.u32 4294901760, %v7768_v20 }
 0x213   :  { %9909 = vst [vmem:[#allocation29_spill] sm:$0xff] %v8183_v0  ;;  %v4320_v25 = vsub.f32 %v8115_v42, %v9912_v11  ;;  %v1487_v60 = vadd.f32 %v9913_v5, %v1450_v16  ;;  %4239 = vmatpush.msrb.mxu2 %v7986_v58  ;;  %v8207_v11 = vsub.f32 %v2180_v23, %v8173_v34  ;;  %v9915_v28 = vand.u32 4294901760, %v8146_v45 }
 0x214   :  { %4121 = vmatpush.msrb.mxu0 %v9914_v14  ;;  %4310 = vmatpush.msrb.mxu3 %v4309_v39  ;;  %v3876_v46 = vsub.f32 %v8132_v37, %v3875_v57  ;;  %v8217_v14 = vand.u32 4294901760, %v2178_v32  ;;  %v9916_v18 = vand.u32 4294901760, %v7786_v30  ;;  %v8223_v5 = vsub.f32 %v2089_v38, %v8185_v31  ;;  %v2176_v30 = vld [vmem:[%s9383_s4 + $0x298] sm:$0xff] }
 0x215   :  { %3979 = vmatpush.msra.mxu1 %v3978_v22  ;;  %v4326_v16 = vsub.f32 %v8146_v45, %v9915_v28  ;;  %4241 = vmatpush.msrb.mxu2 %v8023_v55  ;;  %v4321_v23 = vand.u32 4294901760, %v4320_v25  ;;  %v4332_v39 = vsub.f32 %v8167_v2, %v9470_v10  ;;  %v8228_v22 = vpop.f32.mrf.mxu0  ;;  %v8231_v28 = vsub.f32 %v2179_v3, %v8200_v15  ;;  %v9917_v25 = vld [vmem:[#allocation46_spill] sm:$0xff]  ;;  %v8244_v3 = vpop.f32.mrf.mxu3 }
 0x216   :  { %4125 = vmatpush.msrb.mxu0 %v9916_v18  ;;  %4316 = vmatpush.msrb.mxu3 %v4315_v1  ;;  %v8233_v20 = vand.u32 4294901760, %v2177_v63  ;;  %v1532_v38 = vadd.f32 %v9917_v25, %v1487_v60  ;;  %v3877_v18 = vand.u32 4294901760, %v3876_v46  ;;  %v9919_v2 = vand.u32 4294901760, %v8183_v0  ;;  %v9920_v25 = vld [vmem:[#allocation32_spill] sm:$0xff]  ;;  %v8265_v1 = vpop.f32.mrf.mxu1 }
 0x217   :  { %3985 = vmatpush.msra.mxu1 %v3984_v43  ;;  %4104 = vmatmul.f32.gmra.mxu3 %v3875_v57  ;;  %v9918_v43 = vand.u32 4294901760, %v7801_v8  ;;  %v4327_v10 = vand.u32 4294901760, %v4326_v16  ;;  %v8250_v60 = vsub.f32 %v2178_v32, %v8217_v14  ;;  %v2175_v57 = vld [vmem:[%s9383_s4 + $0x290] sm:$0xff]  ;;  %v9921_v8 = vld [vmem:[#allocation36_spill] sm:$0xff]  ;;  %v8260_v46 = vand.u32 4294901760, %v2176_v30 }
 0x218   :  { %3987 = vmatmul.f32.vlgmr.msra.gmra.mxu1 %v7952_v48  ;;  %v4338_v45 = vsub.f32 %v8183_v0, %v9919_v2  ;;  %4243 = vmatpush.msrb.mxu2 %v8043_v21  ;;  %v4333_v2 = vand.u32 4294901760, %v4332_v39  ;;  %v3883_v32 = vand.u32 4294901760, %v8223_v5  ;;  %v8279_v39 = vand.u32 4294901760, %v2175_v57  ;;  %v9925_v16 = vld [vmem:[#allocation50_spill] sm:$0xff]  ;;  %v8284_v42 = vpop.f32.mrf.mxu2 }
 0x219   :  { %4129 = vmatpush.msrb.mxu0 %v9918_v43  ;;  %4192 = vmatpush.msrb.mxu1 %v7726_v52  ;;  %v1416_v43 = vadd.f32 %v9921_v8, %v9920_v25  ;;  %v2377_v52 = vadd.f32 %v7692_v47, %v7675_v24  ;;  %v8268_v25 = vsub.f32 %v2177_v63, %v8233_v20  ;;  %v2174_v24 = vld [vmem:[%s9383_s4 + $0x288] sm:$0xff]  ;;  %v9922_v47 = vand.u32 4294901760, %v7823_v33 }
 0x21a   :  { %4322 = vmatpush.msrb.mxu3 %v4321_v23  ;;  %3878 = vmatmul.f32.gmra.mxu0 %v3877_v18  ;;  %v9924_v18 = vld [vmem:[#allocation49_spill] sm:$0xff]  ;;  %v4339_v0 = vand.u32 4294901760, %v4338_v45  ;;  %v8298_v45 = vsub.f32 %v2176_v30, %v8260_v46  ;;  %v9928_v33 = vand.u32 4294901760, %v8231_v28 }
 0x21b   :  { %4054 = vmatmul.f32.gmra.mxu2 %v8132_v37  ;;  %4133 = vmatpush.msrb.mxu0 %v9922_v47  ;;  %v9923_v37 = vand.u32 4294901760, %v8207_v11  ;;  %v1565_v8 = vadd.f32 %v9924_v18, %v1532_v38  ;;  %v1455_v63 = vadd.f32 %v9925_v16, %v1416_v43  ;;  %v32_v47 = vld [vmem:[%s9381_s2 + $0x28] sm:$0xff]  ;;  %v2439_v38 = vadd.f32 %v7698_v7, %v2377_v52 }
 0x21c   :  { %4194 = vmatpush.msrb.mxu1 %v7745_v41  ;;  %4245 = vmatpush.msrb.mxu2 %v8072_v61  ;;  %v2173_v41 = vld [vmem:[%s9383_s4 + $0x280] sm:$0xff]  ;;  %v9926_v43 = vand.u32 4294901760, %v7850_v56  ;;  %v9927_v16 = vld [vmem:[#allocation54_spill] sm:$0xff]  ;;  %v3884_v18 = vsub.f32 %v8223_v5, %v3883_v32  ;;  %v4350_v7 = vsub.f32 %v8231_v28, %v9928_v33  ;;  %v9483_v56 = vand.u32 4294901760, %v8268_v25 }
 0x21d   :  { %v4344_v23 = vsub.f32 %v8207_v11, %v9923_v37  ;;  %4328 = vmatpush.msrb.mxu3 %v4327_v10  ;;  %v8300_v10 = vand.u32 4294901760, %v2174_v24  ;;  %v1493_v37 = vadd.f32 %v9927_v16, %v1455_v63  ;;  %v8313_v52 = vsub.f32 %v2175_v57, %v8279_v39  ;;  %v8321_v16 = vpop.f32.mrf.mxu0 }
 0x21e   :  { %4137 = vmatpush.msrb.mxu0 %v9926_v43  ;;  %4196 = vmatpush.msrb.mxu1 %v7758_v26  ;;  %v9929_v26 = vand.u32 4294901760, %v7867_v9  ;;  %v8315_v63 = vand.u32 4294901760, %v2173_v41  ;;  %v9930_v43 = vand.u32 4294901760, %v8250_v60  ;;  %v2488_v9 = vadd.f32 %v7719_v40, %v2439_v38  ;;  %v9933_v38 = vld [vmem:[#allocation39_spill] sm:$0xff] }
 0x21f   :  { %4247 = vmatpush.msrb.mxu2 %v8106_v50  ;;  %4334 = vmatpush.msrb.mxu3 %v4333_v2  ;;  %v4345_v30 = vand.u32 4294901760, %v4344_v23  ;;  %v2074_v2 = vmul.f32 %v1565_v8, %v32_v47  ;;  %v8327_v57 = vsub.f32 %v2174_v24, %v8300_v10  ;;  %v9931_v23 = vld [vmem:[#allocation51_spill] sm:$0xff]  ;;  %v8333_v47 = vpop.f32.mrf.mxu3  ;;  %v4362_v40 = vsub.f32 %v8268_v25, %v9483_v56  ;;  %v9956_v56 = vld [vmem:[#allocation65_spill] sm:$0xff] }
 0x220   :  { %4141 = vmatpush.msrb.mxu0 %v9929_v26  ;;  %4198 = vmatpush.msrb.mxu1 %v7770_v13  ;;  %v4356_v33 = vsub.f32 %v8250_v60, %v9930_v43  ;;  %v9482_v13 = vand.u32 4294901760, %v8298_v45  ;;  %v1536_v8 = vadd.f32 %v9931_v23, %v1493_v37  ;;  %v3885_v26 = vand.u32 4294901760, %v3884_v18  ;;  %v9934_v37 = vld [vmem:[#allocation6_spill] sm:$0xff] }
 0x221   :  { %4249 = vmatpush.msrb.mxu2 %v8129_v51  ;;  %4340 = vmatpush.msrb.mxu3 %v4339_v0  ;;  %v9932_v0 = vand.u32 4294901760, %v7883_v19  ;;  %v4351_v43 = vand.u32 4294901760, %v4350_v7  ;;  %v2569_v24 = vadd.f32 %v7839_v62, %v2488_v9  ;;  %v9481_v19 = vand.u32 4294901760, %v8313_v52  ;;  %v9936_v9 = vld [vmem:[#allocation7_spill] sm:$0xff] }
 0x222   :  { %3991 = vmatmul.f32.gmra.mxu1 %v8090_v29  ;;  %4110 = vmatmul.f32.gmra.mxu3 %v3883_v32  ;;  %v2381_v32 = vadd.f32 %v7731_v35, %v7709_v12  ;;  %v1420_v18 = vadd.f32 %v9934_v37, %v9933_v38  ;;  %v8348_v7 = vand.u32 4294901760, %v2074_v2  ;;  %v4357_v23 = vand.u32 4294901760, %v4356_v33  ;;  %v8351_v12 = vpop.f32.mrf.mxu1  ;;  %v9939_v38 = vld [vmem:[#allocation80_spill] sm:$0xff]  ;;  %v9940_v37 = vld [vmem:[#allocation71_spill] sm:$0xff] }
 0x223   :  { %4145 = vmatpush.msrb.mxu0 %v9932_v0  ;;  %4200 = vmatpush.msrb.mxu1 %v7790_v6  ;;  %v8344_v6 = vsub.f32 %v2173_v41, %v8315_v63  ;;  %v2614_v35 = vadd.f32 %v7877_v54, %v2569_v24  ;;  %v9935_v62 = vand.u32 4294901760, %v7903_v17  ;;  %v4368_v41 = vsub.f32 %v8298_v45, %v9482_v13  ;;  %v8364_v54 = vpop.f32.mrf.mxu2  ;;  %v40_v17 = vld [vmem:[%s9381_s2 + $0x68] sm:$0xff] }
 0x224   :  { %4251 = vmatpush.msrb.mxu2 %v8148_v27  ;;  %4346 = vmatpush.msrb.mxu3 %v4345_v30  ;;  %v9479_v30 = vand.u32 4294901760, %v8327_v57  ;;  %v1569_v0 = vadd.f32 %v9936_v9, %v1536_v8  ;;  %v4363_v33 = vand.u32 4294901760, %v4362_v40  ;;  %v9938_v24 = vand.u32 4294901760, %v7925_v36  ;;  %v9941_v36 = vld [vmem:[#allocation58_spill] sm:$0xff] }
 0x225   :  { %3886 = vmatmul.f32.gmra.mxu0 %v3885_v26  ;;  %4059 = vmatmul.f32.gmra.mxu2 %v8223_v5  ;;  %v9937_v26 = vld [vmem:[#allocation57_spill] sm:$0xff]  ;;  %v4374_v8 = vsub.f32 %v8313_v52, %v9481_v19  ;;  %v8378_v40 = vsub.f32 %v2074_v2, %v8348_v7  ;;  %v9943_v9 = vld [vmem:[#allocation78_spill] sm:$0xff] }
 0x226   :  { %4149 = vmatpush.msrb.mxu0 %v9935_v62  ;;  %4202 = vmatpush.msrb.mxu1 %v7817_v4  ;;  %v1460_v5 = vadd.f32 %v9937_v26, %v1420_v18  ;;  %v2444_v4 = vadd.f32 %v7738_v49, %v2381_v32  ;;  %v8382_v49 = vpop.f32.mrf.mxu0  ;;  %v2663_v32 = vadd.f32 %v9941_v36, %v2614_v35  ;;  %v9942_v62 = vand.u32 4294901760, %v7947_v44  ;;  %v9947_v36 = vld [vmem:[#allocation72_spill] sm:$0xff] }
 0x227   :  { %4253 = vmatpush.msrb.mxu2 %v8173_v34  ;;  %4352 = vmatpush.msrb.mxu3 %v4351_v43  ;;  %v9480_v43 = vand.u32 4294901760, %v8344_v6  ;;  %v4369_v26 = vand.u32 4294901760, %v4368_v41  ;;  %v4380_v2 = vsub.f32 %v8327_v57, %v9479_v30  ;;  %v4375_v44 = vand.u32 4294901760, %v4374_v8  ;;  %v9951_v8 = vld [vmem:[#allocation62_spill] sm:$0xff] }
 0x228   :  { %4153 = vmatpush.msrb.mxu0 %v9938_v24  ;;  %4204 = vmatpush.msrb.mxu1 %v9939_v38  ;;  %v1499_v18 = vadd.f32 %v9940_v37, %v1460_v5  ;;  %v2082_v24 = vmul.f32 %v1569_v0, %v40_v17  ;;  %v9944_v5 = vld [vmem:[#allocation15_spill] sm:$0xff]  ;;  %v9948_v0 = vld [vmem:[#allocation18_spill] sm:$0xff] }
 0x229   :  { %4255 = vmatpush.msrb.mxu2 %v8200_v15  ;;  %4358 = vmatpush.msrb.mxu3 %v4357_v23  ;;  %v2494_v23 = vadd.f32 %v9944_v5, %v2444_v4  ;;  %v9945_v38 = vld [vmem:[#allocation63_spill] sm:$0xff]  ;;  %v4386_v41 = vsub.f32 %v8344_v6, %v9480_v43  ;;  %v9949_v4 = vld [vmem:[#allocation21_spill] sm:$0xff]  ;;  %v9953_v43 = vld [vmem:[#allocation64_spill] sm:$0xff] }
 0x22a   :  { %4157 = vmatpush.msrb.mxu0 %v9942_v62  ;;  %4206 = vmatpush.msrb.mxu1 %v9943_v9  ;;  %v9946_v35 = vand.u32 4294901760, %v9945_v38  ;;  %v1540_v62 = vadd.f32 %v9947_v36, %v1499_v18  ;;  %v8405_v17 = vpop.f32.mrf.mxu1  ;;  %v9950_v9 = vld [vmem:[#allocation16_spill] sm:$0xff]  ;;  %v2780_v38 = vadd.f32 %v9951_v8, %v2663_v32  ;;  %v9954_v19 = vand.u32 4294901760, %v9953_v43  ;;  %v9958_v32 = vld [vmem:[#allocation86_spill] sm:$0xff] }
 0x22b   :  { %4257 = vmatpush.msrb.mxu2 %v8217_v14  ;;  %4364 = vmatpush.msrb.mxu3 %v4363_v33  ;;  %v8403_v33 = vpop.f32.mrf.mxu3  ;;  %v2385_v5 = vadd.f32 %v9950_v9, %v9949_v4  ;;  %v4381_v18 = vand.u32 4294901760, %v4380_v2  ;;  %v9955_v36 = vld [vmem:[#allocation56_spill] sm:$0xff]  ;;  %v8417_v13 = vpop.f32.mrf.mxu2  ;;  %v9957_v4 = vld [vmem:[#allocation94_spill] sm:$0xff] }
 0x22c   :  { %3995 = vmatmul.f32.gmra.mxu1 %v8185_v31  ;;  %4161 = vmatpush.msrb.mxu0 %v9946_v35  ;;  %v9952_v35 = vld [vmem:[#allocation61_spill] sm:$0xff]  ;;  %v2842_v9 = vadd.f32 %v9957_v4, %v2780_v38  ;;  %v9961_v2 = vld [vmem:[#allocation74_spill] sm:$0xff]  ;;  %v9966_v4 = vld [vmem:[#allocation68_spill] sm:$0xff] }
 0x22d   :  { %4208 = vmatpush.msrb.mxu1 %v9948_v0  ;;  %4259 = vmatpush.msrb.mxu2 %v8233_v20  ;;  %v2573_v30 = vadd.f32 %v9952_v35, %v2494_v23  ;;  %v8415_v0 = vand.u32 4294901760, %v2082_v24  ;;  %v9959_v23 = vand.u32 4294901760, %v9958_v32  ;;  %v1573_v8 = vadd.f32 %v9961_v2, %v1540_v62  ;;  %v9962_v35 = vld [vmem:[#allocation59_spill] sm:$0xff]  ;;  %v9968_v2 = vld [vmem:[#allocation69_spill] sm:$0xff] }
 0x22e   :  { %4370 = vmatpush.msrb.mxu3 %v4369_v26  ;;  %4165 = vmatpush.msrb.mxu0 %v9954_v19  ;;  %v4387_v26 = vand.u32 4294901760, %v4386_v41  ;;  %v9960_v19 = vand.u32 4294901760, %v8378_v40  ;;  %v2891_v38 = vadd.f32 %v8180_v53, %v2842_v9  ;;  %v9964_v41 = vld [vmem:[#allocation90_spill] sm:$0xff]  ;;  %v8441_v32 = vpop.f32.mrf.mxu0 }
 0x22f   :  { %4210 = vmatpush.msrb.mxu1 %v9955_v36  ;;  %4261 = vmatpush.msrb.mxu2 %v8260_v46  ;;  %v2618_v37 = vadd.f32 %v9956_v56, %v2573_v30  ;;  %v48_v56 = vld [vmem:[%s9381_s2 + $0xa8] sm:$0xff]  ;;  %v9963_v30 = vld [vmem:[#allocation23_spill] sm:$0xff]  ;;  %v9965_v36 = vand.u32 4294901760, %v9964_v41  ;;  %v8439_v62 = vsub.f32 %v2082_v24, %v8415_v0 }
 0x230   :  { %4376 = vmatpush.msrb.mxu3 %v4375_v44  ;;  %4169 = vmatpush.msrb.mxu0 %v9959_v23  ;;  %v4271_v43 = vsub.f32 %v8378_v40, %v9960_v19  ;;  %v2449_v44 = vadd.f32 %v9963_v30, %v2385_v5  ;;  %v9967_v23 = vld [vmem:[#allocation40_spill] sm:$0xff]  ;;  %v9969_v5 = vand.u32 4294901760, %v9968_v2  ;;  %v2090_v53 = vmul.f32 %v1573_v8, %v48_v56  ;;  %v9971_v30 = vld [vmem:[#allocation82_spill] sm:$0xff]  ;;  %v9973_v8 = vld [vmem:[#allocation89_spill] sm:$0xff] }
 0x231   :  { %4212 = vmatpush.msrb.mxu1 %v9962_v35  ;;  %4263 = vmatpush.msrb.mxu2 %v8279_v39  ;;  %v2671_v19 = vadd.f32 %v9967_v23, %v2618_v37  ;;  %v2972_v24 = vadd.f32 %v8197_v59, %v2891_v38  ;;  %v4278_v37 = vand.u32 4294901760, %v8439_v62  ;;  %v9975_v23 = vld [vmem:[#allocation43_spill] sm:$0xff]  ;;  %v9977_v59 = vld [vmem:[#allocation66_spill] sm:$0xff] }
 0x232   :  { %4382 = vmatpush.msrb.mxu3 %v4381_v18  ;;  %4173 = vmatpush.msrb.mxu0 %v9965_v36  ;;  %v9970_v18 = vld [vmem:[#allocation60_spill] sm:$0xff]  ;;  %v4272_v9 = vand.u32 4294901760, %v4271_v43  ;;  %v2500_v41 = vadd.f32 %v9971_v30, %v2449_v44  ;;  %v9972_v36 = vld [vmem:[#allocation70_spill] sm:$0xff]  ;;  %v9974_v43 = vld [vmem:[#allocation87_spill] sm:$0xff]  ;;  %v9976_v44 = vand.u32 4294901760, %v9975_v23  ;;  %v8465_v38 = vand.u32 4294901760, %v2090_v53 }
 0x233   :  { %4214 = vmatpush.msrb.mxu1 %v9966_v4  ;;  %4265 = vmatpush.msrb.mxu2 %v8300_v10  ;;  %v8448_v35 = vpop.f32.mrf.mxu3  ;;  %v2784_v56 = vadd.f32 %v9973_v8, %v2671_v19  ;;  %v8467_v2 = vpop.f32.mrf.mxu2  ;;  %v3017_v19 = vadd.f32 %v8244_v3, %v2972_v24  ;;  %v9979_v30 = vld [vmem:[#allocation67_spill] sm:$0xff]  ;;  %v9981_v8 = vld [vmem:[#allocation85_spill] sm:$0xff]  ;;  %v9984_v24 = vld [vmem:[#allocation88_spill] sm:$0xff] }
 0x234   :  { %4388 = vmatpush.msrb.mxu3 %v4387_v26  ;;  %4177 = vmatpush.msrb.mxu0 %v9969_v5  ;;  %v8456_v26 = vpop.f32.mrf.mxu1  ;;  %v2577_v4 = vadd.f32 %v9974_v43, %v2500_v41  ;;  %v9978_v5 = vld [vmem:[#allocation92_spill] sm:$0xff]  ;;  %v9980_v41 = vand.u32 4294901760, %v9979_v30  ;;  %v4279_v43 = vsub.f32 %v8439_v62, %v4278_v37 }
 0x235   :  { %4390 = vmatmul.f32.vlgmr.msrb.gmra.mxu3 %v8348_v7  ;;  %4216 = vmatpush.msrb.mxu1 %v9970_v18 }
 0x236   :  { %4595 = vmatpush.msra.mxu3 %v9972_v36  ;;  %4267 = vmatpush.msrb.mxu2 %v8315_v63  ;;  %v2622_v18 = vadd.f32 %v9978_v5, %v2577_v4  ;;  %v3066_v4 = vadd.f32 %v8382_v49, %v3017_v19  ;;  %v9986_v49 = vld [vmem:[#allocation93_spill] sm:$0xff] }
 0x237   :  { %4179 = vmatmul.f32.vlgmr.msrb.gmra.mxu0 %v7952_v48  ;;  %4273 = vmatmul.f32.vlgmr.msrb.gmra.mxu2 %v4272_v9  ;;  %v2847_v9 = vadd.f32 %v8228_v22, %v2784_v56  ;;  %v9982_v22 = vld [vmem:[#allocation91_spill] sm:$0xff]  ;;  %v8488_v56 = vsub.f32 %v2090_v53, %v8465_v38  ;;  %v9987_v53 = vand.u32 4294901760, %v9986_v49 }
 0x238   :  { %4404 = vmatpush.msra.mxu0 %v9975_v23  ;;  %4520 = vmatpush.msra.mxu2 %v9976_v44  ;;  %v9983_v3 = vand.u32 4294901760, %v9982_v22  ;;  %v8490_v44 = vpop.f32.mrf.mxu0 }
 0x239   :  { %4597 = vmatpush.msra.mxu3 %v7986_v58  ;;  %4218 = vmatpush.msrb.mxu1 %v9977_v59  ;;  %v2897_v23 = vadd.f32 %v8265_v1, %v2847_v9  ;;  %v9985_v59 = vld [vmem:[#allocation5_spill] sm:$0xff]  ;;  %v3183_v1 = vadd.f32 %v8405_v17, %v3066_v4  ;;  %v4280_v9 = vand.u32 4294901760, %v4279_v43  ;;  %v9988_v17 = vld [vmem:[#allocation96_spill] sm:$0xff] }
 0x23a   :  { %4407 = vmatpush.msra.mxu0 %v9979_v30  ;;  %4524 = vmatpush.msra.mxu2 %v9980_v41  ;;  %v2679_v5 = vadd.f32 %v9985_v59, %v2622_v18  ;;  %v9993_v59 = vld [vmem:[#allocation97_spill] sm:$0xff] }
 0x23b   :  { %4599 = vmatpush.msra.mxu3 %v8023_v55  ;;  %4220 = vmatpush.msrb.mxu1 %v9981_v8  ;;  %v3299_v19 = vpop.f32.mrf.mxu3  ;;  %v2976_v30 = vadd.f32 %v8284_v42, %v2897_v23  ;;  %v9989_v8 = vld [vmem:[#allocation37_spill] sm:$0xff]  ;;  %v8513_v43 = vpop.f32.mrf.mxu2 }
 0x23c   :  { %4410 = vmatpush.msra.mxu0 %v9982_v22  ;;  %4528 = vmatpush.msra.mxu2 %v9983_v3  ;;  %v8504_v18 = vpop.f32.mrf.mxu1  ;;  %v2788_v41 = vadd.f32 %v9988_v17, %v2679_v5  ;;  %v9990_v42 = vand.u32 4294901760, %v9989_v8  ;;  %v9991_v22 = vld [vmem:[#allocation95_spill] sm:$0xff]  ;;  %v9998_v17 = vand.u32 4294901760, %v8231_v28 }
 0x23d   :  { %4601 = vmatpush.msra.mxu3 %v8043_v21  ;;  %4222 = vmatpush.msrb.mxu1 %v9984_v24  ;;  %v3021_v4 = vadd.f32 %v8333_v47, %v2976_v30  ;;  %v9994_v47 = vand.u32 4294901760, %v9993_v59 }
 0x23e   :  { %4224 = vmatmul.f32.vlgmr.msrb.gmra.mxu1 %v7952_v48  ;;  %4394 = vmatmul.f32.gmra.mxu3 %v8415_v0  ;;  %v4286_v48 = vand.u32 4294901760, %v8488_v56  ;;  %v2852_v23 = vadd.f32 %v8321_v16, %v2788_v41  ;;  %v9999_v41 = vand.u32 4294901760, %v8250_v60 }
 0x23f   :  { %4413 = vmatpush.msra.mxu0 %v9986_v49  ;;  %4467 = vmatpush.msra.mxu1 %v9972_v36  ;;  %v3245_v36 = vadd.f32 %v8417_v13, %v3183_v1  ;;  %v9992_v13 = vand.u32 4294901760, %v9991_v22  ;;  %v3074_v16 = vadd.f32 %v8441_v32, %v3021_v4  ;;  %v9995_v1 = vld [vmem:[#allocation29_spill] sm:$0xff] }
 0x240   :  { %4532 = vmatpush.msra.mxu2 %v9987_v53  ;;  %4603 = vmatpush.msra.mxu3 %v8072_v61  ;;  %v2903_v24 = vadd.f32 %v8351_v12, %v2852_v23  ;;  %v9997_v53 = vand.u32 4294901760, %v8207_v11  ;;  %v10002_v23 = vand.u32 4294901760, %v8268_v25  ;;  %v2202_v4 = vld [vmem:[%s9383_s4 + $0x368] sm:$0xff] }
 0x241   :  { %4183 = vmatmul.f32.gmra.mxu0 %v8090_v29  ;;  %4281 = vmatmul.f32.gmra.mxu2 %v4280_v9  ;;  %v3374_v3 = vpop.f32.mrf.mxu0  ;;  %v3187_v5 = vadd.f32 %v8456_v26, %v3074_v16  ;;  %v9996_v9 = vand.u32 4294901760, %v9995_v1  ;;  %v10004_v16 = vld [vmem:[#allocation76_spill] sm:$0xff] }
 0x242   :  { %4416 = vmatpush.msra.mxu0 %v9989_v8  ;;  %4469 = vmatpush.msra.mxu1 %v7986_v58  ;;  %v4287_v58 = vsub.f32 %v8488_v56, %v4286_v48  ;;  %v2980_v49 = vadd.f32 %v8364_v54, %v2903_v24  ;;  %v10001_v8 = vld [vmem:[#allocation75_spill] sm:$0xff]  ;;  %v8600_v24 = vand.u32 4294901760, %v2202_v4 }
 0x243   :  { %4536 = vmatpush.msra.mxu2 %v9990_v42  ;;  %4605 = vmatpush.msra.mxu3 %v8106_v50  ;;  %v3250_v30 = vadd.f32 %v8467_v2, %v3187_v5  ;;  %v2204_v2 = vld [vmem:[%s9383_s4 + $0x378] sm:$0xff] }
 0x244   :  { %4419 = vmatpush.msra.mxu0 %v9991_v22  ;;  %4471 = vmatpush.msra.mxu1 %v8023_v55  ;;  %v3294_v55 = vadd.f32 %v8448_v35, %v3245_v36  ;;  %v4288_v32 = vand.u32 4294901760, %v4287_v58  ;;  %v3025_v54 = vadd.f32 %v8403_v33, %v2980_v49 }
 0x245   :  { %4540 = vmatpush.msra.mxu2 %v9992_v13  ;;  %4607 = vmatpush.msra.mxu3 %v8129_v51  ;;  %v3300_v33 = vadd.f32 %v3299_v19, %v3250_v30  ;;  %v10003_v13 = vand.u32 4294901760, %v8298_v45 }
 0x246   :  { %4422 = vmatpush.msra.mxu0 %v9993_v59  ;;  %4473 = vmatpush.msra.mxu1 %v8043_v21  ;;  %v3375_v12 = vadd.f32 %v3374_v3, %v3294_v55  ;;  %v8538_v21 = vpop.f32.mrf.mxu3  ;;  %v10005_v59 = vand.u32 4294901760, %v8313_v52 }
 0x247   :  { %4544 = vmatpush.msra.mxu2 %v9994_v47  ;;  %4609 = vmatpush.msra.mxu3 %v8148_v27  ;;  %v3468_v26 = vpop.f32.mrf.mxu2  ;;  %v2200_v47 = vld [vmem:[%s9383_s4 + $0x358] sm:$0xff] }
 0x248   :  { %4228 = vmatmul.f32.gmra.mxu1 %v8090_v29  ;;  %4398 = vmatmul.f32.gmra.mxu3 %v8465_v38  ;;  %v3419_v35 = vpop.f32.mrf.mxu1 }
 0x249   :  { %4425 = vmatpush.msra.mxu0 %v9995_v1  ;;  %4475 = vmatpush.msra.mxu1 %v8072_v61  ;;  %v3420_v29 = vadd.f32 %v3419_v35, %v3375_v12  ;;  %v8623_v12 = vsub.f32 %v2202_v4, %v8600_v24 }
 0x24a   :  { %4548 = vmatpush.msra.mxu2 %v9996_v9  ;;  %4611 = vmatpush.msra.mxu3 %v8173_v34  ;;  %v10008_v9 = vand.u32 4294901760, %v8344_v6 }
 0x24b   :  { %4187 = vmatmul.f32.gmra.mxu0 %v8185_v31  ;;  %4289 = vmatmul.f32.gmra.mxu2 %v4288_v32  ;;  %v3469_v61 = vadd.f32 %v3468_v26, %v3420_v29  ;;  %v10007_v32 = vld [vmem:[#allocation17_spill] sm:$0xff] }
 0x24c   :  { %4428 = vmatpush.msra.mxu0 %v8207_v11  ;;  %4477 = vmatpush.msra.mxu1 %v8106_v50  ;;  %v3378_v50 = vpop.f32.mrf.mxu0  ;;  %v3082_v11 = vadd.f32 %v8490_v44, %v3025_v54 }
 0x24d   :  { %4552 = vmatpush.msra.mxu2 %v9997_v53  ;;  %4613 = vmatpush.msra.mxu3 %v8200_v15 }
 0x24e   :  { %4431 = vmatpush.msra.mxu0 %v8231_v28  ;;  %4479 = vmatpush.msra.mxu1 %v8129_v51  ;;  %v8566_v51 = vand.u32 4294901760, %v2204_v2  ;;  %v2203_v28 = vld [vmem:[%s9383_s4 + $0x370] sm:$0xff]  ;;  %v3585_v36 = vpop.f32.mrf.mxu3  ;;  %v3191_v44 = vadd.f32 %v8504_v18, %v3082_v11 }
 0x24f   :  { %4556 = vmatpush.msra.mxu2 %v9998_v17  ;;  %4615 = vmatpush.msra.mxu3 %v8217_v14  ;;  %v8574_v19 = vadd.f32 %v3585_v36, %v3469_v61  ;;  %v8586_v18 = vand.u32 4294901760, %v2203_v28  ;;  %v9491_v17 = vand.u32 4294901760, %v8623_v12  ;;  %v10010_v11 = vld [vmem:[#allocation27_spill] sm:$0xff] }
 0x250   :  { %4434 = vmatpush.msra.mxu0 %v8250_v60  ;;  %4481 = vmatpush.msra.mxu1 %v8148_v27  ;;  %v3379_v27 = vadd.f32 %v3378_v50, %v3300_v33  ;;  %v10000_v60 = vld [vmem:[#allocation73_spill] sm:$0xff]  ;;  %v3255_v3 = vadd.f32 %v8513_v43, %v3191_v44 }
 0x251   :  { %4560 = vmatpush.msra.mxu2 %v9999_v41  ;;  %4617 = vmatpush.msra.mxu3 %v8233_v20  ;;  %v1659_v42 = vadd.f32 %v10001_v8, %v10000_v60  ;;  %v3476_v58 = vpop.f32.mrf.mxu2  ;;  %v8609_v43 = vsub.f32 %v2203_v28, %v8586_v18  ;;  %v10011_v8 = vld [vmem:[#allocation9_spill] sm:$0xff] }
 0x252   :  { %4232 = vmatmul.f32.gmra.mxu1 %v8185_v31  ;;  %4437 = vmatpush.msra.mxu0 %v8268_v25  ;;  %v3423_v31 = vpop.f32.mrf.mxu1  ;;  %v2201_v25 = vld [vmem:[%s9383_s4 + $0x360] sm:$0xff]  ;;  %v3306_v1 = vadd.f32 %v8538_v21, %v3255_v3 }
 0x253   :  { %4483 = vmatpush.msra.mxu1 %v8173_v34  ;;  %4564 = vmatpush.msra.mxu2 %v10002_v23  ;;  %v3424_v22 = vadd.f32 %v3423_v31, %v3379_v27  ;;  %v8592_v34 = vsub.f32 %v2204_v2, %v8566_v51  ;;  %v8611_v55 = vand.u32 4294901760, %v2201_v25  ;;  %v9492_v29 = vand.u32 4294901760, %v8609_v43  ;;  %v33_v23 = vld [vmem:[%s9381_s2 + $0x30] sm:$0xff] }
 0x254   :  { %4619 = vmatpush.msra.mxu3 %v8260_v46  ;;  %4440 = vmatpush.msra.mxu0 %v8298_v45  ;;  %v1697_v45 = vadd.f32 %v10004_v16, %v1659_v42  ;;  %v10012_v42 = vld [vmem:[#allocation19_spill] sm:$0xff] }
 0x255   :  { %4485 = vmatpush.msra.mxu1 %v8200_v15  ;;  %4568 = vmatpush.msra.mxu2 %v10003_v13  ;;  %v3477_v15 = vadd.f32 %v3476_v58, %v3424_v22  ;;  %v3382_v5 = vpop.f32.mrf.mxu0  ;;  %v8638_v21 = vsub.f32 %v2201_v25, %v8611_v55  ;;  %v4705_v36 = vsub.f32 %v8609_v43, %v9492_v29  ;;  %v2196_v25 = vld [vmem:[%s9383_s4 + $0x338] sm:$0xff]  ;;  %v2195_v58 = vld [vmem:[%s9383_s4 + $0x330] sm:$0xff] }
 0x256   :  { %4621 = vmatpush.msra.mxu3 %v8279_v39  ;;  %4443 = vmatpush.msra.mxu0 %v8313_v52  ;;  %v9494_v52 = vand.u32 4294901760, %v8592_v34  ;;  %v1734_v35 = vadd.f32 %v10007_v32, %v1697_v45  ;;  %v3589_v49 = vpop.f32.mrf.mxu3  ;;  %v3383_v26 = vadd.f32 %v3382_v5, %v3306_v1  ;;  %v4711_v22 = vsub.f32 %v8623_v12, %v9491_v17  ;;  %v10030_v17 = vld [vmem:[#allocation25_spill] sm:$0xff] }
 0x257   :  { %4487 = vmatpush.msra.mxu1 %v8217_v14  ;;  %4572 = vmatpush.msra.mxu2 %v10005_v59  ;;  %v10006_v14 = vand.u32 4294901760, %v8327_v57  ;;  %v8641_v30 = vadd.f32 %v3589_v49, %v3477_v15  ;;  %v9490_v27 = vand.u32 4294901760, %v8638_v21  ;;  %v10013_v15 = vand.u32 4294901760, %v8378_v40 }
 0x258   :  { %4623 = vmatpush.msra.mxu3 %v8300_v10  ;;  %4446 = vmatpush.msra.mxu0 %v8327_v57  ;;  %v2199_v57 = vld [vmem:[%s9383_s4 + $0x350] sm:$0xff]  ;;  %v4699_v53 = vsub.f32 %v8592_v34, %v9494_v52  ;;  %v4706_v16 = vand.u32 4294901760, %v4705_v36  ;;  %v4712_v1 = vand.u32 4294901760, %v4711_v22  ;;  %v10021_v22 = vld [vmem:[#allocation20_spill] sm:$0xff] }
 0x259   :  { %4489 = vmatpush.msra.mxu1 %v8233_v20  ;;  %4576 = vmatpush.msra.mxu2 %v10006_v14  ;;  %v8629_v20 = vand.u32 4294901760, %v2200_v47  ;;  %v8654_v2 = vand.u32 4294901760, %v2199_v57  ;;  %v4717_v45 = vsub.f32 %v8638_v21, %v9490_v27 }
 0x25a   :  { %4625 = vmatpush.msra.mxu3 %v8315_v63  ;;  %4449 = vmatpush.msra.mxu0 %v8344_v6  ;;  %v2198_v6 = vld [vmem:[%s9383_s4 + $0x348] sm:$0xff]  ;;  %v4700_v4 = vand.u32 4294901760, %v4699_v53 }
 0x25b   :  { %4627 = vmatmul.f32.vlgmr.msra.gmra.mxu3 %v8348_v7  ;;  %4491 = vmatpush.msra.mxu1 %v8260_v46  ;;  %v10009_v46 = vld [vmem:[#allocation81_spill] sm:$0xff]  ;;  %v8664_v41 = vsub.f32 %v2200_v47, %v8629_v20  ;;  %v3484_v28 = vpop.f32.mrf.mxu2  ;;  %v8671_v44 = vand.u32 4294901760, %v2198_v6  ;;  %v8689_v13 = vsub.f32 %v2199_v57, %v8654_v2 }
 0x25c   :  { %4870 = vmatpush.msrb.mxu3 %v8566_v51  ;;  %4580 = vmatpush.msra.mxu2 %v10008_v9  ;;  %v1779_v61 = vadd.f32 %v10009_v46, %v1734_v35  ;;  %v3427_v54 = vpop.f32.mrf.mxu1  ;;  %v8719_v35 = vand.u32 4294901760, %v2195_v58  ;;  %v2194_v57 = vld [vmem:[%s9383_s4 + $0x328] sm:$0xff] }
 0x25d   :  { %4452 = vmatmul.f32.vlgmr.msra.gmra.mxu0 %v8378_v40  ;;  %4582 = vmatmul.f32.vlgmr.msra.gmra.mxu2 %v8348_v7  ;;  %v2197_v7 = vld [vmem:[%s9383_s4 + $0x340] sm:$0xff]  ;;  %v3428_v50 = vadd.f32 %v3427_v54, %v3383_v26  ;;  %v8707_v59 = vsub.f32 %v2198_v6, %v8671_v44  ;;  %v8714_v40 = vand.u32 4294901760, %v2196_v25  ;;  %v9487_v32 = vand.u32 4294901760, %v8689_v13 }
 0x25e   :  { %4640 = vmatpush.msrb.mxu0 %v8566_v51  ;;  %4807 = vmatpush.msrb.mxu2 %v8592_v34  ;;  %v1812_v33 = vadd.f32 %v10010_v11, %v1779_v61  ;;  %v8681_v31 = vand.u32 4294901760, %v2197_v7  ;;  %v3593_v5 = vpop.f32.mrf.mxu3  ;;  %10015 = vst [vmem:[#allocation30_spill] sm:$0xff] %v8719_v35  ;;  %v2193_v26 = vld [vmem:[%s9383_s4 + $0x320] sm:$0xff]  ;;  %v4718_v61 = vand.u32 4294901760, %v4717_v45  ;;  %v8743_v54 = vand.u32 4294901760, %v2194_v57 }
 0x25f   :  { %4872 = vmatpush.msrb.mxu3 %v8586_v18  ;;  %4493 = vmatpush.msra.mxu1 %v8279_v39  ;;  %v3485_v60 = vadd.f32 %v3484_v28, %v3428_v50  ;;  %v1663_v39 = vadd.f32 %v10012_v42, %v10011_v8  ;;  %v9486_v53 = vand.u32 4294901760, %v8707_v59  ;;  %v2192_v50 = vld [vmem:[%s9383_s4 + $0x318] sm:$0xff]  ;;  %v4729_v36 = vsub.f32 %v8689_v13, %v9487_v32  ;;  %v10019_v42 = vld [vmem:[#allocation10_spill] sm:$0xff] }
 0x260   :  { %4642 = vmatpush.msrb.mxu0 %v8586_v18  ;;  %4810 = vmatpush.msrb.mxu2 %v8609_v43  ;;  %v2075_v3 = vmul.f32 %v1812_v33, %v33_v23  ;;  %v8712_v14 = vsub.f32 %v2197_v7, %v8681_v31  ;;  %10016 = vst [vmem:[#allocation44_spill] sm:$0xff] %v8743_v54  ;;  %v10017_v33 = vld [vmem:[#allocation13_spill] sm:$0xff]  ;;  %v8758_v8 = vand.u32 4294901760, %v2193_v26 }
 0x261   :  { %4874 = vmatpush.msrb.mxu3 %v8600_v24  ;;  %4495 = vmatpush.msra.mxu1 %v8300_v10  ;;  %v9489_v10 = vand.u32 4294901760, %v8664_v41  ;;  %v8724_v49 = vadd.f32 %v3593_v5, %v3485_v60  ;;  %v8756_v60 = vsub.f32 %v2195_v58, %v8719_v35  ;;  %v4735_v58 = vsub.f32 %v8707_v59, %v9486_v53 }
 0x262   :  { %4644 = vmatpush.msrb.mxu0 %v8600_v24  ;;  %4813 = vmatpush.msrb.mxu2 %v8623_v12  ;;  %v8734_v46 = vand.u32 4294901760, %v2075_v3  ;;  %v9484_v7 = vand.u32 4294901760, %v8712_v14  ;;  %10018 = vst [vmem:[#allocation47_spill] sm:$0xff] %v8758_v8 }
 0x263   :  { %4876 = vmatpush.msrb.mxu3 %v8611_v55  ;;  %4497 = vmatpush.msra.mxu1 %v8315_v63  ;;  %v10014_v63 = vld [vmem:[#allocation11_spill] sm:$0xff]  ;;  %v4723_v9 = vsub.f32 %v8664_v41, %v9489_v10 }
 0x264   :  { %4501 = vmatmul.f32.vlgmr.msra.gmra.mxu1 %v10013_v15  ;;  %4631 = vmatmul.f32.gmra.mxu3 %v8415_v0  ;;  %v1702_v47 = vadd.f32 %v10014_v63, %v1663_v39  ;;  %v10020_v39 = vld [vmem:[#allocation77_spill] sm:$0xff]  ;;  %v8772_v15 = vand.u32 4294901760, %v2192_v50  ;;  %v8778_v45 = vsub.f32 %v2075_v3, %v8734_v46  ;;  %v8785_v63 = vsub.f32 %v8712_v14, %v9484_v7 }
 0x265   :  { %4646 = vmatpush.msrb.mxu0 %v8611_v55  ;;  %4701 = vmatpush.msrb.mxu1 %v4700_v4  ;;  %v1667_v23 = vadd.f32 %v10020_v39, %v10019_v42  ;;  %v2220_v4 = vld [vmem:[%s9383_s4 + $0x3f8] sm:$0xff]  ;;  %v4730_v3 = vand.u32 4294901760, %v4729_v36 }
 0x266   :  { %4816 = vmatpush.msrb.mxu2 %v8638_v21  ;;  %4878 = vmatpush.msrb.mxu3 %v8629_v20  ;;  %v1740_v28 = vadd.f32 %v10017_v33, %v1702_v47  ;;  %10022 = vst [vmem:[#allocation46_spill] sm:$0xff] %v8772_v15  ;;  %v8788_v47 = vsub.f32 %v2194_v57, %v8743_v54  ;;  %v10023_v57 = vld [vmem:[#allocation79_spill] sm:$0xff] }
 0x267   :  { %4457 = vmatmul.f32.gmra.mxu0 %v8439_v62  ;;  %4586 = vmatmul.f32.gmra.mxu2 %v8415_v0  ;;  %v3647_v6 = vpop.f32.mrf.mxu0  ;;  %v8741_v0 = vsub.f32 %v2196_v25, %v8714_v40  ;;  %v1707_v33 = vadd.f32 %v10023_v57, %v1667_v23  ;;  %v2190_v23 = vld [vmem:[%s9383_s4 + $0x308] sm:$0xff] }
 0x268   :  { %4648 = vmatpush.msrb.mxu0 %v8629_v20  ;;  %4707 = vmatpush.msrb.mxu1 %v4706_v16  ;;  %v3648_v11 = vadd.f32 %v3647_v6, %v8574_v19  ;;  %v4724_v19 = vand.u32 4294901760, %v4723_v9  ;;  %v1783_v25 = vadd.f32 %v10021_v22, %v1740_v28  ;;  %v2219_v16 = vld [vmem:[%s9383_s4 + $0x3f0] sm:$0xff]  ;;  %v8798_v9 = vsub.f32 %v2193_v26, %v8758_v8 }
 0x269   :  { %4819 = vmatpush.msrb.mxu2 %v8664_v41  ;;  %4880 = vmatpush.msrb.mxu3 %v8654_v2  ;;  %v9485_v5 = vand.u32 4294901760, %v8741_v0  ;;  %v8801_v6 = vand.u32 4294901760, %v2220_v4  ;;  %v10024_v28 = vld [vmem:[#allocation34_spill] sm:$0xff]  ;;  %v8806_v39 = vand.u32 4294901760, %v2219_v16  ;;  %v8811_v26 = vsub.f32 %v2192_v50, %v8772_v15 }
 0x26a   :  { %4650 = vmatpush.msrb.mxu0 %v8654_v2  ;;  %4713 = vmatpush.msrb.mxu1 %v4712_v1  ;;  %v2191_v1 = vld [vmem:[%s9383_s4 + $0x310] sm:$0xff]  ;;  %v1816_v42 = vadd.f32 %v10024_v28, %v1783_v25  ;;  %v9495_v25 = vand.u32 4294901760, %v8778_v45  ;;  %v4742_v50 = vand.u32 4294901760, %v8785_v63  ;;  %v9493_v28 = vand.u32 4294901760, %v8788_v47 }
 0x26b   :  { %4822 = vmatpush.msrb.mxu2 %v8689_v13  ;;  %4882 = vmatpush.msrb.mxu3 %v8671_v44  ;;  %10025 = vst [vmem:[#allocation32_spill] sm:$0xff] %v8811_v26  ;;  %v8813_v36 = vand.u32 4294901760, %v2191_v1  ;;  %v4747_v57 = vsub.f32 %v8741_v0, %v9485_v5  ;;  %v8841_v63 = vsub.f32 %v2220_v4, %v8801_v6  ;;  %v2217_v5 = vld [vmem:[%s9383_s4 + $0x3e0] sm:$0xff] }
 0x26c   :  { %4652 = vmatpush.msrb.mxu0 %v8671_v44  ;;  %4719 = vmatpush.msrb.mxu1 %v4718_v61  ;;  %v9488_v61 = vand.u32 4294901760, %v8756_v60  ;;  %v1746_v29 = vadd.f32 %v10030_v17, %v1707_v33  ;;  %v8871_v17 = vand.u32 4294901760, %v2217_v5  ;;  %v8879_v33 = vsub.f32 %v8778_v45, %v9495_v25 }
 0x26d   :  { %4825 = vmatpush.msrb.mxu2 %v8707_v59  ;;  %4884 = vmatpush.msrb.mxu3 %v8681_v31  ;;  %10026 = vst [vmem:[#allocation36_spill] sm:$0xff] %v8813_v36  ;;  %v3777_v7 = vpop.f32.mrf.mxu2 }
 0x26e   :  { %4507 = vmatmul.f32.gmra.mxu1 %v4278_v37  ;;  %4635 = vmatmul.f32.gmra.mxu3 %v8465_v38  ;;  %v3696_v62 = vpop.f32.mrf.mxu1  ;;  %v4736_v37 = vand.u32 4294901760, %v4735_v58  ;;  %v41_v58 = vld [vmem:[%s9381_s2 + $0x70] sm:$0xff]  ;;  %10027 = vst [vmem:[#allocation49_spill] sm:$0xff] %v8841_v63 }
 0x26f   :  { %4654 = vmatpush.msrb.mxu0 %v8681_v31  ;;  %4725 = vmatpush.msrb.mxu1 %v4724_v19  ;;  %v2218_v19 = vld [vmem:[%s9383_s4 + $0x3e8] sm:$0xff]  ;;  %v3697_v22 = vadd.f32 %v3696_v62, %v3648_v11  ;;  %v4753_v11 = vsub.f32 %v8756_v60, %v9488_v61  ;;  %v9496_v62 = vand.u32 4294901760, %v8798_v9  ;;  %v8851_v61 = vsub.f32 %v2219_v16, %v8806_v39 }
 0x270   :  { %4828 = vmatpush.msrb.mxu2 %v8712_v14  ;;  %4886 = vmatpush.msrb.mxu3 %v8714_v40  ;;  %v8853_v10 = vand.u32 4294901760, %v2218_v19  ;;  %v8856_v27 = vmul.f32 %v1816_v42, %v41_v58  ;;  %v4748_v16 = vand.u32 4294901760, %v4747_v57  ;;  %v10033_v42 = vld [vmem:[#allocation35_spill] sm:$0xff]  ;;  %v10038_v57 = vld [vmem:[#allocation22_spill] sm:$0xff] }
 0x271   :  { %4462 = vmatmul.f32.gmra.mxu0 %v8488_v56  ;;  %4590 = vmatmul.f32.gmra.mxu2 %v8465_v38  ;;  %v2189_v38 = vld [vmem:[%s9383_s4 + $0x300] sm:$0xff]  ;;  %v3778_v53 = vadd.f32 %v3777_v7, %v3697_v22  ;;  %v3652_v32 = vpop.f32.mrf.mxu0  ;;  %10029 = vst [vmem:[#allocation54_spill] sm:$0xff] %v8851_v61  ;;  %v8861_v7 = vsub.f32 %v2191_v1, %v8813_v36  ;;  %v9497_v22 = vand.u32 4294901760, %v8811_v26  ;;  %v2216_v1 = vld [vmem:[%s9383_s4 + $0x3d8] sm:$0xff] }
 0x272   :  { %4656 = vmatpush.msrb.mxu0 %v8714_v40  ;;  %4731 = vmatpush.msrb.mxu1 %v4730_v3  ;;  %v8848_v3 = vand.u32 4294901760, %v2190_v23  ;;  %v3653_v4 = vadd.f32 %v3652_v32, %v8641_v30  ;;  %v4759_v30 = vsub.f32 %v8788_v47, %v9493_v28  ;;  %v8869_v32 = vand.u32 4294901760, %v2189_v38 }
 0x273   :  { %4831 = vmatpush.msrb.mxu2 %v8741_v0  ;;  %4888 = vmatpush.msrb.mxu3 %v8719_v35  ;;  %10031 = vst [vmem:[#allocation51_spill] sm:$0xff] %v8861_v7  ;;  %v4765_v58 = vsub.f32 %v8798_v9, %v9496_v62  ;;  %v4754_v28 = vand.u32 4294901760, %v4753_v11  ;;  %v8903_v62 = vand.u32 4294901760, %v2216_v1  ;;  %v8911_v25 = vand.u32 4294901760, %v8856_v27 }
 0x274   :  { %10028 = vst [vmem:[#allocation50_spill] sm:$0xff] %v8848_v3  ;;  %4658 = vmatpush.msrb.mxu0 %v8719_v35  ;;  %4737 = vmatpush.msrb.mxu1 %v4736_v37  ;;  %v1787_v37 = vadd.f32 %v10033_v42, %v1746_v29  ;;  %v8890_v52 = vsub.f32 %v2190_v23, %v8848_v3  ;;  %v2215_v23 = vld [vmem:[%s9383_s4 + $0x3d0] sm:$0xff]  ;;  %v4760_v56 = vand.u32 4294901760, %v4759_v30 }
 0x275   :  { %4834 = vmatpush.msrb.mxu2 %v8756_v60  ;;  %4890 = vmatpush.msrb.mxu3 %v8743_v54  ;;  %10032 = vst [vmem:[#allocation39_spill] sm:$0xff] %v8869_v32  ;;  %v8894_v29 = vsub.f32 %v2218_v19, %v8853_v10  ;;  %v4771_v42 = vsub.f32 %v8811_v26, %v9497_v22 }
 0x276   :  { %4660 = vmatpush.msrb.mxu0 %v8743_v54  ;;  %4743 = vmatpush.msrb.mxu1 %v4742_v50  ;;  %10034 = vst [vmem:[#allocation6_spill] sm:$0xff] %v8890_v52  ;;  %v3822_v50 = vpop.f32.mrf.mxu3  ;;  %v8918_v22 = vsub.f32 %v2217_v5, %v8871_v17  ;;  %v10040_v5 = vand.u32 4294901760, %v8851_v61  ;;  %v8961_v54 = vsub.f32 %v8856_v27, %v8911_v25 }
 0x277   :  { %4837 = vmatpush.msrb.mxu2 %v8788_v47  ;;  %4892 = vmatpush.msrb.mxu3 %v8758_v8  ;;  %10035 = vst [vmem:[#allocation7_spill] sm:$0xff] %v8894_v29  ;;  %v8908_v19 = vadd.f32 %v3822_v50, %v3778_v53  ;;  %v4766_v53 = vand.u32 4294901760, %v4765_v58  ;;  %v10039_v50 = vand.u32 4294901760, %v8841_v63 }
 0x278   :  { %4513 = vmatmul.f32.gmra.mxu1 %v4286_v48  ;;  %4662 = vmatpush.msrb.mxu0 %v8758_v8  ;;  %v8915_v48 = vsub.f32 %v2189_v38, %v8869_v32  ;;  %10037 = vst [vmem:[#allocation80_spill] sm:$0xff] %v8918_v22  ;;  %v3702_v11 = vpop.f32.mrf.mxu1  ;;  %v1820_v8 = vadd.f32 %v10038_v57, %v1787_v37  ;;  %v2214_v38 = vld [vmem:[%s9383_s4 + $0x3c8] sm:$0xff] }
 0x279   :  { %4749 = vmatpush.msrb.mxu1 %v4748_v16  ;;  %4840 = vmatpush.msrb.mxu2 %v8798_v9  ;;  %v5102_v16 = vsub.f32 %v8841_v63, %v10039_v50  ;;  %v3703_v30 = vadd.f32 %v3702_v11, %v3653_v4  ;;  %v8933_v37 = vsub.f32 %v8851_v61, %v10040_v5  ;;  %v3781_v50 = vpop.f32.mrf.mxu2  ;;  %v4772_v4 = vand.u32 4294901760, %v4771_v42  ;;  %v2213_v5 = vld [vmem:[%s9383_s4 + $0x3c0] sm:$0xff]  ;;  %v49_v61 = vld [vmem:[%s9381_s2 + $0xb0] sm:$0xff] }
 0x27a   :  { %10036 = vst [vmem:[#allocation57_spill] sm:$0xff] %v8915_v48  ;;  %4894 = vmatpush.msrb.mxu3 %v8772_v15  ;;  %4664 = vmatpush.msrb.mxu0 %v8772_v15  ;;  %v8937_v15 = vand.u32 4294901760, %v2215_v23  ;;  %v8945_v63 = vsub.f32 %v2216_v1, %v8903_v62  ;;  %v8975_v27 = vand.u32 4294901760, %v2213_v5  ;;  %v2091_v42 = vmul.f32 %v1820_v8, %v49_v61 }
 0x27b   :  { %4755 = vmatpush.msrb.mxu1 %v4754_v28  ;;  %4843 = vmatpush.msrb.mxu2 %v8811_v26  ;;  %v10041_v28 = vand.u32 4294901760, %v8861_v7  ;;  %v3782_v58 = vadd.f32 %v3781_v50, %v3703_v30  ;;  %v3657_v57 = vpop.f32.mrf.mxu0  ;;  %v5103_v30 = vand.u32 4294901760, %v5102_v16  ;;  %v2212_v16 = vld [vmem:[%s9383_s4 + $0x3b8] sm:$0xff]  ;;  %v10050_v26 = vand.u32 4294901760, %v8592_v34 }
 0x27c   :  { %4896 = vmatpush.msrb.mxu3 %v8813_v36  ;;  %4666 = vmatpush.msrb.mxu0 %v8813_v36  ;;  %v8956_v36 = vand.u32 4294901760, %v2214_v38  ;;  %v3658_v1 = vadd.f32 %v3657_v57, %v8724_v49  ;;  %v8973_v57 = vsub.f32 %v2215_v23, %v8937_v15  ;;  %v10044_v23 = vand.u32 4294901760, %v8778_v45 }
 0x27d   :  { %v4777_v11 = vsub.f32 %v8861_v7, %v10041_v28  ;;  %4761 = vmatpush.msrb.mxu1 %v4760_v56  ;;  %4846 = vmatpush.msrb.mxu2 %v8861_v7  ;;  %v10042_v56 = vand.u32 4294901760, %v8894_v29  ;;  %v10043_v28 = vand.u32 4294901760, %v8890_v52  ;;  %v10048_v7 = vld [vmem:[#allocation31_spill] sm:$0xff] }
 0x27e   :  { %4898 = vmatpush.msrb.mxu3 %v8848_v3  ;;  %4668 = vmatpush.msrb.mxu0 %v8848_v3  ;;  %v10045_v3 = vand.u32 4294901760, %v8918_v22  ;;  %v8994_v61 = vsub.f32 %v2214_v38, %v8956_v36 }
 0x27f   :  { %4767 = vmatpush.msrb.mxu1 %v4766_v53  ;;  %4849 = vmatpush.msrb.mxu2 %v8890_v52  ;;  %v5114_v50 = vsub.f32 %v8894_v29, %v10042_v56  ;;  %v4783_v49 = vsub.f32 %v8890_v52, %v10043_v28  ;;  %v4675_v53 = vand.u32 4294901760, %v8879_v33  ;;  %v5109_v56 = vand.u32 4294901760, %v8933_v37  ;;  %v10047_v37 = vld [vmem:[#allocation83_spill] sm:$0xff] }
 0x280   :  { %4900 = vmatpush.msrb.mxu3 %v8869_v32  ;;  %4670 = vmatpush.msrb.mxu0 %v8869_v32  ;;  %v4778_v29 = vand.u32 4294901760, %v4777_v11  ;;  %v5120_v52 = vsub.f32 %v8918_v22, %v10045_v3  ;;  %v10046_v33 = vand.u32 4294901760, %v8915_v48  ;;  %v3826_v32 = vpop.f32.mrf.mxu3  ;;  %v1906_v28 = vadd.f32 %v10048_v7, %v10047_v37  ;;  %v2211_v3 = vld [vmem:[%s9383_s4 + $0x3b0] sm:$0xff] }
 0x281   :  { %4904 = vmatmul.f32.vlgmr.msrb.gmra.mxu3 %v10044_v23  ;;  %4773 = vmatpush.msrb.mxu1 %v4772_v4  ;;  %v4681_v4 = vand.u32 4294901760, %v8961_v54  ;;  %v9000_v11 = vand.u32 4294901760, %v2212_v16  ;;  %v9005_v23 = vadd.f32 %v3826_v32, %v3782_v58  ;;  %v5115_v38 = vand.u32 4294901760, %v5114_v50  ;;  %v2210_v58 = vld [vmem:[%s9383_s4 + $0x3a8] sm:$0xff]  ;;  %v3785_v34 = vpop.f32.mrf.mxu2 }
 0x282   :  { %v4789_v8 = vsub.f32 %v8915_v48, %v10046_v33  ;;  %5104 = vmatpush.msra.mxu3 %v5103_v30  ;;  %4852 = vmatpush.msrb.mxu2 %v8915_v48  ;;  %v4784_v33 = vand.u32 4294901760, %v4783_v49  ;;  %v9010_v30 = vsub.f32 %v2213_v5, %v8975_v27  ;;  %v3708_v37 = vpop.f32.mrf.mxu1  ;;  %v9012_v22 = vand.u32 4294901760, %v2091_v42  ;;  %v10049_v48 = vld [vmem:[#allocation38_spill] sm:$0xff] }
 0x283   :  { %4676 = vmatmul.f32.vlgmr.msrb.gmra.mxu0 %v4675_v53  ;;  %4855 = vmatmul.f32.vlgmr.msrb.gmra.mxu2 %v8778_v45  ;;  %v1944_v35 = vadd.f32 %v10049_v48, %v1906_v28  ;;  %v10051_v32 = vand.u32 4294901760, %v8945_v63  ;;  %v3709_v5 = vadd.f32 %v3708_v37, %v3658_v1  ;;  %v5121_v50 = vand.u32 4294901760, %v5120_v52  ;;  %v2209_v52 = vld [vmem:[%s9383_s4 + $0x3a0] sm:$0xff] }
 0x284   :  { %4923 = vmatpush.msra.mxu0 %v10050_v26  ;;  %5043 = vmatpush.msra.mxu2 %v8801_v6  ;;  %v4790_v49 = vand.u32 4294901760, %v4789_v8  ;;  %v9518_v48 = vand.u32 4294901760, %v8994_v61  ;;  %v9025_v53 = vand.u32 4294901760, %v2211_v3  ;;  %v10052_v26 = vld [vmem:[#allocation42_spill] sm:$0xff]  ;;  %v10053_v7 = vand.u32 4294901760, %v8609_v43 }
 0x285   :  { %v5126_v45 = vsub.f32 %v8945_v63, %v10051_v32  ;;  %5110 = vmatpush.msra.mxu3 %v5109_v56  ;;  %4779 = vmatpush.msrb.mxu1 %v4778_v29  ;;  %v1981_v28 = vadd.f32 %v10052_v26, %v1944_v35  ;;  %v9032_v32 = vsub.f32 %v2212_v16, %v9000_v11  ;;  %v10054_v56 = vand.u32 4294901760, %v8973_v57 }
 0x286   :  { %4927 = vmatpush.msra.mxu0 %v10053_v7  ;;  %5045 = vmatpush.msra.mxu2 %v8806_v39  ;;  %v3786_v29 = vadd.f32 %v3785_v34, %v3709_v5  ;;  %v4682_v1 = vsub.f32 %v8961_v54, %v4681_v4  ;;  %v9517_v43 = vand.u32 4294901760, %v9010_v30  ;;  %v9042_v8 = vand.u32 4294901760, %v2210_v58  ;;  %v10056_v34 = vld [vmem:[#allocation28_spill] sm:$0xff] }
 0x287   :  { %5116 = vmatpush.msra.mxu3 %v5115_v38  ;;  %4785 = vmatpush.msrb.mxu1 %v4784_v33  ;;  %v5132_v35 = vsub.f32 %v8973_v57, %v10054_v56  ;;  %v10055_v16 = vand.u32 4294901760, %v8623_v12  ;;  %v5127_v7 = vand.u32 4294901760, %v5126_v45  ;;  %v9048_v37 = vsub.f32 %v2091_v42, %v9012_v22  ;;  %v2208_v12 = vld [vmem:[%s9383_s4 + $0x398] sm:$0xff] }
 0x288   :  { %5047 = vmatpush.msra.mxu2 %v8853_v10  ;;  %v5138_v38 = vsub.f32 %v8994_v61, %v9518_v48  ;;  %v9054_v33 = vsub.f32 %v2211_v3, %v9025_v53  ;;  %v9056_v5 = vand.u32 4294901760, %v2209_v52  ;;  %v2026_v45 = vadd.f32 %v10056_v34, %v1981_v28  ;;  %v3830_v28 = vpop.f32.mrf.mxu3  ;;  %v10059_v34 = vld [vmem:[#allocation24_spill] sm:$0xff] }
 0x289   :  { %4931 = vmatpush.msra.mxu0 %v10055_v16  ;;  %5122 = vmatpush.msra.mxu3 %v5121_v50  ;;  %v5149_v42 = vand.u32 4294901760, %v9032_v32  ;;  %v10057_v50 = vand.u32 4294901760, %v8638_v21  ;;  %v4683_v3 = vand.u32 4294901760, %v4682_v1  ;;  %v5144_v26 = vsub.f32 %v9010_v30, %v9517_v43  ;;  %v10058_v16 = vld [vmem:[#allocation84_spill] sm:$0xff] }
 0x28a   :  { %4791 = vmatpush.msrb.mxu1 %v4790_v49  ;;  %4910 = vmatmul.f32.gmra.mxu3 %v4681_v4  ;;  %v5133_v49 = vand.u32 4294901760, %v5132_v35  ;;  %v9071_v56 = vsub.f32 %v2210_v58, %v9042_v8  ;;  %v2207_v4 = vld [vmem:[%s9383_s4 + $0x390] sm:$0xff]  ;;  %v1910_v21 = vadd.f32 %v10059_v34, %v10058_v16  ;;  %v9081_v1 = vadd.f32 %v3830_v28, %v3786_v29  ;;  %v2206_v16 = vld [vmem:[%s9383_s4 + $0x388] sm:$0xff] }
 0x28b   :  { %4793 = vmatmul.f32.vlgmr.msrb.gmra.mxu1 %v8734_v46  ;;  %4935 = vmatpush.msra.mxu0 %v10057_v50  ;;  %v5139_v58 = vand.u32 4294901760, %v5138_v38  ;;  %v4689_v35 = vand.u32 4294901760, %v9048_v37  ;;  %v9521_v50 = vand.u32 4294901760, %v9054_v33  ;;  %v9087_v43 = vsub.f32 %v2209_v52, %v9056_v5  ;;  %v10062_v52 = vld [vmem:[#allocation45_spill] sm:$0xff] }
 0x28c   :  { %4998 = vmatpush.msra.mxu1 %v8566_v51  ;;  %5049 = vmatpush.msra.mxu2 %v8871_v17  ;;  %v9079_v51 = vand.u32 4294901760, %v2208_v12  ;;  %v10061_v29 = vand.u32 4294901760, %v8664_v41  ;;  %v9099_v38 = vand.u32 4294901760, %v2207_v4  ;;  %v2059_v28 = vadd.f32 %v10062_v52, %v2026_v45  ;;  %v2205_v41 = vld [vmem:[%s9383_s4 + $0x380] sm:$0xff] }
 0x28d   :  { %5128 = vmatpush.msra.mxu3 %v5127_v7  ;;  %4684 = vmatmul.f32.gmra.mxu0 %v4683_v3  ;;  %v10060_v7 = vld [vmem:[#allocation26_spill] sm:$0xff]  ;;  %v3871_v3 = vpop.f32.mrf.mxu0  ;;  %v5145_v48 = vand.u32 4294901760, %v5144_v26  ;;  %v10064_v26 = vld [vmem:[#allocation48_spill] sm:$0xff] }
 0x28e   :  { %4860 = vmatmul.f32.gmra.mxu2 %v8961_v54  ;;  %v1949_v34 = vadd.f32 %v10060_v7, %v1910_v21  ;;  %4939 = vmatpush.msra.mxu0 %v10061_v29  ;;  %v5150_v54 = vsub.f32 %v9032_v32, %v5149_v42  ;;  %v9519_v21 = vand.u32 4294901760, %v9071_v56  ;;  %v34_v7 = vld [vmem:[%s9381_s2 + $0x38] sm:$0xff]  ;;  %v10063_v29 = vand.u32 4294901760, %v8689_v13 }
 0x28f   :  { %5000 = vmatpush.msra.mxu1 %v8586_v18  ;;  %5051 = vmatpush.msra.mxu2 %v8903_v62  ;;  %v3872_v18 = vadd.f32 %v3871_v3, %v8908_v19  ;;  %v9115_v45 = vsub.f32 %v2208_v12, %v9079_v51  ;;  %v4690_v19 = vsub.f32 %v9048_v37, %v4689_v35  ;;  %v9520_v13 = vand.u32 4294901760, %v9087_v43 }
 0x290   :  { %5134 = vmatpush.msra.mxu3 %v5133_v49  ;;  %4943 = vmatpush.msra.mxu0 %v10063_v29  ;;  %v9117_v49 = vand.u32 4294901760, %v2206_v16  ;;  %v1987_v52 = vadd.f32 %v10064_v26, %v1949_v34  ;;  %v5156_v3 = vsub.f32 %v9054_v33, %v9521_v50  ;;  %v5151_v12 = vand.u32 4294901760, %v5150_v54 }
 0x291   :  { %5002 = vmatpush.msra.mxu1 %v8600_v24  ;;  %5053 = vmatpush.msra.mxu2 %v8937_v15  ;;  %v10065_v24 = vand.u32 4294901760, %v8707_v59  ;;  %v9130_v29 = vsub.f32 %v2207_v4, %v9099_v38  ;;  %v9132_v34 = vand.u32 4294901760, %v2205_v41  ;;  %v5162_v26 = vsub.f32 %v9071_v56, %v9519_v21  ;;  %v10066_v4 = vld [vmem:[#allocation52_spill] sm:$0xff] }
 0x292   :  { %5140 = vmatpush.msra.mxu3 %v5139_v58  ;;  %v2076_v58 = vmul.f32 %v2059_v28, %v34_v7  ;;  %v5173_v59 = vand.u32 4294901760, %v9115_v45  ;;  %v2030_v54 = vadd.f32 %v10066_v4, %v1987_v52  ;;  %v5157_v28 = vand.u32 4294901760, %v5156_v3  ;;  %v10069_v4 = vld [vmem:[#allocation41_spill] sm:$0xff] }
 0x293   :  { %4947 = vmatpush.msra.mxu0 %v10065_v24  ;;  %5004 = vmatpush.msra.mxu1 %v8611_v55  ;;  %v9141_v55 = vsub.f32 %v2206_v16, %v9117_v49  ;;  %v10067_v24 = vand.u32 4294901760, %v8712_v14  ;;  %v5168_v7 = vsub.f32 %v9087_v43, %v9520_v13  ;;  %v9153_v16 = vsub.f32 %v2205_v41, %v9132_v34  ;;  %v10068_v14 = vld [vmem:[#allocation33_spill] sm:$0xff]  ;;  %v4050_v3 = vpop.f32.mrf.mxu2 }
 0x294   :  { %5055 = vmatpush.msra.mxu2 %v8956_v36  ;;  %5146 = vmatpush.msra.mxu3 %v5145_v48  ;;  %v4691_v48 = vand.u32 4294901760, %v4690_v19  ;;  %v5163_v19 = vand.u32 4294901760, %v5162_v26  ;;  %v10070_v13 = vand.u32 4294901760, %v8741_v0  ;;  %v5174_v41 = vsub.f32 %v9115_v45, %v5173_v59  ;;  %v4099_v0 = vpop.f32.mrf.mxu3 }
 0x295   :  { %4797 = vmatmul.f32.gmra.mxu1 %v8911_v25  ;;  %4916 = vmatmul.f32.gmra.mxu3 %v4689_v35  ;;  %v3988_v21 = vpop.f32.mrf.mxu1  ;;  %v5179_v35 = vand.u32 4294901760, %v9130_v29  ;;  %v10073_v26 = vand.u32 4294901760, %v8756_v60 }
 0x296   :  { %4951 = vmatpush.msra.mxu0 %v10067_v24  ;;  %5006 = vmatpush.msra.mxu1 %v8629_v20  ;;  %v3989_v52 = vadd.f32 %v3988_v21, %v3872_v18  ;;  %v1914_v24 = vadd.f32 %v10069_v4, %v10068_v14  ;;  %v9157_v20 = vand.u32 4294901760, %v2076_v58  ;;  %v5185_v21 = vand.u32 4294901760, %v9141_v55  ;;  %v10071_v14 = vld [vmem:[#allocation55_spill] sm:$0xff] }
 0x297   :  { %5057 = vmatpush.msra.mxu2 %v8975_v27  ;;  %5152 = vmatpush.msra.mxu3 %v5151_v12  ;;  %v3879_v12 = vpop.f32.mrf.mxu0  ;;  %v2063_v4 = vadd.f32 %v10071_v14, %v2030_v54  ;;  %v5180_v54 = vsub.f32 %v9130_v29, %v5179_v35  ;;  %v10078_v14 = vld [vmem:[#allocation32_spill] sm:$0xff] }
 0x298   :  { %4692 = vmatmul.f32.gmra.mxu0 %v4691_v48  ;;  %4865 = vmatmul.f32.gmra.mxu2 %v9048_v37  ;;  %v4051_v18 = vadd.f32 %v4050_v3, %v3989_v52  ;;  %v10072_v48 = vld [vmem:[#allocation53_spill] sm:$0xff]  ;;  %v5169_v37 = vand.u32 4294901760, %v5168_v7  ;;  %v5191_v52 = vand.u32 4294901760, %v9153_v16  ;;  %v10074_v7 = vld [vmem:[#allocation8_spill] sm:$0xff]  ;;  %v5186_v60 = vsub.f32 %v9141_v55, %v5185_v21 }
 0x299   :  { %4955 = vmatpush.msra.mxu0 %v10070_v13  ;;  %5008 = vmatpush.msra.mxu1 %v8654_v2  ;;  %v1954_v50 = vadd.f32 %v10072_v48, %v1914_v24  ;;  %v3880_v13 = vadd.f32 %v3879_v12, %v9005_v23  ;;  %v42_v2 = vld [vmem:[%s9381_s2 + $0x78] sm:$0xff]  ;;  %v10075_v24 = vand.u32 4294901760, %v8788_v47  ;;  %v5181_v47 = vand.u32 4294901760, %v5180_v54 }
 0x29a   :  { %5059 = vmatpush.msra.mxu2 %v9000_v11  ;;  %5158 = vmatpush.msra.mxu3 %v5157_v28  ;;  %v9182_v28 = vsub.f32 %v2076_v58, %v9157_v20  ;;  %v9192_v3 = vadd.f32 %v4099_v0, %v4051_v18  ;;  %v2084_v12 = vmul.f32 %v2063_v4, %v42_v2  ;;  %v10079_v4 = vand.u32 4294901760, %v10078_v14 }
 0x29b   :  { %4959 = vmatpush.msra.mxu0 %v10073_v26  ;;  %5010 = vmatpush.msra.mxu1 %v8671_v44  ;;  %v1993_v23 = vadd.f32 %v10074_v7, %v1954_v50  ;;  %v5175_v44 = vand.u32 4294901760, %v5174_v41  ;;  %v10076_v50 = vand.u32 4294901760, %v8798_v9  ;;  %v5187_v9 = vand.u32 4294901760, %v5186_v60  ;;  %v10081_v26 = vld [vmem:[#allocation51_spill] sm:$0xff]  ;;  %v10084_v60 = vld [vmem:[#allocation44_spill] sm:$0xff] }
 0x29c   :  { %5061 = vmatpush.msra.mxu2 %v9025_v53  ;;  %5164 = vmatpush.msra.mxu3 %v5163_v19  ;;  %v5076_v58 = vand.u32 4294901760, %v9182_v28  ;;  %v10077_v19 = vld [vmem:[#allocation14_spill] sm:$0xff]  ;;  %v9209_v0 = vand.u32 4294901760, %v2084_v12  ;;  %v10082_v54 = vand.u32 4294901760, %v10081_v26 }
 0x29d   :  { %4963 = vmatpush.msra.mxu0 %v10075_v24  ;;  %5012 = vmatpush.msra.mxu1 %v8681_v31  ;;  %v5192_v31 = vsub.f32 %v9153_v16, %v5191_v52  ;;  %v2034_v41 = vadd.f32 %v10077_v19, %v1993_v23 }
 0x29e   :  { %5063 = vmatpush.msra.mxu2 %v9042_v8  ;;  %5170 = vmatpush.msra.mxu3 %v5169_v37  ;;  %v10080_v37 = vld [vmem:[#allocation30_spill] sm:$0xff]  ;;  %v4055_v2 = vpop.f32.mrf.mxu2  ;;  %v5077_v24 = vsub.f32 %v9182_v28, %v5076_v58 }
 0x29f   :  { %4801 = vmatmul.f32.gmra.mxu1 %v9012_v22  ;;  %4967 = vmatpush.msra.mxu0 %v10076_v50  ;;  %v3992_v18 = vpop.f32.mrf.mxu1  ;;  %v4105_v50 = vpop.f32.mrf.mxu3 }
 0x2a0   :  { %5014 = vmatpush.msra.mxu1 %v8714_v40  ;;  %5065 = vmatpush.msra.mxu2 %v9056_v5  ;;  %v3993_v48 = vadd.f32 %v3992_v18, %v3880_v13  ;;  %v5193_v40 = vand.u32 4294901760, %v5192_v31  ;;  %v10085_v31 = vld [vmem:[#allocation6_spill] sm:$0xff] }
 0x2a1   :  { %5176 = vmatpush.msra.mxu3 %v5175_v44  ;;  %4971 = vmatpush.msra.mxu0 %v10079_v4  ;;  %v10083_v44 = vld [vmem:[#allocation12_spill] sm:$0xff]  ;;  %v10086_v18 = vand.u32 4294901760, %v10085_v31  ;;  %v10087_v4 = vld [vmem:[#allocation47_spill] sm:$0xff] }
 0x2a2   :  { %5016 = vmatpush.msra.mxu1 %v10080_v37  ;;  %5067 = vmatpush.msra.mxu2 %v9079_v51  ;;  %v4056_v7 = vadd.f32 %v4055_v2, %v3993_v48  ;;  %v3887_v23 = vpop.f32.mrf.mxu0  ;;  %v2067_v13 = vadd.f32 %v10083_v44, %v2034_v41  ;;  %v9230_v41 = vsub.f32 %v2084_v12, %v9209_v0  ;;  %v10088_v48 = vld [vmem:[#allocation57_spill] sm:$0xff]  ;;  %v5078_v2 = vand.u32 4294901760, %v5077_v24 }
 0x2a3   :  { %5182 = vmatpush.msra.mxu3 %v5181_v47  ;;  %4975 = vmatpush.msra.mxu0 %v10082_v54  ;;  %v3888_v19 = vadd.f32 %v3887_v23, %v9081_v1  ;;  %v50_v47 = vld [vmem:[%s9381_s2 + $0xb8] sm:$0xff]  ;;  %v10089_v1 = vand.u32 4294901760, %v10088_v48  ;;  %v10091_v54 = vld [vmem:[#allocation49_spill] sm:$0xff] }
 0x2a4   :  { %5018 = vmatpush.msra.mxu1 %v10084_v60  ;;  %5069 = vmatpush.msra.mxu2 %v9099_v38  ;;  %v9225_v14 = vadd.f32 %v4105_v50, %v4056_v7  ;;  %v2092_v37 = vmul.f32 %v2067_v13, %v50_v47  ;;  %v5084_v12 = vand.u32 4294901760, %v9230_v41  ;;  %v10093_v23 = vld [vmem:[#allocation36_spill] sm:$0xff]  ;;  %v10094_v13 = vld [vmem:[#allocation54_spill] sm:$0xff] }
 0x2a5   :  { %5188 = vmatpush.msra.mxu3 %v5187_v9  ;;  %4979 = vmatpush.msra.mxu0 %v10086_v18  ;;  %v10090_v9 = vld [vmem:[#allocation46_spill] sm:$0xff]  ;;  %v10095_v60 = vand.u32 4294901760, %v10094_v13  ;;  %v10097_v18 = vld [vmem:[#allocation7_spill] sm:$0xff] }
 0x2a6   :  { %5020 = vmatpush.msra.mxu1 %v10087_v4  ;;  %5071 = vmatpush.msra.mxu2 %v9117_v49  ;;  %v9245_v24 = vand.u32 4294901760, %v2092_v37  ;;  %v10096_v47 = vld [vmem:[#allocation50_spill] sm:$0xff]  ;;  %v10098_v4 = vand.u32 4294901760, %v10097_v18 }
 0x2a7   :  { %5194 = vmatpush.msra.mxu3 %v5193_v40  ;;  %4983 = vmatpush.msra.mxu0 %v10089_v1  ;;  %v10092_v40 = vand.u32 4294901760, %v10091_v54  ;;  %v4111_v31 = vpop.f32.mrf.mxu3  ;;  %v10099_v1 = vld [vmem:[#allocation39_spill] sm:$0xff] }
 0x2a8   :  { %5196 = vmatmul.f32.vlgmr.msra.gmra.mxu3 %v9157_v20  ;;  %5022 = vmatpush.msra.mxu1 %v10090_v9  ;;  %v4060_v44 = vpop.f32.mrf.mxu2  ;;  %v9263_v9 = vsub.f32 %v2092_v37, %v9245_v24 }
 0x2a9   :  { %5401 = vmatpush.msrb.mxu3 %v8801_v6  ;;  %5073 = vmatpush.msra.mxu2 %v9132_v34  ;;  %v3996_v26 = vpop.f32.mrf.mxu1 }
 0x2aa   :  { %4985 = vmatmul.f32.vlgmr.msra.gmra.mxu0 %v8734_v46  ;;  %5079 = vmatmul.f32.vlgmr.msra.gmra.mxu2 %v5078_v2  ;;  %v3997_v7 = vadd.f32 %v3996_v26, %v3888_v19  ;;  %v5085_v19 = vsub.f32 %v9230_v41, %v5084_v12  ;;  %v10100_v2 = vld [vmem:[#allocation80_spill] sm:$0xff]  ;;  %v5092_v37 = vand.u32 4294901760, %v9263_v9 }
 0x2ab   :  { %5210 = vmatpush.msrb.mxu0 %v10091_v54  ;;  %5326 = vmatpush.msrb.mxu2 %v10092_v40  ;;  %v10101_v54 = vand.u32 4294901760, %v10100_v2  ;;  %v10102_v40 = vand.u32 4294901760, %v8945_v63 }
 0x2ac   :  { %5403 = vmatpush.msrb.mxu3 %v8806_v39  ;;  %5024 = vmatpush.msra.mxu1 %v10093_v23  ;;  %v4061_v50 = vadd.f32 %v4060_v44, %v3997_v7  ;;  %v5086_v26 = vand.u32 4294901760, %v5085_v19  ;;  %v10103_v7 = vand.u32 4294901760, %v8973_v57 }
 0x2ad   :  { %5213 = vmatpush.msrb.mxu0 %v10094_v13  ;;  %5330 = vmatpush.msrb.mxu2 %v10095_v60  ;;  %v10106_v13 = vand.u32 4294901760, %v9054_v33 }
 0x2ae   :  { %5405 = vmatpush.msrb.mxu3 %v8853_v10  ;;  %5026 = vmatpush.msra.mxu1 %v10096_v47  ;;  %v9258_v48 = vadd.f32 %v4111_v31, %v4061_v50 }
 0x2af   :  { %5216 = vmatpush.msrb.mxu0 %v10097_v18  ;;  %5334 = vmatpush.msrb.mxu2 %v10098_v4 }
 0x2b0   :  { %5407 = vmatpush.msrb.mxu3 %v8871_v17  ;;  %5028 = vmatpush.msra.mxu1 %v10099_v1 }
 0x2b1   :  { %5030 = vmatmul.f32.vlgmr.msra.gmra.mxu1 %v8734_v46  ;;  %5200 = vmatmul.f32.gmra.mxu3 %v9209_v0 }
 0x2b2   :  { %5219 = vmatpush.msrb.mxu0 %v10100_v2  ;;  %5273 = vmatpush.msrb.mxu1 %v8801_v6 }
 0x2b3   :  { %5338 = vmatpush.msrb.mxu2 %v10101_v54  ;;  %5409 = vmatpush.msrb.mxu3 %v8903_v62 }
 0x2b4   :  { %4989 = vmatmul.f32.gmra.mxu0 %v8911_v25  ;;  %5087 = vmatmul.f32.gmra.mxu2 %v5086_v26  ;;  %v4180_v46 = vpop.f32.mrf.mxu0 }
 0x2b5   :  { %5222 = vmatpush.msrb.mxu0 %v8945_v63  ;;  %5275 = vmatpush.msrb.mxu1 %v8806_v39  ;;  %v4181_v6 = vadd.f32 %v4180_v46, %v9192_v3  ;;  %v5093_v39 = vsub.f32 %v9263_v9, %v5092_v37  ;;  %v10104_v63 = vand.u32 4294901760, %v8994_v61  ;;  %v10105_v3 = vand.u32 4294901760, %v9010_v30 }
 0x2b6   :  { %5342 = vmatpush.msrb.mxu2 %v10102_v40  ;;  %5411 = vmatpush.msrb.mxu3 %v8937_v15 }
 0x2b7   :  { %5225 = vmatpush.msrb.mxu0 %v8973_v57  ;;  %5277 = vmatpush.msrb.mxu1 %v8853_v10  ;;  %v5094_v10 = vand.u32 4294901760, %v5093_v39 }
 0x2b8   :  { %5346 = vmatpush.msrb.mxu2 %v10103_v7  ;;  %5413 = vmatpush.msrb.mxu3 %v8956_v36 }
 0x2b9   :  { %5228 = vmatpush.msrb.mxu0 %v8994_v61  ;;  %5279 = vmatpush.msrb.mxu1 %v8871_v17 }
 0x2ba   :  { %5350 = vmatpush.msrb.mxu2 %v10104_v63  ;;  %5415 = vmatpush.msrb.mxu3 %v8975_v27  ;;  %v4274_v61 = vpop.f32.mrf.mxu2 }
 0x2bb   :  { %5034 = vmatmul.f32.gmra.mxu1 %v8911_v25  ;;  %5204 = vmatmul.f32.gmra.mxu3 %v9245_v24  ;;  %v4225_v57 = vpop.f32.mrf.mxu1 }
 0x2bc   :  { %5231 = vmatpush.msrb.mxu0 %v9010_v30  ;;  %5281 = vmatpush.msrb.mxu1 %v8903_v62  ;;  %v4226_v17 = vadd.f32 %v4225_v57, %v4181_v6  ;;  %v4391_v62 = vpop.f32.mrf.mxu3 }
 0x2bd   :  { %5354 = vmatpush.msrb.mxu2 %v10105_v3  ;;  %5417 = vmatpush.msrb.mxu3 %v9000_v11 }
 0x2be   :  { %4993 = vmatmul.f32.gmra.mxu0 %v9012_v22  ;;  %5095 = vmatmul.f32.gmra.mxu2 %v5094_v10  ;;  %v4275_v25 = vadd.f32 %v4274_v61, %v4226_v17  ;;  %v4184_v23 = vpop.f32.mrf.mxu0 }
 0x2bf   :  { %5234 = vmatpush.msrb.mxu0 %v9032_v32  ;;  %5283 = vmatpush.msrb.mxu1 %v8937_v15  ;;  %v4185_v30 = vadd.f32 %v4184_v23, %v9225_v14  ;;  %v10107_v15 = vand.u32 4294901760, %v9071_v56 }
 0x2c0   :  { %5358 = vmatpush.msrb.mxu2 %v5149_v42  ;;  %5419 = vmatpush.msrb.mxu3 %v9025_v53  ;;  %v9309_v44 = vadd.f32 %v4391_v62, %v4275_v25 }
 0x2c1   :  { %5237 = vmatpush.msrb.mxu0 %v9054_v33  ;;  %5285 = vmatpush.msrb.mxu1 %v8956_v36  ;;  %v10108_v36 = vand.u32 4294901760, %v9087_v43 }
 0x2c2   :  { %5362 = vmatpush.msrb.mxu2 %v10106_v13  ;;  %5421 = vmatpush.msrb.mxu3 %v9042_v8 }
 0x2c3   :  { %5240 = vmatpush.msrb.mxu0 %v9071_v56  ;;  %5287 = vmatpush.msrb.mxu1 %v8975_v27 }
 0x2c4   :  { %5366 = vmatpush.msrb.mxu2 %v10107_v15  ;;  %5423 = vmatpush.msrb.mxu3 %v9056_v5  ;;  %v4282_v33 = vpop.f32.mrf.mxu2 }
 0x2c5   :  { %5038 = vmatmul.f32.gmra.mxu1 %v9012_v22  ;;  %5243 = vmatpush.msrb.mxu0 %v9087_v43  ;;  %v4229_v32 = vpop.f32.mrf.mxu1  ;;  %v4395_v43 = vpop.f32.mrf.mxu3 }
 0x2c6   :  { %5289 = vmatpush.msrb.mxu1 %v9000_v11  ;;  %5370 = vmatpush.msrb.mxu2 %v10108_v36  ;;  %v4230_v27 = vadd.f32 %v4229_v32, %v4185_v30 }
 0x2c7   :  { %5425 = vmatpush.msrb.mxu3 %v9079_v51  ;;  %5246 = vmatpush.msrb.mxu0 %v9115_v45 }
 0x2c8   :  { %5291 = vmatpush.msrb.mxu1 %v9025_v53  ;;  %5374 = vmatpush.msrb.mxu2 %v5173_v59  ;;  %v4283_v22 = vadd.f32 %v4282_v33, %v4230_v27  ;;  %v4188_v11 = vpop.f32.mrf.mxu0 }
 0x2c9   :  { %5427 = vmatpush.msrb.mxu3 %v9099_v38  ;;  %5249 = vmatpush.msrb.mxu0 %v9130_v29  ;;  %v4189_v42 = vadd.f32 %v4188_v11, %v9258_v48 }
 0x2ca   :  { %5293 = vmatpush.msrb.mxu1 %v9042_v8  ;;  %5378 = vmatpush.msrb.mxu2 %v5179_v35  ;;  %v4396_v53 = vadd.f32 %v4395_v43, %v4283_v22 }
 0x2cb   :  { %5429 = vmatpush.msrb.mxu3 %v9117_v49  ;;  %5252 = vmatpush.msrb.mxu0 %v9141_v55 }
 0x2cc   :  { %5295 = vmatpush.msrb.mxu1 %v9056_v5  ;;  %5382 = vmatpush.msrb.mxu2 %v5185_v21 }
 0x2cd   :  { %5431 = vmatpush.msrb.mxu3 %v9132_v34  ;;  %5255 = vmatpush.msrb.mxu0 %v9153_v16  ;;  %v4399_v29 = vpop.f32.mrf.mxu3 }
 0x2ce   :  { %5433 = vmatmul.f32.vlgmr.msrb.gmra.mxu3 %v9157_v20  ;;  %5297 = vmatpush.msrb.mxu1 %v9079_v51  ;;  %v4290_v56 = vpop.f32.mrf.mxu2 }
 0x2cf   :  { %5386 = vmatpush.msrb.mxu2 %v5191_v52  ;;  %5258 = vmatmul.f32.vlgmr.msrb.gmra.mxu0 %v9182_v28  ;;  %v4233_v8 = vpop.f32.mrf.mxu1 }
 0x2d0   :  { %5388 = vmatmul.f32.vlgmr.msrb.gmra.mxu2 %v9157_v20  ;;  %5299 = vmatpush.msrb.mxu1 %v9099_v38  ;;  %v4234_v5 = vadd.f32 %v4233_v8, %v4189_v42 }
 0x2d2   :  { %5301 = vmatpush.msrb.mxu1 %v9117_v49  ;;  %v4291_v45 = vadd.f32 %v4290_v56, %v4234_v5 }
 0x2d4   :  { %5303 = vmatpush.msrb.mxu1 %v9132_v34  ;;  %v4400_v51 = vadd.f32 %v4399_v29, %v4291_v45 }
 0x2d5   :  { %5307 = vmatmul.f32.vlgmr.msrb.gmra.mxu1 %v5076_v58 }
 0x2d6   :  { %5437 = vmatmul.f32.gmra.mxu3 %v9209_v0 }
 0x2d7   :  { %5263 = vmatmul.f32.gmra.mxu0 %v9230_v41 }
 0x2d8   :  { %5392 = vmatmul.f32.gmra.mxu2 %v9209_v0 }
 0x2da   :  { %v4453_v38 = vpop.f32.mrf.mxu0 }
 0x2db   :  { %v4454_v31 = vadd.f32 %v4453_v38, %v9309_v44 }
 0x2dd   :  { %5313 = vmatmul.f32.gmra.mxu1 %v5084_v12 }
 0x2de   :  { %5441 = vmatmul.f32.gmra.mxu3 %v9245_v24  ;;  %v4628_v49 = vpop.f32.mrf.mxu3 }
 0x2df   :  { %5268 = vmatmul.f32.gmra.mxu0 %v9263_v9 }
 0x2e0   :  { %5396 = vmatmul.f32.gmra.mxu2 %v9245_v24  ;;  %v4583_v59 = vpop.f32.mrf.mxu2 }
 0x2e1   :  { %v4502_v34 = vpop.f32.mrf.mxu1 }
 0x2e2   :  { %v4503_v48 = vadd.f32 %v4502_v34, %v4454_v31 }
 0x2e4   :  { %v4458_v55 = vpop.f32.mrf.mxu0  ;;  %v4584_v2 = vadd.f32 %v4583_v59, %v4503_v48 }
 0x2e5   :  { %5319 = vmatmul.f32.gmra.mxu1 %v5092_v37  ;;  %v4459_v26 = vadd.f32 %v4458_v55, %v4396_v53 }
 0x2e6   :  { %v4629_v40 = vadd.f32 %v4628_v49, %v4584_v2 }
 0x2e7   :  { %v4632_v35 = vpop.f32.mrf.mxu3 }
 0x2ea   :  { %v4587_v20 = vpop.f32.mrf.mxu2 }
 0x2eb   :  { %v4508_v16 = vpop.f32.mrf.mxu1 }
 0x2ec   :  { %v4509_v46 = vadd.f32 %v4508_v16, %v4459_v26 }
 0x2ee   :  { %v4463_v21 = vpop.f32.mrf.mxu0  ;;  %v4588_v63 = vadd.f32 %v4587_v20, %v4509_v46 }
 0x2ef   :  { %v4464_v57 = vadd.f32 %v4463_v21, %v4400_v51 }
 0x2f0   :  { %v4633_v61 = vadd.f32 %v4632_v35, %v4588_v63 }
 0x2f1   :  { %v4636_v52 = vpop.f32.mrf.mxu3 }
 0x2f4   :  { %v4591_v58 = vpop.f32.mrf.mxu2 }
 0x2f5   :  { %v4514_v28 = vpop.f32.mrf.mxu1 }
 0x2f6   :  { %v4515_v3 = vadd.f32 %v4514_v28, %v4464_v57 }
 0x2f8   :  { %v4592_v44 = vadd.f32 %v4591_v58, %v4515_v3 }
 0x2fa   :  { %v4637_v33 = vadd.f32 %v4636_v52, %v4592_v44 }
 0x300   :  { %v4677_v0 = vpop.f32.mrf.mxu0 }
 0x301   :  { %v4678_v7 = vadd.f32 %v4677_v0, %v4629_v40  ;;  %v21_v0 = vld [vmem:[%s9379_s0] sm:$0xff] }
 0x304   :  { %v4905_v14 = vpop.f32.mrf.mxu3 }
 0x306   :  { %v4856_v12 = vpop.f32.mrf.mxu2 }
 0x308   :  { %v4794_v41 = vpop.f32.mrf.mxu1 }
 0x309   :  { %v4795_v10 = vadd.f32 %v4794_v41, %v4678_v7 }
 0x30a   :  { %v4685_v24 = vpop.f32.mrf.mxu0 }
 0x30b   :  { %v4857_v17 = vadd.f32 %v4856_v12, %v4795_v10  ;;  %v4686_v62 = vadd.f32 %v4685_v24, %v4633_v61  ;;  %v23_v10 = vld [vmem:[%s9379_s0 + $0x10] sm:$0xff] }
 0x30d   :  { %v4911_v60 = vpop.f32.mrf.mxu3  ;;  %v4906_v15 = vadd.f32 %v4905_v14, %v4857_v17 }
 0x311   :  { %v4861_v47 = vpop.f32.mrf.mxu2 }
 0x312   :  { %v4798_v50 = vpop.f32.mrf.mxu1 }
 0x313   :  { %v4799_v13 = vadd.f32 %v4798_v50, %v4686_v62 }
 0x315   :  { %v4693_v19 = vpop.f32.mrf.mxu0  ;;  %v4862_v27 = vadd.f32 %v4861_v47, %v4799_v13 }
 0x316   :  { %v4694_v11 = vadd.f32 %v4693_v19, %v4637_v33 }
 0x317   :  { %v4912_v5 = vadd.f32 %v4911_v60, %v4862_v27 }
 0x318   :  { %v4917_v18 = vpop.f32.mrf.mxu3 }
 0x31b   :  { %v4866_v1 = vpop.f32.mrf.mxu2 }
 0x31c   :  { %v4802_v4 = vpop.f32.mrf.mxu1 }
 0x31d   :  { %v4803_v53 = vadd.f32 %v4802_v4, %v4694_v11 }
 0x31f   :  { %v4867_v51 = vadd.f32 %v4866_v1, %v4803_v53 }
 0x321   :  { %v4918_v16 = vadd.f32 %v4917_v18, %v4867_v51 }
 0x327   :  { %v4986_v9 = vpop.f32.mrf.mxu0 }
 0x328   :  { %v4987_v32 = vadd.f32 %v4986_v9, %v4906_v15  ;;  %v22_v9 = vld [vmem:[%s9379_s0 + $0x8] sm:$0xff] }
 0x32b   :  { %v5197_v54 = vpop.f32.mrf.mxu3 }
 0x32d   :  { %v5080_v6 = vpop.f32.mrf.mxu2 }
 0x32e   :  { %v5031_v37 = vpop.f32.mrf.mxu1 }
 0x32f   :  { %v5032_v22 = vadd.f32 %v5031_v37, %v4987_v32 }
 0x331   :  { %v4990_v39 = vpop.f32.mrf.mxu0  ;;  %v5081_v8 = vadd.f32 %v5080_v6, %v5032_v22 }
 0x332   :  { %v4991_v29 = vadd.f32 %v4990_v39, %v4912_v5 }
 0x333   :  { %v5198_v49 = vadd.f32 %v5197_v54, %v5081_v8 }
 0x334   :  { %v5201_v25 = vpop.f32.mrf.mxu3 }
 0x337   :  { %v5088_v30 = vpop.f32.mrf.mxu2 }
 0x338   :  { %v5035_v23 = vpop.f32.mrf.mxu1 }
 0x339   :  { %v5036_v38 = vadd.f32 %v5035_v23, %v4991_v29 }
 0x33b   :  { %v4994_v36 = vpop.f32.mrf.mxu0  ;;  %v5089_v35 = vadd.f32 %v5088_v30, %v5036_v38 }
 0x33c   :  { %v4995_v28 = vadd.f32 %v4994_v36, %v4918_v16 }
 0x33d   :  { %v5202_v12 = vadd.f32 %v5201_v25, %v5089_v35  ;;  %v5457_v25 = vlaneseq }
 0x33e   :  { %v5205_v43 = vpop.f32.mrf.mxu3 }
 0x33f   :  { %v5458_v23 = vand.u32 127, %v5457_v25 }
 0x341   :  { %v5096_v56 = vpop.f32.mrf.mxu2  ;;  %v5467_v62 = vadd.s32 4294967288, %v5458_v23  ;;  %v5471_v44 = vadd.s32 4294967280, %v5458_v23  ;;  %vm5462_vm3 = vcmp.lt.s32.totalorder %v5458_v23, 19 }
 0x342   :  { %v5039_v42 = vpop.f32.mrf.mxu1 }
 0x343   :  { %v5040_v14 = vadd.f32 %v5039_v42, %v4995_v28 }
 0x345   :  { %v5097_v47 = vadd.f32 %v5096_v56, %v5040_v14 }
 0x347   :  { %v5206_v26 = vadd.f32 %v5205_v43, %v5097_v47 }
 0x34c   :  { %v5259_v45 = vpop.f32.mrf.mxu0 }
 0x34d   :  { %v5260_v34 = vadd.f32 %v5259_v45, %v5198_v49 }
 0x351   :  { %v5434_v59 = vpop.f32.mrf.mxu3 }
 0x352   :  { %v5308_v55 = vpop.f32.mrf.mxu1 }
 0x353   :  { %v5309_v20 = vadd.f32 %v5308_v55, %v5260_v34  ;;  %v5389_v21 = vpop.f32.mrf.mxu2 }
 0x354   :  { %v5264_v52 = vpop.f32.mrf.mxu0 }
 0x355   :  { %v5390_v58 = vadd.f32 %v5389_v21, %v5309_v20  ;;  %v5265_v24 = vadd.f32 %v5264_v52, %v5202_v12 }
 0x357   :  { %v5435_v41 = vadd.f32 %v5434_v59, %v5390_v58 }
 0x359   :  { %v5445_v60 = vmul.f32 %v5435_v41, %v21_v0  ;;  %v5438_v4 = vpop.f32.mrf.mxu3 }
 0x35a   :  { %v5314_v50 = vpop.f32.mrf.mxu1 }
 0x35b   :  { %v5315_v19 = vadd.f32 %v5314_v50, %v5265_v24  ;;  %v5393_v31 = vpop.f32.mrf.mxu2  ;;  %v5448_v18 = vsel %vm83_vm0, %v5445_v60, 0.0 }
 0x35c   :  { %5449 = vadd.xlane.f32.xlu0 %v5448_v18  ;;  %v5269_v1 = vpop.f32.mrf.mxu0 }
 0x35d   :  { %v5394_v48 = vadd.f32 %v5393_v31, %v5315_v19  ;;  %v5270_v54 = vadd.f32 %v5269_v1, %v5206_v26 }
 0x35f   :  { %v5439_v2 = vadd.f32 %v5438_v4, %v5394_v48 }
 0x361   :  { %v5446_v37 = vmul.f32 %v5439_v2, %v22_v9  ;;  %v5442_v63 = vpop.f32.mrf.mxu3 }
 0x362   :  { %v5320_v46 = vpop.f32.mrf.mxu1 }
 0x363   :  { %v5321_v40 = vadd.f32 %v5320_v46, %v5270_v54  ;;  %v5451_v6 = vsel %vm83_vm0, %v5446_v37, 0.0  ;;  %v5397_v7 = vpop.f32.mrf.mxu2 }
 0x364   :  { %5452 = vadd.xlane.f32.xlu0 %v5451_v6 }
 0x365   :  { %v5398_v39 = vadd.f32 %v5397_v7, %v5321_v40 }
 0x367   :  { %v5443_v57 = vadd.f32 %v5442_v63, %v5398_v39 }
 0x369   :  { %v5447_v3 = vmul.f32 %v5443_v57, %v23_v10 }
 0x36b   :  { %v5454_v17 = vsel %vm83_vm0, %v5447_v3, 0.0 }
 0x36c   :  { %5455 = vadd.xlane.f32.xlu1 %v5454_v17 }
 0x3cf   :  { %v5450_v61 = vpop.xlane.xlu0 %5449 }
 0x3d0   :  { %v5466_v15 = vperm.slane %v5450_v61, %v5458_v23 }
 0x3d7   :  { %v5453_v30 = vpop.xlane.xlu0 %5452 }
 0x3d8   :  { %v5468_v13 = vperm.slane %v5453_v30, %v5467_v62 }
 0x3da   :  { %v5470_v27 = vsel %vm5469_vm1, %v5468_v13, %v5466_v15 }
 0x3df   :  { %v5456_v36 = vpop.xlane.xlu1 %5455 }
 0x3e0   :  { %v5472_v32 = vperm.slane %v5456_v36, %v5471_v44 }
 0x3e2   :  { %v5474_v33 = vsel %vm5473_vm2, %v5472_v32, %v5470_v27 }
 0x3e3   :  { %v5476_v22 = vsel %vm5462_vm3, %v5474_v33, 0.0 }
 0x3e4   :  { %5478 = vst.msk [vmem:[#allocation2] sm:$0x1] %vm5477_vm4, %v5476_v22 }
 0x3e5   :  { %5489 = dma.vmem_to_hbm [thread:$0]  %s5485_s21, 16, %s5487_s23, [#allocation3]  }
 0x3e6   :  { %5520 = dma.done.wait [#allocation3], 16  }
 0x3e7   :  { %5521 = vsyncadd [#allocation3], 4294967280 }
 0x3e8   :  { %5494 = vsyncpa [#allocation3], 1 }

</bundles_post_ra>
